<compile_context>
chip_gen: v7x
topology: tpu7x:2x2x1
jax: 0.10.0
libtpu: 0.0.40
codegen_flags: <defaults>
</compile_context>

<pallas_src>
import jax
import jax.numpy as jnp
from jax.experimental import pallas as pl
from jax.experimental.pallas import tpu as pltpu


def _round_up(x, m):
    return (x + m - 1) // m * m


# PyTorch LSTM gate layout is [i, f, g, o]; reorder to [i, f, o, g] so sigmoid
# covers the first contiguous 3*HP lanes and tanh only the last HP lanes.
_GATE_PERM = (0, 1, 3, 2)


def _prep_gate_weight(w, in_real, in_pad, H, HP):
    """(4H, in_real) torch-layout weight -> (in_pad, 4*HP) bf16, gates [i,f,o,g]."""
    wt = jnp.transpose(w).astype(jnp.bfloat16)            # (in_real, 4H)
    out = jnp.zeros((in_pad, 4 * HP), jnp.bfloat16)
    for dst, src in enumerate(_GATE_PERM):
        out = out.at[:in_real, dst * HP:dst * HP + H].set(
            wt[:, src * H:(src + 1) * H])
    return out


def _prep_gate_bias(b, H, HP):
    """Fused (4H,) bias -> (1, 4*HP) f32, gates reordered to [i,f,o,g]."""
    out = jnp.zeros((1, 4 * HP), jnp.float32)
    for dst, src in enumerate(_GATE_PERM):
        out = out.at[0, dst * HP:dst * HP + H].set(b[src * H:(src + 1) * H])
    return out


def _pick_time_chunk(T, BP, I, HP, OP, const_bytes, budget_bytes, max_tt):
    """Largest time chunk whose estimated VMEM footprint fits the budget."""
    def vmem_need(tt):
        per = tt * BP * 4 * (4 * HP + HP)       # gpre + hseq scratch (f32)
        per += 2 * tt * BP * I * 4              # x chunk (double-buffered, f32)
        per += 2 * tt * BP * OP * 4             # pred chunk (double-buffered)
        return per + const_bytes
    tt = max(1, min(T, max_tt))
    while tt > 1 and vmem_need(tt) > budget_bytes:
        tt -= 1
    return tt


def _make_decoder_kernel(num_layers, HP, bp, tt, t_valid, needs_guard):
    """HP = padded hidden, bp = padded batch, tt = timesteps per grid step."""
    L = num_layers

    def kernel(*refs):
        n_w = 3 * L
        x_ref, h0_ref, c0_ref = refs[0], refs[1], refs[2]
        layer_refs = refs[3:3 + n_w]          # (w_ih, w_hh, bias) per layer
        fc_w_ref = refs[3 + n_w]              # (HP, OP) bf16
        fc_b_ref = refs[4 + n_w]              # (1, OP) f32
        pred_ref = refs[5 + n_w]              # (TT*BP, OP) output chunk
        hN_ref = refs[6 + n_w]                # (L, BP, HP) running h state
        cN_ref = refs[7 + n_w]                # (L, BP, HP) running c state
        gpre = refs[8 + n_w]                  # scratch (TT*BP, 4HP) f32
        hseq = refs[9 + n_w]                  # scratch (TT*BP, HP) f32

        # hN/cN blocks have a constant index -> VMEM-resident across the grid;
        # use them directly as the running recurrent state (no extra scratch).
        @pl.when(pl.program_id(0) == 0)
        def _():
            hN_ref[...] = h0_ref[...]
            cN_ref[...] = c0_ref[...]

        for l in range(L):                    # static unroll over layers
            w_ih = layer_refs[3 * l][...]     # (in, 4HP) bf16
            w_hh = layer_refs[3 * l + 1][...] # (HP, 4HP) bf16
            b = layer_refs[3 * l + 2][...]    # (1, 4HP) f32

            # Batched input-to-hidden projection for the whole chunk: one big
            # bf16 MXU matmul (M = TT*BP), bias folded in, f32 accumulation.
            layer_in = x_ref[...] if l == 0 else hseq[...]
            gpre[...] = (jnp.dot(layer_in.astype(jnp.bfloat16), w_ih,
                                 preferred_element_type=jnp.float32) + b)

            # Serial recurrence: only h_prev @ W_hh stays on the critical path.
            @pl.loop(0, tt)
            def _(t):
                r0 = pl.multiple_of(t * bp, bp)      # sublane-aligned rows
                h_prev = hN_ref[l]                   # (BP, HP) f32
                c_prev = cN_ref[l]                   # (BP, HP) f32

                gates = (gpre[pl.ds(r0, bp), :]
                         + jnp.dot(h_prev.astype(jnp.bfloat16), w_hh,
                                   preferred_element_type=jnp.float32))

                # gates are laid out [i | f | o | g], each HP lanes wide:
                # sigmoid on the contiguous first 3*HP lanes, tanh on the rest.
                sig = jax.nn.sigmoid(gates[:, :3 * HP])
                i_g = sig[:, 0:HP]
                f_g = sig[:, HP:2 * HP]
                o_g = sig[:, 2 * HP:3 * HP]
                g_g = jnp.tanh(gates[:, 3 * HP:])

                c_new = f_g * c_prev + i_g * g_g
                h_new = o_g * jnp.tanh(c_new)

                hseq[pl.ds(r0, bp), :] = h_new       # feeds next layer / FC

                if needs_guard:
                    # T was padded up to a multiple of TT: do not advance the
                    # recurrent state on padded timesteps.
                    gt = pl.program_id(0) * tt + t

                    @pl.when(gt < t_valid)
                    def _():
                        hN_ref[l] = h_new
                        cN_ref[l] = c_new
                else:
                    hN_ref[l] = h_new
                    cN_ref[l] = c_new

        # Final FC projection, hoisted out of the time loop: one bf16 matmul
        # over the whole chunk with a lane-dense (OP = multiple of 128) store.
        pred_ref[...] = (jnp.dot(hseq[...].astype(jnp.bfloat16), fc_w_ref[...],
                                 preferred_element_type=jnp.float32)
                         + fc_b_ref[...])

    return kernel


def decoder_forward(x, h0, c0, params, *, max_time_chunk=64):
    """Matches Decoder.forward(x, hidden, cell) of the PyTorch module."""
    B, T, I = x.shape
    L, _, H = h0.shape
    O = params['fc_w'].shape[0]

    BP = max(8, _round_up(B, 8))          # pad batch to full sublanes
    HP = _round_up(H, 128)                # pad hidden so gate slices are lane-aligned
    OP = _round_up(O, 128)                # pad output features to full lanes

    # ---- weight prep: reorder gates, pad H->HP, cast MXU operands to bf16 ----
    layer_args = []
    for l in range(L):
        in_real = I if l == 0 else H
        in_pad = I if l == 0 else HP
        layer_args += [
            _prep_gate_weight(params[f'w_ih_{l}'], in_real, in_pad, H, HP),
            _prep_gate_weight(params[f'w_hh_{l}'], H, HP, H, HP),
            _prep_gate_bias(params[f'b_ih_{l}'] + params[f'b_hh_{l}'], H, HP),
        ]
    fc_w = jnp.zeros((HP, OP), jnp.bfloat16).at[:H, :O].set(
        jnp.transpose(params['fc_w']).astype(jnp.bfloat16))
    fc_b = jnp.zeros((1, OP), jnp.float32).at[0, :O].set(params['fc_b'])

    # ---- VMEM-budgeted time chunk (robust to T not divisible by the chunk) ----
    const_bytes = (2 * sum(int(a.size) * a.dtype.itemsize
                           for a in layer_args + [fc_w, fc_b])
                   + 8 * L * BP * HP * 4)        # h0/c0 inputs + hN/cN outputs
    TT = _pick_time_chunk(T, BP, I, HP, OP, const_bytes,
                          budget_bytes=36 * 1024 * 1024, max_tt=max_time_chunk)
    TP = _round_up(T, TT)                 # padded steps are masked in-kernel
    grid = (TP // TT,)

    # ---- activations: pad batch/time, go time-major, flatten to 2-D ----
    x_p = jnp.zeros((BP, TP, I), jnp.float32).at[:B, :T].set(x)
    x2 = jnp.transpose(x_p, (1, 0, 2)).reshape(TP * BP, I)
    h0_p = jnp.zeros((L, BP, HP), jnp.float32).at[:, :B, :H].set(h0)
    c0_p = jnp.zeros((L, BP, HP), jnp.float32).at[:, :B, :H].set(c0)

    kernel = _make_decoder_kernel(L, HP, BP, TT, T, TP != T)

    out_shape = (jax.ShapeDtypeStruct((TP * BP, OP), jnp.float32),
                 jax.ShapeDtypeStruct((L, BP, HP), jnp.float32),
                 jax.ShapeDtypeStruct((L, BP, HP), jnp.float32))
    out_specs = (pl.BlockSpec((TT * BP, OP), lambda s: (s, 0)),      # pred chunk
                 pl.BlockSpec((L, BP, HP), lambda s: (0, 0, 0)),     # hN (resident)
                 pl.BlockSpec((L, BP, HP), lambda s: (0, 0, 0)))     # cN (resident)
    scratch_shapes = [pltpu.VMEM((TT * BP, 4 * HP), jnp.float32),    # gate inputs
                      pltpu.VMEM((TT * BP, HP), jnp.float32)]        # layer output seq

    flops = int(2 * TP * BP * ((I + HP) + (L - 1) * 2 * HP) * 4 * HP
                + 2 * TP * BP * HP * OP)
    transc = int(5 * TP * BP * L * HP)
    bytes_acc = int(4 * (x2.size + TP * BP * OP + 8 * L * BP * HP)
                    + sum(int(a.size) * a.dtype.itemsize
                          for a in layer_args + [fc_w, fc_b]))
    cost = pl.CostEstimate(flops=flops, transcendentals=transc,
                           bytes_accessed=bytes_acc)
    cparams = pltpu.CompilerParams(dimension_semantics=("arbitrary",),
                                   vmem_limit_bytes=48 * 1024 * 1024)

    consts = [h0_p, c0_p] + layer_args + [fc_w, fc_b]

    def run(single_buffer_consts):
        def cspec(arr):
            idx = lambda *_: (0,) * arr.ndim
            if single_buffer_consts:
                # Grid-invariant blocks: no point double-buffering them.
                return pl.BlockSpec(arr.shape, idx, pipeline_mode=pl.Buffered(1))
            return pl.BlockSpec(arr.shape, idx)

        in_specs = ([pl.BlockSpec((TT * BP, I), lambda s: (s, 0))]   # x chunk
                    + [cspec(a) for a in consts])
        return pl.pallas_call(
            kernel, grid=grid, out_shape=out_shape, in_specs=in_specs,
            out_specs=out_specs, scratch_shapes=scratch_shapes,
            compiler_params=cparams, cost_estimate=cost,
        )(x2, *consts)

    try:
        pred2, hN, cN = run(single_buffer_consts=True)
    except Exception:
        # pl.Buffered(1) not supported by this jax version -> default buffering.
        pred2, hN, cN = run(single_buffer_consts=False)

    prediction = pred2.reshape(TP, BP, OP)[:T, :B, :O].transpose(1, 0, 2)
    return prediction, hN[:, :B, :H], cN[:, :B, :H]


def decoder_ref(x, h0, c0, params):
    """Pure-JAX reference implementing the same PyTorch LSTM + Linear semantics."""
    B, T, _ = x.shape
    L, _, H = h0.shape
    h = [h0[l] for l in range(L)]
    c = [c0[l] for l in range(L)]
    outs = []
    for t in range(T):
        inp = x[:, t, :]
        for l in range(L):
            b = params[f'b_ih_{l}'] + params[f'b_hh_{l}']
            gates = inp @ params[f'w_ih_{l}'].T + h[l] @ params[f'w_hh_{l}'].T + b
            i_g = jax.nn.sigmoid(gates[:, 0:H])
            f_g = jax.nn.sigmoid(gates[:, H:2 * H])
            g_g = jnp.tanh(gates[:, 2 * H:3 * H])
            o_g = jax.nn.sigmoid(gates[:, 3 * H:4 * H])
            c[l] = f_g * c[l] + i_g * g_g
            h[l] = o_g * jnp.tanh(c[l])
            inp = h[l]
        outs.append(inp @ params['fc_w'].T + params['fc_b'])
    return jnp.stack(outs, axis=1), jnp.stack(h), jnp.stack(c)


def init_params(key, input_size, hidden_size, num_layers, output_size):
    """Deterministic PyTorch-style init: U(-1/sqrt(hidden), 1/sqrt(hidden))."""
    params = {}
    k = 1.0 / float(hidden_size) ** 0.5
    keys = jax.random.split(key, 4 * num_layers + 2)
    idx = 0
    for l in range(num_layers):
        in_sz = input_size if l == 0 else hidden_size
        params[f'w_ih_{l}'] = jax.random.uniform(
            keys[idx], (4 * hidden_size, in_sz), jnp.float32, -k, k); idx += 1
        params[f'w_hh_{l}'] = jax.random.uniform(
            keys[idx], (4 * hidden_size, hidden_size), jnp.float32, -k, k); idx += 1
        params[f'b_ih_{l}'] = jax.random.uniform(
            keys[idx], (4 * hidden_size,), jnp.float32, -k, k); idx += 1
        params[f'b_hh_{l}'] = jax.random.uniform(
            keys[idx], (4 * hidden_size,), jnp.float32, -k, k); idx += 1
    params['fc_w'] = jax.random.uniform(
        keys[idx], (output_size, hidden_size), jnp.float32, -k, k); idx += 1
    params['fc_b'] = jax.random.uniform(
        keys[idx], (output_size,), jnp.float32, -k, k)
    return params


if __name__ == "__main__":
    # Small shapes consistent with the module's forward (batch_first=True)
    B, T = 2, 8
    INPUT, HIDDEN, LAYERS, OUTPUT = 16, 32, 2, 16

    key = jax.random.PRNGKey(0)
    kp, kx, kh, kc = jax.random.split(key, 4)
    params = init_params(kp, INPUT, HIDDEN, LAYERS, OUTPUT)

    x = jax.random.normal(kx, (B, T, INPUT), jnp.float32)
    h0 = jax.random.normal(kh, (LAYERS, B, HIDDEN), jnp.float32)
    c0 = jax.random.normal(kc, (LAYERS, B, HIDDEN), jnp.float32)

    pred, hN, cN = decoder_forward(x, h0, c0, params)
    jax.block_until_ready((pred, hN, cN))

    pred_r, hN_r, cN_r = decoder_ref(x, h0, c0, params)
    assert pred.shape == (B, T, OUTPUT)
    assert hN.shape == (LAYERS, B, HIDDEN) and cN.shape == (LAYERS, B, HIDDEN)
    # bf16 MXU operands -> slightly looser tolerance than pure f32.
    assert jnp.allclose(pred, pred_r, atol=5e-2, rtol=5e-2), "prediction mismatch"
    assert jnp.allclose(hN, hN_r, atol=5e-2, rtol=5e-2), "hidden mismatch"
    assert jnp.allclose(cN, cN_r, atol=5e-2, rtol=5e-2), "cell mismatch"

    print("KERNEL_OK")
</pallas_src>

<mosaic_0001>
module attributes {stable_mosaic.version = 11 : i64} {
  func.func @kernel(%arg0: i32, %arg1: memref<64x16xf32, #tpu.memory_space<vmem>>, %arg2: memref<2x8x128xf32, #tpu.memory_space<vmem>>, %arg3: memref<2x8x128xf32, #tpu.memory_space<vmem>>, %arg4: memref<16x512xbf16, #tpu.memory_space<vmem>>, %arg5: memref<128x512xbf16, #tpu.memory_space<vmem>>, %arg6: memref<1x512xf32, #tpu.memory_space<vmem>>, %arg7: memref<128x512xbf16, #tpu.memory_space<vmem>>, %arg8: memref<128x512xbf16, #tpu.memory_space<vmem>>, %arg9: memref<1x512xf32, #tpu.memory_space<vmem>>, %arg10: memref<128x128xbf16, #tpu.memory_space<vmem>>, %arg11: memref<1x128xf32, #tpu.memory_space<vmem>>, %arg12: memref<64x128xf32, #tpu.memory_space<vmem>>, %arg13: memref<2x8x128xf32, #tpu.memory_space<vmem>>, %arg14: memref<2x8x128xf32, #tpu.memory_space<vmem>>, %arg15: memref<64x512xf32, #tpu.memory_space<vmem>>, %arg16: memref<64x128xf32, #tpu.memory_space<vmem>>) attributes {dimension_semantics = [#tpu.dimension_semantics<arbitrary>], iteration_bounds = array<i64: 1>, scalar_prefetch = 0 : i64, scratch_operands = 2 : i64, tpu.core_type = #tpu.core_type<tc>, window_params = [{transform_indices = @transform_0, window_bounds = array<i64: 64, 16>}, {pipeline_mode = #tpu.pipeline_mode<synchronous>, transform_indices = @transform_1, window_bounds = array<i64: 2, 8, 128>}, {pipeline_mode = #tpu.pipeline_mode<synchronous>, transform_indices = @transform_2, window_bounds = array<i64: 2, 8, 128>}, {pipeline_mode = #tpu.pipeline_mode<synchronous>, transform_indices = @transform_3, window_bounds = array<i64: 16, 512>}, {pipeline_mode = #tpu.pipeline_mode<synchronous>, transform_indices = @transform_4, window_bounds = array<i64: 128, 512>}, {pipeline_mode = #tpu.pipeline_mode<synchronous>, transform_indices = @transform_5, window_bounds = array<i64: 1, 512>}, {pipeline_mode = #tpu.pipeline_mode<synchronous>, transform_indices = @transform_6, window_bounds = array<i64: 128, 512>}, {pipeline_mode = #tpu.pipeline_mode<synchronous>, transform_indices = @transform_7, window_bounds = array<i64: 128, 512>}, {pipeline_mode = #tpu.pipeline_mode<synchronous>, transform_indices = @transform_8, window_bounds = array<i64: 1, 512>}, {pipeline_mode = #tpu.pipeline_mode<synchronous>, transform_indices = @transform_9, window_bounds = array<i64: 128, 128>}, {pipeline_mode = #tpu.pipeline_mode<synchronous>, transform_indices = @transform_10, window_bounds = array<i64: 1, 128>}, {transform_indices = @transform_11, window_bounds = array<i64: 64, 128>}, {pipeline_mode = #tpu.pipeline_mode<synchronous>, transform_indices = @transform_12, window_bounds = array<i64: 2, 8, 128>}, {pipeline_mode = #tpu.pipeline_mode<synchronous>, transform_indices = @transform_13, window_bounds = array<i64: 2, 8, 128>}]} {
    %c0_i32 = arith.constant 0 : i32
    %0 = arith.cmpi eq, %arg0, %c0_i32 : i32
    %1 = arith.extui %0 : i1 to i32
    %c0_i32_0 = arith.constant 0 : i32
    %2 = arith.cmpi ne, %1, %c0_i32_0 : i32
    scf.if %2 {
      %c0_36 = arith.constant 0 : index
      %c0_37 = arith.constant 0 : index
      %c0_38 = arith.constant 0 : index
      %31 = vector.load %arg2[%c0_36, %c0_37, %c0_38] : memref<2x8x128xf32, #tpu.memory_space<vmem>>, vector<2x8x128xf32>
      %c0_39 = arith.constant 0 : index
      %c0_40 = arith.constant 0 : index
      %c0_41 = arith.constant 0 : index
      %32 = vector.load %arg13[%c0_39, %c0_40, %c0_41] : memref<2x8x128xf32, #tpu.memory_space<vmem>>, vector<2x8x128xf32>
      tpu.vector_store %arg13[%c0_39, %c0_40, %c0_41], %31 {strides = array<i32>} : memref<2x8x128xf32, #tpu.memory_space<vmem>>, vector<2x8x128xf32>,
      %c0_42 = arith.constant 0 : index
      %c0_43 = arith.constant 0 : index
      %c0_44 = arith.constant 0 : index
      %33 = vector.load %arg3[%c0_42, %c0_43, %c0_44] : memref<2x8x128xf32, #tpu.memory_space<vmem>>, vector<2x8x128xf32>
      %c0_45 = arith.constant 0 : index
      %c0_46 = arith.constant 0 : index
      %c0_47 = arith.constant 0 : index
      %34 = vector.load %arg14[%c0_45, %c0_46, %c0_47] : memref<2x8x128xf32, #tpu.memory_space<vmem>>, vector<2x8x128xf32>
      tpu.vector_store %arg14[%c0_45, %c0_46, %c0_47], %33 {strides = array<i32>} : memref<2x8x128xf32, #tpu.memory_space<vmem>>, vector<2x8x128xf32>,
    } else {
    }
    %c0 = arith.constant 0 : index
    %c0_1 = arith.constant 0 : index
    %3 = vector.load %arg4[%c0, %c0_1] : memref<16x512xbf16, #tpu.memory_space<vmem>>, vector<16x512xbf16>
    %c0_2 = arith.constant 0 : index
    %c0_3 = arith.constant 0 : index
    %4 = vector.load %arg5[%c0_2, %c0_3] : memref<128x512xbf16, #tpu.memory_space<vmem>>, vector<128x512xbf16>
    %c0_4 = arith.constant 0 : index
    %c0_5 = arith.constant 0 : index
    %5 = vector.load %arg6[%c0_4, %c0_5] : memref<1x512xf32, #tpu.memory_space<vmem>>, vector<1x512xf32>
    %c0_6 = arith.constant 0 : index
    %c0_7 = arith.constant 0 : index
    %6 = vector.load %arg1[%c0_6, %c0_7] : memref<64x16xf32, #tpu.memory_space<vmem>>, vector<64x16xf32>
    %7 = arith.truncf %6 : vector<64x16xf32> to vector<64x16xbf16>
    %cst = arith.constant dense<0.000000e+00> : vector<64x512xf32>
    %8 = tpu.matmul %7, %3, %cst {dimension_numbers = #tpu.dot_dimension_numbers<[1], [0], [0], [1], [0, 0, 1, 1], [], []>} : vector<64x16xbf16>, vector<16x512xbf16>, vector<64x512xf32> -> vector<64x512xf32>
    %9 = vector.broadcast %5 : vector<1x512xf32> to vector<64x512xf32>
    %10 = arith.addf %8, %9 : vector<64x512xf32>
    %c0_8 = arith.constant 0 : index
    %c0_9 = arith.constant 0 : index
    %11 = vector.load %arg15[%c0_8, %c0_9] : memref<64x512xf32, #tpu.memory_space<vmem>>, vector<64x512xf32>
    tpu.vector_store %arg15[%c0_8, %c0_9], %10 {strides = array<i32>} : memref<64x512xf32, #tpu.memory_space<vmem>>, vector<64x512xf32>,
    %c0_i32_10 = arith.constant 0 : i32
    %c8_i32 = arith.constant 8 : i32
    %12 = arith.addi %c0_i32_10, %c8_i32 : i32
    %c1_i32 = arith.constant 1 : i32
    scf.for %arg17 = %c0_i32_10 to %12 step %c1_i32  : i32 {
      %c1_i32_36 = arith.constant 1 : i32
      %31 = arith.muli %arg17, %c1_i32_36 : i32
      %c0_i32_37 = arith.constant 0 : i32
      %32 = arith.addi %c0_i32_37, %31 : i32
      %c8_i32_38 = arith.constant 8 : i32
      %33 = arith.muli %32, %c8_i32_38 : i32
      %34 = tpu.assume_multiple %33, 8 : i32
      %c0_39 = arith.constant 0 : index
      %c0_40 = arith.constant 0 : index
      %c0_41 = arith.constant 0 : index
      %35 = vector.load %arg13[%c0_39, %c0_40, %c0_41] : memref<2x8x128xf32, #tpu.memory_space<vmem>>, vector<1x8x128xf32>
      %36 = vector.shape_cast %35 : vector<1x8x128xf32> to vector<8x128xf32>
      %c0_42 = arith.constant 0 : index
      %c0_43 = arith.constant 0 : index
      %c0_44 = arith.constant 0 : index
      %37 = vector.load %arg14[%c0_42, %c0_43, %c0_44] : memref<2x8x128xf32, #tpu.memory_space<vmem>>, vector<1x8x128xf32>
      %38 = vector.shape_cast %37 : vector<1x8x128xf32> to vector<8x128xf32>
      %39 = arith.index_cast %34 : i32 to index
      %c0_45 = arith.constant 0 : index
      %40 = vector.load %arg15[%39, %c0_45] : memref<64x512xf32, #tpu.memory_space<vmem>>, vector<8x512xf32>
      %41 = arith.truncf %36 : vector<8x128xf32> to vector<8x128xbf16>
      %cst_46 = arith.constant dense<0.000000e+00> : vector<8x512xf32>
      %42 = tpu.matmul %41, %4, %cst_46 {dimension_numbers = #tpu.dot_dimension_numbers<[1], [0], [0], [1], [0, 0, 1, 1], [], []>} : vector<8x128xbf16>, vector<128x512xbf16>, vector<8x512xf32> -> vector<8x512xf32>
      %43 = arith.addf %40, %42 : vector<8x512xf32>
      %44 = vector.extract_strided_slice %43 {offsets = [0, 0], sizes = [8, 384], strides = [1, 1]} : vector<8x512xf32> to vector<8x384xf32>
      %45 = arith.negf %44 : vector<8x384xf32>
      %46 = math.exp %45 : vector<8x384xf32>
      %cst_47 = arith.constant 1.000000e+00 : f32
      %47 = vector.broadcast %cst_47 : f32 to vector<8x384xf32>
      %48 = arith.addf %47, %46 : vector<8x384xf32>
      %49 = arith.divf %47, %48 : vector<8x384xf32>
      %50 = vector.extract_strided_slice %49 {offsets = [0, 0], sizes = [8, 128], strides = [1, 1]} : vector<8x384xf32> to vector<8x128xf32>
      %51 = vector.extract_strided_slice %49 {offsets = [0, 128], sizes = [8, 128], strides = [1, 1]} : vector<8x384xf32> to vector<8x128xf32>
      %52 = vector.extract_strided_slice %49 {offsets = [0, 256], sizes = [8, 128], strides = [1, 1]} : vector<8x384xf32> to vector<8x128xf32>
      %53 = vector.extract_strided_slice %43 {offsets = [0, 384], sizes = [8, 128], strides = [1, 1]} : vector<8x512xf32> to vector<8x128xf32>
      %54 = math.tanh %53 : vector<8x128xf32>
      %55 = arith.mulf %51, %38 : vector<8x128xf32>
      %56 = arith.mulf %50, %54 : vector<8x128xf32>
      %57 = arith.addf %55, %56 : vector<8x128xf32>
      %58 = math.tanh %57 : vector<8x128xf32>
      %59 = arith.mulf %52, %58 : vector<8x128xf32>
      %60 = arith.index_cast %34 : i32 to index
      %c0_48 = arith.constant 0 : index
      %61 = vector.load %arg16[%60, %c0_48] : memref<64x128xf32, #tpu.memory_space<vmem>>, vector<8x128xf32>
      tpu.vector_store %arg16[%60, %c0_48], %59 {strides = array<i32>} : memref<64x128xf32, #tpu.memory_space<vmem>>, vector<8x128xf32>,
      %c0_49 = arith.constant 0 : index
      %c0_50 = arith.constant 0 : index
      %c0_51 = arith.constant 0 : index
      %62 = vector.load %arg13[%c0_49, %c0_50, %c0_51] : memref<2x8x128xf32, #tpu.memory_space<vmem>>, vector<1x8x128xf32>
      %63 = vector.shape_cast %62 : vector<1x8x128xf32> to vector<8x128xf32>
      %64 = vector.shape_cast %59 : vector<8x128xf32> to vector<1x8x128xf32>
      tpu.vector_store %arg13[%c0_49, %c0_50, %c0_51], %64 {strides = array<i32>} : memref<2x8x128xf32, #tpu.memory_space<vmem>>, vector<1x8x128xf32>,
      %c0_52 = arith.constant 0 : index
      %c0_53 = arith.constant 0 : index
      %c0_54 = arith.constant 0 : index
      %65 = vector.load %arg14[%c0_52, %c0_53, %c0_54] : memref<2x8x128xf32, #tpu.memory_space<vmem>>, vector<1x8x128xf32>
      %66 = vector.shape_cast %65 : vector<1x8x128xf32> to vector<8x128xf32>
      %67 = vector.shape_cast %57 : vector<8x128xf32> to vector<1x8x128xf32>
      tpu.vector_store %arg14[%c0_52, %c0_53, %c0_54], %67 {strides = array<i32>} : memref<2x8x128xf32, #tpu.memory_space<vmem>>, vector<1x8x128xf32>,
    }
    %c8_i32_11 = arith.constant 8 : i32
    %c0_12 = arith.constant 0 : index
    %c0_13 = arith.constant 0 : index
    %13 = vector.load %arg7[%c0_12, %c0_13] : memref<128x512xbf16, #tpu.memory_space<vmem>>, vector<128x512xbf16>
    %c0_14 = arith.constant 0 : index
    %c0_15 = arith.constant 0 : index
    %14 = vector.load %arg8[%c0_14, %c0_15] : memref<128x512xbf16, #tpu.memory_space<vmem>>, vector<128x512xbf16>
    %c0_16 = arith.constant 0 : index
    %c0_17 = arith.constant 0 : index
    %15 = vector.load %arg9[%c0_16, %c0_17] : memref<1x512xf32, #tpu.memory_space<vmem>>, vector<1x512xf32>
    %c0_18 = arith.constant 0 : index
    %c0_19 = arith.constant 0 : index
    %16 = vector.load %arg16[%c0_18, %c0_19] : memref<64x128xf32, #tpu.memory_space<vmem>>, vector<64x128xf32>
    %17 = arith.truncf %16 : vector<64x128xf32> to vector<64x128xbf16>
    %cst_20 = arith.constant dense<0.000000e+00> : vector<64x512xf32>
    %18 = tpu.matmul %17, %13, %cst_20 {dimension_numbers = #tpu.dot_dimension_numbers<[1], [0], [0], [1], [0, 0, 1, 1], [], []>} : vector<64x128xbf16>, vector<128x512xbf16>, vector<64x512xf32> -> vector<64x512xf32>
    %19 = vector.broadcast %15 : vector<1x512xf32> to vector<64x512xf32>
    %20 = arith.addf %18, %19 : vector<64x512xf32>
    %c0_21 = arith.constant 0 : index
    %c0_22 = arith.constant 0 : index
    %21 = vector.load %arg15[%c0_21, %c0_22] : memref<64x512xf32, #tpu.memory_space<vmem>>, vector<64x512xf32>
    tpu.vector_store %arg15[%c0_21, %c0_22], %20 {strides = array<i32>} : memref<64x512xf32, #tpu.memory_space<vmem>>, vector<64x512xf32>,
    %c0_i32_23 = arith.constant 0 : i32
    %c8_i32_24 = arith.constant 8 : i32
    %22 = arith.addi %c0_i32_23, %c8_i32_24 : i32
    %c1_i32_25 = arith.constant 1 : i32
    scf.for %arg17 = %c0_i32_23 to %22 step %c1_i32_25  : i32 {
      %c1_i32_36 = arith.constant 1 : i32
      %31 = arith.muli %arg17, %c1_i32_36 : i32
      %c0_i32_37 = arith.constant 0 : i32
      %32 = arith.addi %c0_i32_37, %31 : i32
      %c8_i32_38 = arith.constant 8 : i32
      %33 = arith.muli %32, %c8_i32_38 : i32
      %34 = tpu.assume_multiple %33, 8 : i32
      %c1 = arith.constant 1 : index
      %c0_39 = arith.constant 0 : index
      %c0_40 = arith.constant 0 : index
      %35 = vector.load %arg13[%c1, %c0_39, %c0_40] : memref<2x8x128xf32, #tpu.memory_space<vmem>>, vector<1x8x128xf32>
      %36 = vector.shape_cast %35 : vector<1x8x128xf32> to vector<8x128xf32>
      %c1_41 = arith.constant 1 : index
      %c0_42 = arith.constant 0 : index
      %c0_43 = arith.constant 0 : index
      %37 = vector.load %arg14[%c1_41, %c0_42, %c0_43] : memref<2x8x128xf32, #tpu.memory_space<vmem>>, vector<1x8x128xf32>
      %38 = vector.shape_cast %37 : vector<1x8x128xf32> to vector<8x128xf32>
      %39 = arith.index_cast %34 : i32 to index
      %c0_44 = arith.constant 0 : index
      %40 = vector.load %arg15[%39, %c0_44] : memref<64x512xf32, #tpu.memory_space<vmem>>, vector<8x512xf32>
      %41 = arith.truncf %36 : vector<8x128xf32> to vector<8x128xbf16>
      %cst_45 = arith.constant dense<0.000000e+00> : vector<8x512xf32>
      %42 = tpu.matmul %41, %14, %cst_45 {dimension_numbers = #tpu.dot_dimension_numbers<[1], [0], [0], [1], [0, 0, 1, 1], [], []>} : vector<8x128xbf16>, vector<128x512xbf16>, vector<8x512xf32> -> vector<8x512xf32>
      %43 = arith.addf %40, %42 : vector<8x512xf32>
      %44 = vector.extract_strided_slice %43 {offsets = [0, 0], sizes = [8, 384], strides = [1, 1]} : vector<8x512xf32> to vector<8x384xf32>
      %45 = arith.negf %44 : vector<8x384xf32>
      %46 = math.exp %45 : vector<8x384xf32>
      %cst_46 = arith.constant 1.000000e+00 : f32
      %47 = vector.broadcast %cst_46 : f32 to vector<8x384xf32>
      %48 = arith.addf %47, %46 : vector<8x384xf32>
      %49 = arith.divf %47, %48 : vector<8x384xf32>
      %50 = vector.extract_strided_slice %49 {offsets = [0, 0], sizes = [8, 128], strides = [1, 1]} : vector<8x384xf32> to vector<8x128xf32>
      %51 = vector.extract_strided_slice %49 {offsets = [0, 128], sizes = [8, 128], strides = [1, 1]} : vector<8x384xf32> to vector<8x128xf32>
      %52 = vector.extract_strided_slice %49 {offsets = [0, 256], sizes = [8, 128], strides = [1, 1]} : vector<8x384xf32> to vector<8x128xf32>
      %53 = vector.extract_strided_slice %43 {offsets = [0, 384], sizes = [8, 128], strides = [1, 1]} : vector<8x512xf32> to vector<8x128xf32>
      %54 = math.tanh %53 : vector<8x128xf32>
      %55 = arith.mulf %51, %38 : vector<8x128xf32>
      %56 = arith.mulf %50, %54 : vector<8x128xf32>
      %57 = arith.addf %55, %56 : vector<8x128xf32>
      %58 = math.tanh %57 : vector<8x128xf32>
      %59 = arith.mulf %52, %58 : vector<8x128xf32>
      %60 = arith.index_cast %34 : i32 to index
      %c0_47 = arith.constant 0 : index
      %61 = vector.load %arg16[%60, %c0_47] : memref<64x128xf32, #tpu.memory_space<vmem>>, vector<8x128xf32>
      tpu.vector_store %arg16[%60, %c0_47], %59 {strides = array<i32>} : memref<64x128xf32, #tpu.memory_space<vmem>>, vector<8x128xf32>,
      %c1_48 = arith.constant 1 : index
      %c0_49 = arith.constant 0 : index
      %c0_50 = arith.constant 0 : index
      %62 = vector.load %arg13[%c1_48, %c0_49, %c0_50] : memref<2x8x128xf32, #tpu.memory_space<vmem>>, vector<1x8x128xf32>
      %63 = vector.shape_cast %62 : vector<1x8x128xf32> to vector<8x128xf32>
      %64 = vector.shape_cast %59 : vector<8x128xf32> to vector<1x8x128xf32>
      tpu.vector_store %arg13[%c1_48, %c0_49, %c0_50], %64 {strides = array<i32>} : memref<2x8x128xf32, #tpu.memory_space<vmem>>, vector<1x8x128xf32>,
      %c1_51 = arith.constant 1 : index
      %c0_52 = arith.constant 0 : index
      %c0_53 = arith.constant 0 : index
      %65 = vector.load %arg14[%c1_51, %c0_52, %c0_53] : memref<2x8x128xf32, #tpu.memory_space<vmem>>, vector<1x8x128xf32>
      %66 = vector.shape_cast %65 : vector<1x8x128xf32> to vector<8x128xf32>
      %67 = vector.shape_cast %57 : vector<8x128xf32> to vector<1x8x128xf32>
      tpu.vector_store %arg14[%c1_51, %c0_52, %c0_53], %67 {strides = array<i32>} : memref<2x8x128xf32, #tpu.memory_space<vmem>>, vector<1x8x128xf32>,
    }
    %c8_i32_26 = arith.constant 8 : i32
    %c0_27 = arith.constant 0 : index
    %c0_28 = arith.constant 0 : index
    %23 = vector.load %arg16[%c0_27, %c0_28] : memref<64x128xf32, #tpu.memory_space<vmem>>, vector<64x128xf32>
    %24 = arith.truncf %23 : vector<64x128xf32> to vector<64x128xbf16>
    %c0_29 = arith.constant 0 : index
    %c0_30 = arith.constant 0 : index
    %25 = vector.load %arg10[%c0_29, %c0_30] : memref<128x128xbf16, #tpu.memory_space<vmem>>, vector<128x128xbf16>
    %cst_31 = arith.constant dense<0.000000e+00> : vector<64x128xf32>
    %26 = tpu.matmul %24, %25, %cst_31 {dimension_numbers = #tpu.dot_dimension_numbers<[1], [0], [0], [1], [0, 0, 1, 1], [], []>} : vector<64x128xbf16>, vector<128x128xbf16>, vector<64x128xf32> -> vector<64x128xf32>
    %c0_32 = arith.constant 0 : index
    %c0_33 = arith.constant 0 : index
    %27 = vector.load %arg11[%c0_32, %c0_33] : memref<1x128xf32, #tpu.memory_space<vmem>>, vector<1x128xf32>
    %28 = vector.broadcast %27 : vector<1x128xf32> to vector<64x128xf32>
    %29 = arith.addf %26, %28 : vector<64x128xf32>
    %c0_34 = arith.constant 0 : index
    %c0_35 = arith.constant 0 : index
    %30 = vector.load %arg12[%c0_34, %c0_35] : memref<64x128xf32, #tpu.memory_space<vmem>>, vector<64x128xf32>
    tpu.vector_store %arg12[%c0_34, %c0_35], %29 {strides = array<i32>} : memref<64x128xf32, #tpu.memory_space<vmem>>, vector<64x128xf32>,
    return
  }
  func.func @transform_0(%arg0: i32) -> (i32, i32) {
    %c0_i32 = arith.constant 0 : i32
    %c0_i32_0 = arith.constant 0 : i32
    return %arg0, %c0_i32 : i32, i32
  }
  func.func @transform_1(%arg0: i32) -> (i32, i32, i32) {
    %c0_i32 = arith.constant 0 : i32
    %c0_i32_0 = arith.constant 0 : i32
    %c0_i32_1 = arith.constant 0 : i32
    %c0_i32_2 = arith.constant 0 : i32
    return %c0_i32, %c0_i32_0, %c0_i32_1 : i32, i32, i32
  }
  func.func @transform_2(%arg0: i32) -> (i32, i32, i32) {
    %c0_i32 = arith.constant 0 : i32
    %c0_i32_0 = arith.constant 0 : i32
    %c0_i32_1 = arith.constant 0 : i32
    %c0_i32_2 = arith.constant 0 : i32
    return %c0_i32, %c0_i32_0, %c0_i32_1 : i32, i32, i32
  }
  func.func @transform_3(%arg0: i32) -> (i32, i32) {
    %c0_i32 = arith.constant 0 : i32
    %c0_i32_0 = arith.constant 0 : i32
    %c0_i32_1 = arith.constant 0 : i32
    return %c0_i32, %c0_i32_0 : i32, i32
  }
  func.func @transform_4(%arg0: i32) -> (i32, i32) {
    %c0_i32 = arith.constant 0 : i32
    %c0_i32_0 = arith.constant 0 : i32
    %c0_i32_1 = arith.constant 0 : i32
    return %c0_i32, %c0_i32_0 : i32, i32
  }
  func.func @transform_5(%arg0: i32) -> (i32, i32) {
    %c0_i32 = arith.constant 0 : i32
    %c0_i32_0 = arith.constant 0 : i32
    %c0_i32_1 = arith.constant 0 : i32
    return %c0_i32, %c0_i32_0 : i32, i32
  }
  func.func @transform_6(%arg0: i32) -> (i32, i32) {
    %c0_i32 = arith.constant 0 : i32
    %c0_i32_0 = arith.constant 0 : i32
    %c0_i32_1 = arith.constant 0 : i32
    return %c0_i32, %c0_i32_0 : i32, i32
  }
  func.func @transform_7(%arg0: i32) -> (i32, i32) {
    %c0_i32 = arith.constant 0 : i32
    %c0_i32_0 = arith.constant 0 : i32
    %c0_i32_1 = arith.constant 0 : i32
    return %c0_i32, %c0_i32_0 : i32, i32
  }
  func.func @transform_8(%arg0: i32) -> (i32, i32) {
    %c0_i32 = arith.constant 0 : i32
    %c0_i32_0 = arith.constant 0 : i32
    %c0_i32_1 = arith.constant 0 : i32
    return %c0_i32, %c0_i32_0 : i32, i32
  }
  func.func @transform_9(%arg0: i32) -> (i32, i32) {
    %c0_i32 = arith.constant 0 : i32
    %c0_i32_0 = arith.constant 0 : i32
    %c0_i32_1 = arith.constant 0 : i32
    return %c0_i32, %c0_i32_0 : i32, i32
  }
  func.func @transform_10(%arg0: i32) -> (i32, i32) {
    %c0_i32 = arith.constant 0 : i32
    %c0_i32_0 = arith.constant 0 : i32
    %c0_i32_1 = arith.constant 0 : i32
    return %c0_i32, %c0_i32_0 : i32, i32
  }
  func.func @transform_11(%arg0: i32) -> (i32, i32) {
    %c0_i32 = arith.constant 0 : i32
    %c0_i32_0 = arith.constant 0 : i32
    return %arg0, %c0_i32 : i32, i32
  }
  func.func @transform_12(%arg0: i32) -> (i32, i32, i32) {
    %c0_i32 = arith.constant 0 : i32
    %c0_i32_0 = arith.constant 0 : i32
    %c0_i32_1 = arith.constant 0 : i32
    %c0_i32_2 = arith.constant 0 : i32
    return %c0_i32, %c0_i32_0, %c0_i32_1 : i32, i32, i32
  }
  func.func @transform_13(%arg0: i32) -> (i32, i32, i32) {
    %c0_i32 = arith.constant 0 : i32
    %c0_i32_0 = arith.constant 0 : i32
    %c0_i32_1 = arith.constant 0 : i32
    %c0_i32_2 = arith.constant 0 : i32
    return %c0_i32, %c0_i32_0, %c0_i32_1 : i32, i32, i32
  }
}

module attributes {stable_mosaic.version = 11 : i64} {
  func.func @kernel(%arg0: i32, %arg1: memref<64x16xf32, #tpu.memory_space<vmem>>, %arg2: memref<2x8x128xf32, #tpu.memory_space<vmem>>, %arg3: memref<2x8x128xf32, #tpu.memory_space<vmem>>, %arg4: memref<16x512xbf16, #tpu.memory_space<vmem>>, %arg5: memref<128x512xbf16, #tpu.memory_space<vmem>>, %arg6: memref<1x512xf32, #tpu.memory_space<vmem>>, %arg7: memref<128x512xbf16, #tpu.memory_space<vmem>>, %arg8: memref<128x512xbf16, #tpu.memory_space<vmem>>, %arg9: memref<1x512xf32, #tpu.memory_space<vmem>>, %arg10: memref<128x128xbf16, #tpu.memory_space<vmem>>, %arg11: memref<1x128xf32, #tpu.memory_space<vmem>>, %arg12: memref<64x128xf32, #tpu.memory_space<vmem>>, %arg13: memref<2x8x128xf32, #tpu.memory_space<vmem>>, %arg14: memref<2x8x128xf32, #tpu.memory_space<vmem>>, %arg15: memref<64x512xf32, #tpu.memory_space<vmem>>, %arg16: memref<64x128xf32, #tpu.memory_space<vmem>>) attributes {dimension_semantics = [#tpu.dimension_semantics<arbitrary>], iteration_bounds = array<i64: 1>, scalar_prefetch = 0 : i64, scratch_operands = 2 : i64, tpu.core_type = #tpu.core_type<tc>, window_params = [{transform_indices = @transform_0, window_bounds = array<i64: 64, 16>}, {pipeline_mode = #tpu.pipeline_mode<synchronous>, transform_indices = @transform_1, window_bounds = array<i64: 2, 8, 128>}, {pipeline_mode = #tpu.pipeline_mode<synchronous>, transform_indices = @transform_2, window_bounds = array<i64: 2, 8, 128>}, {pipeline_mode = #tpu.pipeline_mode<synchronous>, transform_indices = @transform_3, window_bounds = array<i64: 16, 512>}, {pipeline_mode = #tpu.pipeline_mode<synchronous>, transform_indices = @transform_4, window_bounds = array<i64: 128, 512>}, {pipeline_mode = #tpu.pipeline_mode<synchronous>, transform_indices = @transform_5, window_bounds = array<i64: 1, 512>}, {pipeline_mode = #tpu.pipeline_mode<synchronous>, transform_indices = @transform_6, window_bounds = array<i64: 128, 512>}, {pipeline_mode = #tpu.pipeline_mode<synchronous>, transform_indices = @transform_7, window_bounds = array<i64: 128, 512>}, {pipeline_mode = #tpu.pipeline_mode<synchronous>, transform_indices = @transform_8, window_bounds = array<i64: 1, 512>}, {pipeline_mode = #tpu.pipeline_mode<synchronous>, transform_indices = @transform_9, window_bounds = array<i64: 128, 128>}, {pipeline_mode = #tpu.pipeline_mode<synchronous>, transform_indices = @transform_10, window_bounds = array<i64: 1, 128>}, {transform_indices = @transform_11, window_bounds = array<i64: 64, 128>}, {pipeline_mode = #tpu.pipeline_mode<synchronous>, transform_indices = @transform_12, window_bounds = array<i64: 2, 8, 128>}, {pipeline_mode = #tpu.pipeline_mode<synchronous>, transform_indices = @transform_13, window_bounds = array<i64: 2, 8, 128>}]} {
    %c0_i32 = arith.constant 0 : i32
    %0 = arith.cmpi eq, %arg0, %c0_i32 : i32
    %1 = arith.extui %0 : i1 to i32
    %c0_i32_0 = arith.constant 0 : i32
    %2 = arith.cmpi ne, %1, %c0_i32_0 : i32
    scf.if %2 {
      %c0_36 = arith.constant 0 : index
      %c0_37 = arith.constant 0 : index
      %c0_38 = arith.constant 0 : index
      %31 = vector.load %arg2[%c0_36, %c0_37, %c0_38] : memref<2x8x128xf32, #tpu.memory_space<vmem>>, vector<2x8x128xf32>
      %c0_39 = arith.constant 0 : index
      %c0_40 = arith.constant 0 : index
      %c0_41 = arith.constant 0 : index
      %32 = vector.load %arg13[%c0_39, %c0_40, %c0_41] : memref<2x8x128xf32, #tpu.memory_space<vmem>>, vector<2x8x128xf32>
      tpu.vector_store %arg13[%c0_39, %c0_40, %c0_41], %31 {strides = array<i32>} : memref<2x8x128xf32, #tpu.memory_space<vmem>>, vector<2x8x128xf32>,
      %c0_42 = arith.constant 0 : index
      %c0_43 = arith.constant 0 : index
      %c0_44 = arith.constant 0 : index
      %33 = vector.load %arg3[%c0_42, %c0_43, %c0_44] : memref<2x8x128xf32, #tpu.memory_space<vmem>>, vector<2x8x128xf32>
      %c0_45 = arith.constant 0 : index
      %c0_46 = arith.constant 0 : index
      %c0_47 = arith.constant 0 : index
      %34 = vector.load %arg14[%c0_45, %c0_46, %c0_47] : memref<2x8x128xf32, #tpu.memory_space<vmem>>, vector<2x8x128xf32>
      tpu.vector_store %arg14[%c0_45, %c0_46, %c0_47], %33 {strides = array<i32>} : memref<2x8x128xf32, #tpu.memory_space<vmem>>, vector<2x8x128xf32>,
    } else {
    }
    %c0 = arith.constant 0 : index
    %c0_1 = arith.constant 0 : index
    %3 = vector.load %arg4[%c0, %c0_1] : memref<16x512xbf16, #tpu.memory_space<vmem>>, vector<16x512xbf16>
    %c0_2 = arith.constant 0 : index
    %c0_3 = arith.constant 0 : index
    %4 = vector.load %arg5[%c0_2, %c0_3] : memref<128x512xbf16, #tpu.memory_space<vmem>>, vector<128x512xbf16>
    %c0_4 = arith.constant 0 : index
    %c0_5 = arith.constant 0 : index
    %5 = vector.load %arg6[%c0_4, %c0_5] : memref<1x512xf32, #tpu.memory_space<vmem>>, vector<1x512xf32>
    %c0_6 = arith.constant 0 : index
    %c0_7 = arith.constant 0 : index
    %6 = vector.load %arg1[%c0_6, %c0_7] : memref<64x16xf32, #tpu.memory_space<vmem>>, vector<64x16xf32>
    %7 = arith.truncf %6 : vector<64x16xf32> to vector<64x16xbf16>
    %cst = arith.constant dense<0.000000e+00> : vector<64x512xf32>
    %8 = tpu.matmul %7, %3, %cst {dimension_numbers = #tpu.dot_dimension_numbers<[1], [0], [0], [1], [0, 0, 1, 1], [], []>} : vector<64x16xbf16>, vector<16x512xbf16>, vector<64x512xf32> -> vector<64x512xf32>
    %9 = vector.broadcast %5 : vector<1x512xf32> to vector<64x512xf32>
    %10 = arith.addf %8, %9 : vector<64x512xf32>
    %c0_8 = arith.constant 0 : index
    %c0_9 = arith.constant 0 : index
    %11 = vector.load %arg15[%c0_8, %c0_9] : memref<64x512xf32, #tpu.memory_space<vmem>>, vector<64x512xf32>
    tpu.vector_store %arg15[%c0_8, %c0_9], %10 {strides = array<i32>} : memref<64x512xf32, #tpu.memory_space<vmem>>, vector<64x512xf32>,
    %c0_i32_10 = arith.constant 0 : i32
    %c8_i32 = arith.constant 8 : i32
    %12 = arith.addi %c0_i32_10, %c8_i32 : i32
    %c1_i32 = arith.constant 1 : i32
    scf.for %arg17 = %c0_i32_10 to %12 step %c1_i32  : i32 {
      %c1_i32_36 = arith.constant 1 : i32
      %31 = arith.muli %arg17, %c1_i32_36 : i32
      %c0_i32_37 = arith.constant 0 : i32
      %32 = arith.addi %c0_i32_37, %31 : i32
      %c8_i32_38 = arith.constant 8 : i32
      %33 = arith.muli %32, %c8_i32_38 : i32
      %34 = tpu.assume_multiple %33, 8 : i32
      %c0_39 = arith.constant 0 : index
      %c0_40 = arith.constant 0 : index
      %c0_41 = arith.constant 0 : index
      %35 = vector.load %arg13[%c0_39, %c0_40, %c0_41] : memref<2x8x128xf32, #tpu.memory_space<vmem>>, vector<1x8x128xf32>
      %36 = vector.shape_cast %35 : vector<1x8x128xf32> to vector<8x128xf32>
      %c0_42 = arith.constant 0 : index
      %c0_43 = arith.constant 0 : index
      %c0_44 = arith.constant 0 : index
      %37 = vector.load %arg14[%c0_42, %c0_43, %c0_44] : memref<2x8x128xf32, #tpu.memory_space<vmem>>, vector<1x8x128xf32>
      %38 = vector.shape_cast %37 : vector<1x8x128xf32> to vector<8x128xf32>
      %39 = arith.index_cast %34 : i32 to index
      %c0_45 = arith.constant 0 : index
      %40 = vector.load %arg15[%39, %c0_45] : memref<64x512xf32, #tpu.memory_space<vmem>>, vector<8x512xf32>
      %41 = arith.truncf %36 : vector<8x128xf32> to vector<8x128xbf16>
      %cst_46 = arith.constant dense<0.000000e+00> : vector<8x512xf32>
      %42 = tpu.matmul %41, %4, %cst_46 {dimension_numbers = #tpu.dot_dimension_numbers<[1], [0], [0], [1], [0, 0, 1, 1], [], []>} : vector<8x128xbf16>, vector<128x512xbf16>, vector<8x512xf32> -> vector<8x512xf32>
      %43 = arith.addf %40, %42 : vector<8x512xf32>
      %44 = vector.extract_strided_slice %43 {offsets = [0, 0], sizes = [8, 384], strides = [1, 1]} : vector<8x512xf32> to vector<8x384xf32>
      %45 = arith.negf %44 : vector<8x384xf32>
      %46 = math.exp %45 : vector<8x384xf32>
      %cst_47 = arith.constant 1.000000e+00 : f32
      %47 = vector.broadcast %cst_47 : f32 to vector<8x384xf32>
      %48 = arith.addf %47, %46 : vector<8x384xf32>
      %49 = arith.divf %47, %48 : vector<8x384xf32>
      %50 = vector.extract_strided_slice %49 {offsets = [0, 0], sizes = [8, 128], strides = [1, 1]} : vector<8x384xf32> to vector<8x128xf32>
      %51 = vector.extract_strided_slice %49 {offsets = [0, 128], sizes = [8, 128], strides = [1, 1]} : vector<8x384xf32> to vector<8x128xf32>
      %52 = vector.extract_strided_slice %49 {offsets = [0, 256], sizes = [8, 128], strides = [1, 1]} : vector<8x384xf32> to vector<8x128xf32>
      %53 = vector.extract_strided_slice %43 {offsets = [0, 384], sizes = [8, 128], strides = [1, 1]} : vector<8x512xf32> to vector<8x128xf32>
      %54 = math.tanh %53 : vector<8x128xf32>
      %55 = arith.mulf %51, %38 : vector<8x128xf32>
      %56 = arith.mulf %50, %54 : vector<8x128xf32>
      %57 = arith.addf %55, %56 : vector<8x128xf32>
      %58 = math.tanh %57 : vector<8x128xf32>
      %59 = arith.mulf %52, %58 : vector<8x128xf32>
      %60 = arith.index_cast %34 : i32 to index
      %c0_48 = arith.constant 0 : index
      %61 = vector.load %arg16[%60, %c0_48] : memref<64x128xf32, #tpu.memory_space<vmem>>, vector<8x128xf32>
      tpu.vector_store %arg16[%60, %c0_48], %59 {strides = array<i32>} : memref<64x128xf32, #tpu.memory_space<vmem>>, vector<8x128xf32>,
      %c0_49 = arith.constant 0 : index
      %c0_50 = arith.constant 0 : index
      %c0_51 = arith.constant 0 : index
      %62 = vector.load %arg13[%c0_49, %c0_50, %c0_51] : memref<2x8x128xf32, #tpu.memory_space<vmem>>, vector<1x8x128xf32>
      %63 = vector.shape_cast %62 : vector<1x8x128xf32> to vector<8x128xf32>
      %64 = vector.shape_cast %59 : vector<8x128xf32> to vector<1x8x128xf32>
      tpu.vector_store %arg13[%c0_49, %c0_50, %c0_51], %64 {strides = array<i32>} : memref<2x8x128xf32, #tpu.memory_space<vmem>>, vector<1x8x128xf32>,
      %c0_52 = arith.constant 0 : index
      %c0_53 = arith.constant 0 : index
      %c0_54 = arith.constant 0 : index
      %65 = vector.load %arg14[%c0_52, %c0_53, %c0_54] : memref<2x8x128xf32, #tpu.memory_space<vmem>>, vector<1x8x128xf32>
      %66 = vector.shape_cast %65 : vector<1x8x128xf32> to vector<8x128xf32>
      %67 = vector.shape_cast %57 : vector<8x128xf32> to vector<1x8x128xf32>
      tpu.vector_store %arg14[%c0_52, %c0_53, %c0_54], %67 {strides = array<i32>} : memref<2x8x128xf32, #tpu.memory_space<vmem>>, vector<1x8x128xf32>,
    }
    %c8_i32_11 = arith.constant 8 : i32
    %c0_12 = arith.constant 0 : index
    %c0_13 = arith.constant 0 : index
    %13 = vector.load %arg7[%c0_12, %c0_13] : memref<128x512xbf16, #tpu.memory_space<vmem>>, vector<128x512xbf16>
    %c0_14 = arith.constant 0 : index
    %c0_15 = arith.constant 0 : index
    %14 = vector.load %arg8[%c0_14, %c0_15] : memref<128x512xbf16, #tpu.memory_space<vmem>>, vector<128x512xbf16>
    %c0_16 = arith.constant 0 : index
    %c0_17 = arith.constant 0 : index
    %15 = vector.load %arg9[%c0_16, %c0_17] : memref<1x512xf32, #tpu.memory_space<vmem>>, vector<1x512xf32>
    %c0_18 = arith.constant 0 : index
    %c0_19 = arith.constant 0 : index
    %16 = vector.load %arg16[%c0_18, %c0_19] : memref<64x128xf32, #tpu.memory_space<vmem>>, vector<64x128xf32>
    %17 = arith.truncf %16 : vector<64x128xf32> to vector<64x128xbf16>
    %cst_20 = arith.constant dense<0.000000e+00> : vector<64x512xf32>
    %18 = tpu.matmul %17, %13, %cst_20 {dimension_numbers = #tpu.dot_dimension_numbers<[1], [0], [0], [1], [0, 0, 1, 1], [], []>} : vector<64x128xbf16>, vector<128x512xbf16>, vector<64x512xf32> -> vector<64x512xf32>
    %19 = vector.broadcast %15 : vector<1x512xf32> to vector<64x512xf32>
    %20 = arith.addf %18, %19 : vector<64x512xf32>
    %c0_21 = arith.constant 0 : index
    %c0_22 = arith.constant 0 : index
    %21 = vector.load %arg15[%c0_21, %c0_22] : memref<64x512xf32, #tpu.memory_space<vmem>>, vector<64x512xf32>
    tpu.vector_store %arg15[%c0_21, %c0_22], %20 {strides = array<i32>} : memref<64x512xf32, #tpu.memory_space<vmem>>, vector<64x512xf32>,
    %c0_i32_23 = arith.constant 0 : i32
    %c8_i32_24 = arith.constant 8 : i32
    %22 = arith.addi %c0_i32_23, %c8_i32_24 : i32
    %c1_i32_25 = arith.constant 1 : i32
    scf.for %arg17 = %c0_i32_23 to %22 step %c1_i32_25  : i32 {
      %c1_i32_36 = arith.constant 1 : i32
      %31 = arith.muli %arg17, %c1_i32_36 : i32
      %c0_i32_37 = arith.constant 0 : i32
      %32 = arith.addi %c0_i32_37, %31 : i32
      %c8_i32_38 = arith.constant 8 : i32
      %33 = arith.muli %32, %c8_i32_38 : i32
      %34 = tpu.assume_multiple %33, 8 : i32
      %c1 = arith.constant 1 : index
      %c0_39 = arith.constant 0 : index
      %c0_40 = arith.constant 0 : index
      %35 = vector.load %arg13[%c1, %c0_39, %c0_40] : memref<2x8x128xf32, #tpu.memory_space<vmem>>, vector<1x8x128xf32>
      %36 = vector.shape_cast %35 : vector<1x8x128xf32> to vector<8x128xf32>
      %c1_41 = arith.constant 1 : index
      %c0_42 = arith.constant 0 : index
      %c0_43 = arith.constant 0 : index
      %37 = vector.load %arg14[%c1_41, %c0_42, %c0_43] : memref<2x8x128xf32, #tpu.memory_space<vmem>>, vector<1x8x128xf32>
      %38 = vector.shape_cast %37 : vector<1x8x128xf32> to vector<8x128xf32>
      %39 = arith.index_cast %34 : i32 to index
      %c0_44 = arith.constant 0 : index
      %40 = vector.load %arg15[%39, %c0_44] : memref<64x512xf32, #tpu.memory_space<vmem>>, vector<8x512xf32>
      %41 = arith.truncf %36 : vector<8x128xf32> to vector<8x128xbf16>
      %cst_45 = arith.constant dense<0.000000e+00> : vector<8x512xf32>
      %42 = tpu.matmul %41, %14, %cst_45 {dimension_numbers = #tpu.dot_dimension_numbers<[1], [0], [0], [1], [0, 0, 1, 1], [], []>} : vector<8x128xbf16>, vector<128x512xbf16>, vector<8x512xf32> -> vector<8x512xf32>
      %43 = arith.addf %40, %42 : vector<8x512xf32>
      %44 = vector.extract_strided_slice %43 {offsets = [0, 0], sizes = [8, 384], strides = [1, 1]} : vector<8x512xf32> to vector<8x384xf32>
      %45 = arith.negf %44 : vector<8x384xf32>
      %46 = math.exp %45 : vector<8x384xf32>
      %cst_46 = arith.constant 1.000000e+00 : f32
      %47 = vector.broadcast %cst_46 : f32 to vector<8x384xf32>
      %48 = arith.addf %47, %46 : vector<8x384xf32>
      %49 = arith.divf %47, %48 : vector<8x384xf32>
      %50 = vector.extract_strided_slice %49 {offsets = [0, 0], sizes = [8, 128], strides = [1, 1]} : vector<8x384xf32> to vector<8x128xf32>
      %51 = vector.extract_strided_slice %49 {offsets = [0, 128], sizes = [8, 128], strides = [1, 1]} : vector<8x384xf32> to vector<8x128xf32>
      %52 = vector.extract_strided_slice %49 {offsets = [0, 256], sizes = [8, 128], strides = [1, 1]} : vector<8x384xf32> to vector<8x128xf32>
      %53 = vector.extract_strided_slice %43 {offsets = [0, 384], sizes = [8, 128], strides = [1, 1]} : vector<8x512xf32> to vector<8x128xf32>
      %54 = math.tanh %53 : vector<8x128xf32>
      %55 = arith.mulf %51, %38 : vector<8x128xf32>
      %56 = arith.mulf %50, %54 : vector<8x128xf32>
      %57 = arith.addf %55, %56 : vector<8x128xf32>
      %58 = math.tanh %57 : vector<8x128xf32>
      %59 = arith.mulf %52, %58 : vector<8x128xf32>
      %60 = arith.index_cast %34 : i32 to index
      %c0_47 = arith.constant 0 : index
      %61 = vector.load %arg16[%60, %c0_47] : memref<64x128xf32, #tpu.memory_space<vmem>>, vector<8x128xf32>
      tpu.vector_store %arg16[%60, %c0_47], %59 {strides = array<i32>} : memref<64x128xf32, #tpu.memory_space<vmem>>, vector<8x128xf32>,
      %c1_48 = arith.constant 1 : index
      %c0_49 = arith.constant 0 : index
      %c0_50 = arith.constant 0 : index
      %62 = vector.load %arg13[%c1_48, %c0_49, %c0_50] : memref<2x8x128xf32, #tpu.memory_space<vmem>>, vector<1x8x128xf32>
      %63 = vector.shape_cast %62 : vector<1x8x128xf32> to vector<8x128xf32>
      %64 = vector.shape_cast %59 : vector<8x128xf32> to vector<1x8x128xf32>
      tpu.vector_store %arg13[%c1_48, %c0_49, %c0_50], %64 {strides = array<i32>} : memref<2x8x128xf32, #tpu.memory_space<vmem>>, vector<1x8x128xf32>,
      %c1_51 = arith.constant 1 : index
      %c0_52 = arith.constant 0 : index
      %c0_53 = arith.constant 0 : index
      %65 = vector.load %arg14[%c1_51, %c0_52, %c0_53] : memref<2x8x128xf32, #tpu.memory_space<vmem>>, vector<1x8x128xf32>
      %66 = vector.shape_cast %65 : vector<1x8x128xf32> to vector<8x128xf32>
      %67 = vector.shape_cast %57 : vector<8x128xf32> to vector<1x8x128xf32>
      tpu.vector_store %arg14[%c1_51, %c0_52, %c0_53], %67 {strides = array<i32>} : memref<2x8x128xf32, #tpu.memory_space<vmem>>, vector<1x8x128xf32>,
    }
    %c8_i32_26 = arith.constant 8 : i32
    %c0_27 = arith.constant 0 : index
    %c0_28 = arith.constant 0 : index
    %23 = vector.load %arg16[%c0_27, %c0_28] : memref<64x128xf32, #tpu.memory_space<vmem>>, vector<64x128xf32>
    %24 = arith.truncf %23 : vector<64x128xf32> to vector<64x128xbf16>
    %c0_29 = arith.constant 0 : index
    %c0_30 = arith.constant 0 : index
    %25 = vector.load %arg10[%c0_29, %c0_30] : memref<128x128xbf16, #tpu.memory_space<vmem>>, vector<128x128xbf16>
    %cst_31 = arith.constant dense<0.000000e+00> : vector<64x128xf32>
    %26 = tpu.matmul %24, %25, %cst_31 {dimension_numbers = #tpu.dot_dimension_numbers<[1], [0], [0], [1], [0, 0, 1, 1], [], []>} : vector<64x128xbf16>, vector<128x128xbf16>, vector<64x128xf32> -> vector<64x128xf32>
    %c0_32 = arith.constant 0 : index
    %c0_33 = arith.constant 0 : index
    %27 = vector.load %arg11[%c0_32, %c0_33] : memref<1x128xf32, #tpu.memory_space<vmem>>, vector<1x128xf32>
    %28 = vector.broadcast %27 : vector<1x128xf32> to vector<64x128xf32>
    %29 = arith.addf %26, %28 : vector<64x128xf32>
    %c0_34 = arith.constant 0 : index
    %c0_35 = arith.constant 0 : index
    %30 = vector.load %arg12[%c0_34, %c0_35] : memref<64x128xf32, #tpu.memory_space<vmem>>, vector<64x128xf32>
    tpu.vector_store %arg12[%c0_34, %c0_35], %29 {strides = array<i32>} : memref<64x128xf32, #tpu.memory_space<vmem>>, vector<64x128xf32>,
    return
  }
  func.func @transform_0(%arg0: i32) -> (i32, i32) {
    %c0_i32 = arith.constant 0 : i32
    %c0_i32_0 = arith.constant 0 : i32
    return %arg0, %c0_i32 : i32, i32
  }
  func.func @transform_1(%arg0: i32) -> (i32, i32, i32) {
    %c0_i32 = arith.constant 0 : i32
    %c0_i32_0 = arith.constant 0 : i32
    %c0_i32_1 = arith.constant 0 : i32
    %c0_i32_2 = arith.constant 0 : i32
    return %c0_i32, %c0_i32_0, %c0_i32_1 : i32, i32, i32
  }
  func.func @transform_2(%arg0: i32) -> (i32, i32, i32) {
    %c0_i32 = arith.constant 0 : i32
    %c0_i32_0 = arith.constant 0 : i32
    %c0_i32_1 = arith.constant 0 : i32
    %c0_i32_2 = arith.constant 0 : i32
    return %c0_i32, %c0_i32_0, %c0_i32_1 : i32, i32, i32
  }
  func.func @transform_3(%arg0: i32) -> (i32, i32) {
    %c0_i32 = arith.constant 0 : i32
    %c0_i32_0 = arith.constant 0 : i32
    %c0_i32_1 = arith.constant 0 : i32
    return %c0_i32, %c0_i32_0 : i32, i32
  }
  func.func @transform_4(%arg0: i32) -> (i32, i32) {
    %c0_i32 = arith.constant 0 : i32
    %c0_i32_0 = arith.constant 0 : i32
    %c0_i32_1 = arith.constant 0 : i32
    return %c0_i32, %c0_i32_0 : i32, i32
  }
  func.func @transform_5(%arg0: i32) -> (i32, i32) {
    %c0_i32 = arith.constant 0 : i32
    %c0_i32_0 = arith.constant 0 : i32
    %c0_i32_1 = arith.constant 0 : i32
    return %c0_i32, %c0_i32_0 : i32, i32
  }
  func.func @transform_6(%arg0: i32) -> (i32, i32) {
    %c0_i32 = arith.constant 0 : i32
    %c0_i32_0 = arith.constant 0 : i32
    %c0_i32_1 = arith.constant 0 : i32
    return %c0_i32, %c0_i32_0 : i32, i32
  }
  func.func @transform_7(%arg0: i32) -> (i32, i32) {
    %c0_i32 = arith.constant 0 : i32
    %c0_i32_0 = arith.constant 0 : i32
    %c0_i32_1 = arith.constant 0 : i32
    return %c0_i32, %c0_i32_0 : i32, i32
  }
  func.func @transform_8(%arg0: i32) -> (i32, i32) {
    %c0_i32 = arith.constant 0 : i32
    %c0_i32_0 = arith.constant 0 : i32
    %c0_i32_1 = arith.constant 0 : i32
    return %c0_i32, %c0_i32_0 : i32, i32
  }
  func.func @transform_9(%arg0: i32) -> (i32, i32) {
    %c0_i32 = arith.constant 0 : i32
    %c0_i32_0 = arith.constant 0 : i32
    %c0_i32_1 = arith.constant 0 : i32
    return %c0_i32, %c0_i32_0 : i32, i32
  }
  func.func @transform_10(%arg0: i32) -> (i32, i32) {
    %c0_i32 = arith.constant 0 : i32
    %c0_i32_0 = arith.constant 0 : i32
    %c0_i32_1 = arith.constant 0 : i32
    return %c0_i32, %c0_i32_0 : i32, i32
  }
  func.func @transform_11(%arg0: i32) -> (i32, i32) {
    %c0_i32 = arith.constant 0 : i32
    %c0_i32_0 = arith.constant 0 : i32
    return %arg0, %c0_i32 : i32, i32
  }
  func.func @transform_12(%arg0: i32) -> (i32, i32, i32) {
    %c0_i32 = arith.constant 0 : i32
    %c0_i32_0 = arith.constant 0 : i32
    %c0_i32_1 = arith.constant 0 : i32
    %c0_i32_2 = arith.constant 0 : i32
    return %c0_i32, %c0_i32_0, %c0_i32_1 : i32, i32, i32
  }
  func.func @transform_13(%arg0: i32) -> (i32, i32, i32) {
    %c0_i32 = arith.constant 0 : i32
    %c0_i32_0 = arith.constant 0 : i32
    %c0_i32_1 = arith.constant 0 : i32
    %c0_i32_2 = arith.constant 0 : i32
    return %c0_i32, %c0_i32_0, %c0_i32_1 : i32, i32, i32
  }
}

</mosaic_0001>

<bundles_post_ra>
// kernel: tpu_custom_call.1
= control target key start
LH: loop header
LB: loop body
LE: loop exit
PB: predicated region body
PF: predicated region fallthrough
CT: control target
= control target key end

     0   :  { %19 = vsyncpa [#allocation5], 0  ;;  %s2891_s0 = inlined_call_operand.vmem [shape: f32[64,16], index: 0, kind: input, shape index: {}]   ;;  %s2892_s1 = inlined_call_operand.vmem [shape: f32[2,8,128], index: 1, kind: input, shape index: {}]   ;;  %s2893_s2 = inlined_call_operand.hbm [shape: f32[2,8,128], index: 2, kind: input, shape index: {}]   ;;  %s2894_s3 = inlined_call_operand.vmem [shape: bf16[16,512], index: 3, kind: input, shape index: {}]   ;;  %s2895_s4 = inlined_call_operand.hbm [shape: bf16[128,512], index: 4, kind: input, shape index: {}]   ;;  %s2896_s5 = inlined_call_operand.hbm [shape: f32[1,512], index: 5, kind: input, shape index: {}]   ;;  %s2897_s6 = inlined_call_operand.hbm [shape: bf16[128,512], index: 6, kind: input, shape index: {}]   ;;  %s2898_s7 = inlined_call_operand.hbm [shape: bf16[128,512], index: 7, kind: input, shape index: {}]   ;;  %s2899_s8 = inlined_call_operand.hbm [shape: f32[1,512], index: 8, kind: input, shape index: {}]   ;;  %s2900_s9 = inlined_call_operand.vmem [shape: bf16[128,128], index: 9, kind: input, shape index: {}]   ;;  %s2901_s10 = inlined_call_operand.vmem [shape: f32[1,128], index: 10, kind: input, shape index: {}]   ;;  %s2902_s11 = inlined_call_operand.hbm [shape: f32[64,128], index: 11, kind: output, shape index: {0}]   ;;  %s2903_s12 = inlined_call_operand.hbm [shape: f32[2,8,128], index: 12, kind: output, shape index: {1}]   ;;  %s2904_s13 = inlined_call_operand.hbm [shape: f32[2,8,128], index: 13, kind: output, shape index: {2}]  }
   0x1   :  { %20 = vsyncpa [#allocation8], 0 }
   0x2   :  { %21 = vsyncpa [#allocation11], 0 }
   0x3   :  { %22 = vsyncpa [#allocation14], 0 }
   0x4   :  { %23 = vsyncpa [#allocation6], 0 }
   0x5   :  { %24 = vsyncpa [#allocation17], 0  ;;  %s2199_s25 = smov [#allocation7]   ;;  %s1973_s29 = scalar_lea.hbm %s2895_s4, 4096 }
   0x6   :  { %s48_s26 = sshll.u32 %s2199_s25, 4  ;;  %p1974_p0 = scmp.ne.s32.totalorder %s2895_s4, %s1973_s29  ;;  %s49_s26 = int_to_ptr.vmem [resolvable:$true] %s48_s26 }
   0x7   :  { %p1977_p1 = scmp.lt.u32.totalorder %s1973_s29, %s2895_s4 }
   0x9   :  { %p1979_p2 = pnand %p1977_p1, %p1974_p0 }
   0xb   :  { %1982 = shalt.err (!%p1979_p2)
}
   0xc   :  { %s1983_s17 = scalar_lea.vmem %s49_s26, 4096  ;;  %p1988_p4 = scmp.lt.s32.totalorder %s49_s26, %s49_s26 }
   0xd   :  { %p1984_p3 = scmp.ne.s32.totalorder %s49_s26, %s1983_s17  ;;  %p1989_p5 = scmp.lt.s32.totalorder %s1983_s17, %s1983_s17 }
   0xf   :  { %p1990_p6 = por %p1989_p5, %p1988_p4 }
  0x11   :  { %p1991_p7 = pnand %p1990_p6, %p1984_p3 }
  0x13   :  { %1994 = shalt.err (!%p1991_p7)
}
  0x14   :  { %s2200_s18 = smov 256   ;;  %s2201_s19 = smov 16  }
  0x15   :  { %54 = dma.hbm_to_vmem [thread:$0]  %s2895_s4, 4096, %s49_s26, [#allocation8], %s2200_s18, %s2200_s18, %s2201_s19  }
  0x16   :  { %s2202_s22 = smov [#allocation10]   ;;  %s2203_s24 = smov [#allocation4]  }
  0x17   :  { %s70_s23 = sshll.u32 %s2202_s22, 4  ;;  %s34_s25 = sshll.u32 %s2203_s24, 4  ;;  %s71_s23 = int_to_ptr.vmem [resolvable:$true] %s70_s23  ;;  %s35_s25 = int_to_ptr.vmem [resolvable:$true] %s34_s25 }
  0x18   :  { %s1995_s29 = scalar_lea.hbm %s2897_s6, 4096 }
  0x19   :  { %p1996_p8 = scmp.ne.s32.totalorder %s2897_s6, %s1995_s29  ;;  %p1999_p9 = scmp.lt.u32.totalorder %s1995_s29, %s2897_s6 }
  0x1b   :  { %p2001_p10 = pnand %p1999_p9, %p1996_p8 }
  0x1d   :  { %2004 = shalt.err (!%p2001_p10)
}
  0x1e   :  { %s2005_s4 = scalar_lea.vmem %s71_s23, 4096  ;;  %p2010_p12 = scmp.lt.s32.totalorder %s71_s23, %s71_s23 }
  0x1f   :  { %p2006_p11 = scmp.ne.s32.totalorder %s71_s23, %s2005_s4  ;;  %p2011_p13 = scmp.lt.s32.totalorder %s2005_s4, %s2005_s4 }
  0x21   :  { %p2012_p0 = por %p2011_p13, %p2010_p12 }
  0x23   :  { %p2013_p1 = pnand %p2012_p0, %p2006_p11 }
  0x25   :  { %2016 = shalt.err (!%p2013_p1)
}
  0x26   :  { %76 = dma.hbm_to_vmem [thread:$0]  %s2897_s6, 4096, %s71_s23, [#allocation11], %s2200_s18, %s2200_s18, %s2201_s19  }
  0x27   :  { %s2017_s22 = scalar_lea.hbm %s2893_s2, 256 }
  0x28   :  { %p2018_p2 = scmp.ne.s32.totalorder %s2893_s2, %s2017_s22  ;;  %p2021_p3 = scmp.lt.u32.totalorder %s2017_s22, %s2893_s2 }
  0x2a   :  { %p2023_p4 = pnand %p2021_p3, %p2018_p2 }
  0x2c   :  { %2026 = shalt.err (!%p2023_p4)
}
  0x2d   :  { %s2027_s30 = scalar_lea.vmem %s35_s25, 256  ;;  %p2032_p6 = scmp.lt.s32.totalorder %s35_s25, %s35_s25 }
  0x2e   :  { %p2028_p5 = scmp.ne.s32.totalorder %s35_s25, %s2027_s30  ;;  %p2033_p7 = scmp.lt.s32.totalorder %s2027_s30, %s2027_s30 }
  0x30   :  { %p2034_p8 = por %p2033_p7, %p2032_p6 }
  0x32   :  { %p2035_p9 = pnand %p2034_p8, %p2028_p5 }
  0x34   :  { %2038 = shalt.err (!%p2035_p9)
}
  0x35   :  { %s2204_s6 = smov 128   ;;  %s2205_s23 = smov 8  }
  0x36   :  { %40 = dma.hbm_to_vmem [thread:$0]  %s2893_s2, 256, %s35_s25, [#allocation5], %s2204_s6, %s2204_s6, %s2205_s23  }
  0x37   :  { %s2206_s16 = smov [#allocation9]   ;;  %s2207_s26 = smov [#allocation12]  }
  0x38   :  { %s61_s4 = sshll.u32 %s2206_s16, 4  ;;  %s82_s17 = sshll.u32 %s2207_s26, 4  ;;  %s62_s4 = int_to_ptr.vmem [resolvable:$true] %s61_s4  ;;  %s83_s17 = int_to_ptr.vmem [resolvable:$true] %s82_s17 }
  0x39   :  { %s2039_s22 = scalar_lea.hbm %s2896_s5, 64 }
  0x3a   :  { %p2040_p10 = scmp.ne.s32.totalorder %s2896_s5, %s2039_s22  ;;  %p2043_p11 = scmp.lt.u32.totalorder %s2039_s22, %s2896_s5 }
  0x3c   :  { %p2045_p12 = pnand %p2043_p11, %p2040_p10 }
  0x3e   :  { %2048 = shalt.err (!%p2045_p12)
}
  0x3f   :  { %s2049_s2 = scalar_lea.vmem %s62_s4, 64  ;;  %p2054_p0 = scmp.lt.s32.totalorder %s62_s4, %s62_s4 }
  0x40   :  { %p2050_p13 = scmp.ne.s32.totalorder %s62_s4, %s2049_s2  ;;  %p2055_p1 = scmp.lt.s32.totalorder %s2049_s2, %s2049_s2 }
  0x42   :  { %p2056_p2 = por %p2055_p1, %p2054_p0 }
  0x44   :  { %p2057_p3 = pnand %p2056_p2, %p2050_p13 }
  0x46   :  { %2060 = shalt.err (!%p2057_p3)
}
  0x47   :  { %64 = dma.hbm_to_vmem [thread:$0]  %s2896_s5, 64, %s62_s4, [#allocation8]  }
  0x48   :  { %s2061_s16 = scalar_lea.hbm %s2898_s7, 4096 }
  0x49   :  { %p2062_p4 = scmp.ne.s32.totalorder %s2898_s7, %s2061_s16  ;;  %p2065_p5 = scmp.lt.u32.totalorder %s2061_s16, %s2898_s7 }
  0x4b   :  { %p2067_p6 = pnand %p2065_p5, %p2062_p4 }
  0x4d   :  { %2070 = shalt.err (!%p2067_p6)
}
  0x4e   :  { %s2071_s24 = scalar_lea.vmem %s83_s17, 4096  ;;  %p2076_p8 = scmp.lt.s32.totalorder %s83_s17, %s83_s17 }
  0x4f   :  { %p2072_p7 = scmp.ne.s32.totalorder %s83_s17, %s2071_s24  ;;  %p2077_p9 = scmp.lt.s32.totalorder %s2071_s24, %s2071_s24 }
  0x51   :  { %p2078_p10 = por %p2077_p9, %p2076_p8 }
  0x53   :  { %p2079_p11 = pnand %p2078_p10, %p2072_p7 }
  0x55   :  { %2082 = shalt.err (!%p2079_p11)
}
  0x56   :  { %88 = dma.hbm_to_vmem [thread:$0]  %s2898_s7, 4096, %s83_s17, [#allocation11], %s2200_s18, %s2200_s18, %s2201_s19  }
  0x57   :  { %s2208_s27 = smov [#allocation13]   ;;  %s2083_s25 = scalar_lea.hbm %s2899_s8, 64 }
  0x58   :  { %s95_s28 = sshll.u32 %s2208_s27, 4  ;;  %p2084_p12 = scmp.ne.s32.totalorder %s2899_s8, %s2083_s25  ;;  %s96_s28 = int_to_ptr.vmem [resolvable:$true] %s95_s28 }
  0x59   :  { %p2087_p13 = scmp.lt.u32.totalorder %s2083_s25, %s2899_s8 }
  0x5b   :  { %p2089_p0 = pnand %p2087_p13, %p2084_p12 }
  0x5d   :  { %2092 = shalt.err (!%p2089_p0)
}
  0x5e   :  { %s2093_s26 = scalar_lea.vmem %s96_s28, 64  ;;  %p2098_p2 = scmp.lt.s32.totalorder %s96_s28, %s96_s28 }
  0x5f   :  { %p2094_p1 = scmp.ne.s32.totalorder %s96_s28, %s2093_s26  ;;  %p2099_p3 = scmp.lt.s32.totalorder %s2093_s26, %s2093_s26 }
  0x61   :  { %p2100_p4 = por %p2099_p3, %p2098_p2 }
  0x63   :  { %p2101_p5 = pnand %p2100_p4, %p2094_p1 }
  0x65   :  { %2104 = shalt.err (!%p2101_p5)
}
  0x66   :  { %98 = dma.hbm_to_vmem [thread:$0]  %s2899_s8, 64, %s96_s28, [#allocation14]  }
  0x67   :  { %2179 = dma.done.wait [#allocation5], 256  }
  0x68   :  { %2180 = vsyncadd [#allocation5], 4294967040 }
  0x69   :  { %2181 = dma.done.wait [#allocation8], 4160  }
  0x6a   :  { %2182 = vsyncadd [#allocation8], 4294963136 }
  0x6b   :  { %2183 = dma.done.wait [#allocation11], 8192  }
  0x6c   :  { %2184 = vsyncadd [#allocation11], 4294959104 }
  0x6d   :  { %2185 = dma.done.wait [#allocation14], 64  }
  0x6e   :  { %2186 = vsyncadd [#allocation14], 4294967232  ;;  %v2209_v0 = vmov 0   ;;  %v126_v1 = vld [vmem:[%s2892_s1] sm:$0xff]  ;;  %v127_v2 = vld [vmem:[%s2892_s1 + $0x8] sm:$0xff]  ;;  %vm224_vm0 = vcmask 130048   ;;  %v184_v53 = vlaneseq }
  0x6f   :  { %269 = vmatprep.mubr.bf16.mxu0 %v2209_v0  ;;  %342 = vmatprep.mubr.bf16.mxu1 %v2209_v0  ;;  %v130_v3 = vld [vmem:[#allocation4] sm:$0xff]  ;;  %128 = vst [vmem:[#allocation16] sm:$0xff] %v126_v1  ;;  %129 = vst [vmem:[#allocation16 + $0x8] sm:$0xff] %v127_v2  ;;  %v131_v4 = vld [vmem:[#allocation4 + $0x8] sm:$0xff] }
  0x70   :  { %132 = vst [vmem:[#allocation18] sm:$0xff] %v130_v3  ;;  %v2377_v5 = vld [vmem:[#allocation7] sm:$0xff]  ;;  %v2379_v6 = vld [vmem:[#allocation7 + $0x8] sm:$0xff]  ;;  %133 = vst [vmem:[#allocation18 + $0x8] sm:$0xff] %v131_v4  ;;  %v2491_v54 = vshrl.u32 %v184_v53, 7 }
  0x71   :  { %v2381_v7 = vld [vmem:[#allocation7 + $0x10] sm:$0xff]  ;;  %v2383_v8 = vld [vmem:[#allocation7 + $0x18] sm:$0xff]  ;;  %v2385_v9 = vld [vmem:[#allocation7 + $0x20] sm:$0xff] }
  0x72   :  { %v2387_v10 = vld [vmem:[#allocation7 + $0x28] sm:$0xff]  ;;  %v2389_v11 = vld [vmem:[#allocation7 + $0x30] sm:$0xff]  ;;  %v2391_v12 = vld [vmem:[#allocation7 + $0x38] sm:$0xff]  ;;  %v186_v55 = vsub.s32 0, %v2491_v54  ;;  %v194_v56 = vsub.s32 2, %v2491_v54  ;;  %v190_v58 = vsub.s32 1, %v2491_v54 }
  0x73   :  { %v2393_v13 = vld [vmem:[#allocation7 + $0x40] sm:$0xff]  ;;  %v2395_v14 = vld [vmem:[#allocation7 + $0x48] sm:$0xff]  ;;  %v2397_v15 = vld [vmem:[#allocation7 + $0x50] sm:$0xff]  ;;  %v198_v59 = vsub.s32 3, %v2491_v54 }
  0x74   :  { %v2399_v16 = vld [vmem:[#allocation7 + $0x58] sm:$0xff]  ;;  %v2401_v17 = vld [vmem:[#allocation7 + $0x60] sm:$0xff]  ;;  %v2403_v18 = vld [vmem:[#allocation7 + $0x68] sm:$0xff] }
  0x75   :  { %v2405_v19 = vld [vmem:[#allocation7 + $0x70] sm:$0xff]  ;;  %v2407_v20 = vld [vmem:[#allocation7 + $0x78] sm:$0xff]  ;;  %v2409_v21 = vld [vmem:[#allocation7 + $0x80] sm:$0xff] }
  0x76   :  { %v2411_v22 = vld [vmem:[#allocation7 + $0x88] sm:$0xff]  ;;  %v2413_v23 = vld [vmem:[#allocation7 + $0x90] sm:$0xff]  ;;  %v2415_v24 = vld [vmem:[#allocation7 + $0x98] sm:$0xff] }
  0x77   :  { %v2417_v25 = vld [vmem:[#allocation7 + $0xa0] sm:$0xff]  ;;  %v2419_v26 = vld [vmem:[#allocation7 + $0xa8] sm:$0xff]  ;;  %v2421_v27 = vld [vmem:[#allocation7 + $0xb0] sm:$0xff] }
  0x78   :  { %v2423_v28 = vld [vmem:[#allocation7 + $0xb8] sm:$0xff]  ;;  %v2425_v29 = vld [vmem:[#allocation7 + $0xc0] sm:$0xff]  ;;  %v2427_v30 = vld [vmem:[#allocation7 + $0xc8] sm:$0xff] }
  0x79   :  { %v2429_v31 = vld [vmem:[#allocation7 + $0xd0] sm:$0xff]  ;;  %v2431_v32 = vld [vmem:[#allocation7 + $0xd8] sm:$0xff]  ;;  %v2433_v33 = vld [vmem:[#allocation7 + $0xe0] sm:$0xff] }
  0x7a   :  { %v2435_v34 = vld [vmem:[#allocation7 + $0xe8] sm:$0xff]  ;;  %v2437_v35 = vld [vmem:[#allocation7 + $0xf0] sm:$0xff]  ;;  %v2439_v36 = vld [vmem:[#allocation7 + $0xf8] sm:$0xff] }
  0x7b   :  { %v1879_v37 = vld [vmem:[%s2894_s3 + $0x4] ss:$16 sps:$4 sm:$0xff]   ;;  %v1881_v38 = vld [vmem:[%s2894_s3 + $0xc] ss:$16 sps:$4 sm:$0xff]   ;;  %v1883_v39 = vld [vmem:[%s2894_s3] ss:$16 sps:$4 sm:$0xff]  }
  0x7c   :  { %237 = vmatprep.subr.bf16.mxu0 %v1879_v37  ;;  %v1884_v40 = vld [vmem:[%s2894_s3 + $0x8] ss:$16 sps:$4 sm:$0xff]   ;;  %v171_v41 = vld [vmem:[%s2891_s0] sm:$0xff]  ;;  %310 = vmatprep.subr.bf16.mxu1 %v1881_v38  ;;  %v173_v44 = vld [vmem:[%s2891_s0 + $0x10] sm:$0xff] }
  0x7d   :  { %v172_v42 = vld [vmem:[%s2891_s0 + $0x8] sm:$0xff]  ;;  %238 = vmatpush1.bf16.msra.mxu0 %v1883_v39  ;;  %311 = vmatpush1.bf16.msra.mxu1 %v1884_v40  ;;  %v174_v45 = vld [vmem:[%s2891_s0 + $0x18] sm:$0xff]  ;;  %v175_v47 = vld [vmem:[%s2891_s0 + $0x20] sm:$0xff] }
  0x7e   :  { %v179_v43 = vpack.c.bf16 %v172_v42, %v171_v41  ;;  %v180_v46 = vpack.c.bf16 %v174_v45, %v173_v44  ;;  %v176_v48 = vld [vmem:[%s2891_s0 + $0x28] sm:$0xff]  ;;  %v177_v50 = vld [vmem:[%s2891_s0 + $0x30] sm:$0xff]  ;;  %v178_v51 = vld [vmem:[%s2891_s0 + $0x38] sm:$0xff]  ;;  %s2545_s0 = smov 0  }
  0x7f   :  { %v181_v49 = vpack.c.bf16 %v176_v48, %v175_v47  ;;  %v182_v52 = vpack.c.bf16 %v178_v51, %v177_v50  ;;  %v170_v57 = vld [vmem:[#allocation9] sm:$0xf] }
  0x80   :  { %1668 = vmatmul.mubr.msk.bf16.vlgmr.msra.gmra.mrb[0].mxu0 %vm224_vm0, %v179_v43  ;;  %1672 = vmatmul.mubr.msk.bf16.vlgmr.msra.gmra.mrb[0].mxu1 %vm224_vm0, %v179_v43  ;;  %v2499_v60 = vrot.slane %v170_v57, %v186_v55  ;;  %v2503_v61 = vrot.slane %v170_v57, %v194_v56  ;;  %v2507_v62 = vrot.slane %v170_v57, %v190_v58 }
  0x81   :  { %279 = vmatprep.mubr.bf16.mxu0 %v2209_v0  ;;  %352 = vmatprep.mubr.bf16.mxu1 %v2209_v0  ;;  %v2511_v63 = vrot.slane %v170_v57, %v198_v59 }
  0x88   :  { %1669 = vmatmul.mubr.msk.bf16.gmra.mrb[4].mxu0 %vm224_vm0, %v180_v46  ;;  %1673 = vmatmul.mubr.msk.bf16.gmra.mrb[4].mxu1 %vm224_vm0, %v180_v46 }
  0x89   :  { %289 = vmatprep.mubr.bf16.mxu0 %v2209_v0  ;;  %362 = vmatprep.mubr.bf16.mxu1 %v2209_v0 }
  0x90   :  { %1670 = vmatmul.mubr.msk.bf16.gmra.mrb[8].mxu0 %vm224_vm0, %v181_v49  ;;  %1674 = vmatmul.mubr.msk.bf16.gmra.mrb[8].mxu1 %vm224_vm0, %v181_v49 }
  0x91   :  { %299 = vmatprep.mubr.bf16.mxu0 %v2209_v0  ;;  %372 = vmatprep.mubr.bf16.mxu1 %v2209_v0 }
  0x98   :  { %1671 = vmatmul.mubr.msk.bf16.gmra.mrb[12].mxu0 %vm224_vm0, %v182_v52  ;;  %1675 = vmatmul.mubr.msk.bf16.gmra.mrb[12].mxu1 %vm224_vm0, %v182_v52 }
 0x153   :  { %v271_v1 = vpop.f32.mrb[0].mxu0  ;;  %v344_v2 = vpop.f32.mrb[0].mxu1 }
 0x154   :  { %v272_v3 = vadd.f32 %v271_v1, %v2499_v60  ;;  %v345_v4 = vadd.f32 %v344_v2, %v2503_v61  ;;  %v273_v37 = vpop.f32.mrb[1].mxu0  ;;  %v346_v38 = vpop.f32.mrb[1].mxu1 }
 0x155   :  { %v274_v39 = vadd.f32 %v273_v37, %v2507_v62  ;;  %v347_v40 = vadd.f32 %v346_v38, %v2511_v63  ;;  %v275_v41 = vpop.f32.mrb[2].mxu0  ;;  %v348_v42 = vpop.f32.mrb[2].mxu1 }
 0x156   :  { %383 = vst [vmem:[#allocation2] sm:$0xff] %v272_v3  ;;  %385 = vst [vmem:[#allocation2 + $0x10] sm:$0xff] %v345_v4  ;;  %v276_v43 = vadd.f32 %v275_v41, %v2499_v60  ;;  %v349_v44 = vadd.f32 %v348_v42, %v2503_v61  ;;  %v277_v45 = vpop.f32.mrb[3].mxu0  ;;  %v350_v46 = vpop.f32.mrb[3].mxu1 }
 0x157   :  { %384 = vst [vmem:[#allocation2 + $0x8] sm:$0xff] %v274_v39  ;;  %386 = vst [vmem:[#allocation2 + $0x18] sm:$0xff] %v347_v40  ;;  %v278_v47 = vadd.f32 %v277_v45, %v2507_v62  ;;  %v351_v48 = vadd.f32 %v350_v46, %v2511_v63 }
 0x158   :  { %387 = vst [vmem:[#allocation2 + $0x20] sm:$0xff] %v276_v43  ;;  %389 = vst [vmem:[#allocation2 + $0x30] sm:$0xff] %v349_v44 }
 0x159   :  { %388 = vst [vmem:[#allocation2 + $0x28] sm:$0xff] %v278_v47  ;;  %390 = vst [vmem:[#allocation2 + $0x38] sm:$0xff] %v351_v48 }
 0x15b   :  { %v281_v49 = vpop.f32.mrb[4].mxu0  ;;  %v354_v50 = vpop.f32.mrb[4].mxu1 }
 0x15c   :  { %v282_v51 = vadd.f32 %v281_v49, %v2499_v60  ;;  %v355_v52 = vadd.f32 %v354_v50, %v2503_v61  ;;  %v283_v53 = vpop.f32.mrb[5].mxu0  ;;  %v356_v57 = vpop.f32.mrb[5].mxu1 }
 0x15d   :  { %v284_v1 = vadd.f32 %v283_v53, %v2507_v62  ;;  %v357_v2 = vadd.f32 %v356_v57, %v2511_v63  ;;  %v285_v3 = vpop.f32.mrb[6].mxu0  ;;  %v358_v4 = vpop.f32.mrb[6].mxu1 }
 0x15e   :  { %391 = vst [vmem:[#allocation2 + $0x40] sm:$0xff] %v282_v51  ;;  %393 = vst [vmem:[#allocation2 + $0x50] sm:$0xff] %v355_v52  ;;  %v286_v37 = vadd.f32 %v285_v3, %v2499_v60  ;;  %v359_v38 = vadd.f32 %v358_v4, %v2503_v61  ;;  %v287_v39 = vpop.f32.mrb[7].mxu0  ;;  %v360_v40 = vpop.f32.mrb[7].mxu1 }
 0x15f   :  { %392 = vst [vmem:[#allocation2 + $0x48] sm:$0xff] %v284_v1  ;;  %394 = vst [vmem:[#allocation2 + $0x58] sm:$0xff] %v357_v2  ;;  %v288_v41 = vadd.f32 %v287_v39, %v2507_v62  ;;  %v361_v42 = vadd.f32 %v360_v40, %v2511_v63 }
 0x160   :  { %395 = vst [vmem:[#allocation2 + $0x60] sm:$0xff] %v286_v37  ;;  %397 = vst [vmem:[#allocation2 + $0x70] sm:$0xff] %v359_v38 }
 0x161   :  { %396 = vst [vmem:[#allocation2 + $0x68] sm:$0xff] %v288_v41  ;;  %398 = vst [vmem:[#allocation2 + $0x78] sm:$0xff] %v361_v42 }
 0x163   :  { %v291_v43 = vpop.f32.mrb[8].mxu0  ;;  %v364_v44 = vpop.f32.mrb[8].mxu1 }
 0x164   :  { %v292_v45 = vadd.f32 %v291_v43, %v2499_v60  ;;  %v365_v46 = vadd.f32 %v364_v44, %v2503_v61  ;;  %v293_v47 = vpop.f32.mrb[9].mxu0  ;;  %v366_v48 = vpop.f32.mrb[9].mxu1 }
 0x165   :  { %v294_v49 = vadd.f32 %v293_v47, %v2507_v62  ;;  %v367_v50 = vadd.f32 %v366_v48, %v2511_v63  ;;  %v295_v51 = vpop.f32.mrb[10].mxu0  ;;  %v368_v52 = vpop.f32.mrb[10].mxu1 }
 0x166   :  { %399 = vst [vmem:[#allocation2 + $0x80] sm:$0xff] %v292_v45  ;;  %401 = vst [vmem:[#allocation2 + $0x90] sm:$0xff] %v365_v46  ;;  %v296_v53 = vadd.f32 %v295_v51, %v2499_v60  ;;  %v369_v57 = vadd.f32 %v368_v52, %v2503_v61  ;;  %v297_v1 = vpop.f32.mrb[11].mxu0  ;;  %v370_v2 = vpop.f32.mrb[11].mxu1 }
 0x167   :  { %400 = vst [vmem:[#allocation2 + $0x88] sm:$0xff] %v294_v49  ;;  %402 = vst [vmem:[#allocation2 + $0x98] sm:$0xff] %v367_v50  ;;  %v298_v3 = vadd.f32 %v297_v1, %v2507_v62  ;;  %v371_v4 = vadd.f32 %v370_v2, %v2511_v63 }
 0x168   :  { %403 = vst [vmem:[#allocation2 + $0xa0] sm:$0xff] %v296_v53  ;;  %405 = vst [vmem:[#allocation2 + $0xb0] sm:$0xff] %v369_v57 }
 0x169   :  { %404 = vst [vmem:[#allocation2 + $0xa8] sm:$0xff] %v298_v3  ;;  %406 = vst [vmem:[#allocation2 + $0xb8] sm:$0xff] %v371_v4 }
 0x16b   :  { %v301_v37 = vpop.f32.mrb[12].mxu0  ;;  %v374_v38 = vpop.f32.mrb[12].mxu1 }
 0x16c   :  { %v302_v39 = vadd.f32 %v301_v37, %v2499_v60  ;;  %v375_v40 = vadd.f32 %v374_v38, %v2503_v61  ;;  %v303_v41 = vpop.f32.mrb[13].mxu0  ;;  %v376_v42 = vpop.f32.mrb[13].mxu1 }
 0x16d   :  { %v304_v43 = vadd.f32 %v303_v41, %v2507_v62  ;;  %v377_v44 = vadd.f32 %v376_v42, %v2511_v63  ;;  %v305_v45 = vpop.f32.mrb[14].mxu0  ;;  %v378_v46 = vpop.f32.mrb[14].mxu1 }
 0x16e   :  { %407 = vst [vmem:[#allocation2 + $0xc0] sm:$0xff] %v302_v39  ;;  %409 = vst [vmem:[#allocation2 + $0xd0] sm:$0xff] %v375_v40  ;;  %v306_v47 = vadd.f32 %v305_v45, %v2499_v60  ;;  %v379_v48 = vadd.f32 %v378_v46, %v2503_v61  ;;  %v307_v49 = vpop.f32.mrb[15].mxu0  ;;  %v380_v50 = vpop.f32.mrb[15].mxu1 }
 0x16f   :  { %408 = vst [vmem:[#allocation2 + $0xc8] sm:$0xff] %v304_v43  ;;  %410 = vst [vmem:[#allocation2 + $0xd8] sm:$0xff] %v377_v44  ;;  %v308_v51 = vadd.f32 %v307_v49, %v2507_v62  ;;  %v381_v52 = vadd.f32 %v380_v50, %v2511_v63 }
 0x170   :  { %411 = vst [vmem:[#allocation2 + $0xe0] sm:$0xff] %v306_v47  ;;  %413 = vst [vmem:[#allocation2 + $0xf0] sm:$0xff] %v379_v48 }
 0x171   :  { %412 = vst [vmem:[#allocation2 + $0xe8] sm:$0xff] %v308_v51  ;;  %414 = vst [vmem:[#allocation2 + $0xf8] sm:$0xff] %v381_v52 }
 0x172 LB: > { %v1680_v60 = vcombine.high %v2377_v5, %v2381_v7  ;;  %v1679_v61 = vcombine.low %v2377_v5, %v2381_v7  ;;  %v1684_v62 = vcombine.high %v2385_v9, %v2389_v11  ;;  %v1682_v63 = vcombine.high %v2379_v6, %v2383_v8  ;;  %s1676_s8 = sshll.u32 %s2193_s0, 3  ;;  %s420_s0 = sadd.s32 1, %s2193_s0   ;;  %s2193_s0 = sphi %s2545_s0, %s420_s0  }
 0x173   : > { %v1681_v53 = vcombine.low %v2379_v6, %v2383_v8  ;;  %v1686_v57 = vcombine.high %v2387_v10, %v2391_v12  ;;  %v1683_v1 = vcombine.low %v2385_v9, %v2389_v11  ;;  %v1688_v2 = vcombine.high %v2393_v13, %v2397_v15  ;;  %s424_s22 = sshra.s32 %s1676_s8, 3  ;;  %s704_s4 = scalar_lea.vmem [#allocation3], %s1676_s8 }
 0x174   : > { %594 = vmatprep.subr.bf16.mxu0 %v1680_v60  ;;  %635 = vmatprep.subr.bf16.mxu1 %v1682_v63  ;;  %v1685_v3 = vcombine.low %v2387_v10, %v2391_v12  ;;  %v1690_v4 = vcombine.high %v2395_v14, %v2399_v16  ;;  %v2210_v37 = vmov 0   ;;  %v1687_v38 = vcombine.low %v2393_v13, %v2397_v15  ;;  %s1793_s24 = sshll.u32 %s424_s22, 5  ;;  %p417_p6 = scmp.ge.s32.totalorder %s420_s0, 8  }
 0x175   : > { %595 = vmatpush1.bf16.msra.mxu0 %v1679_v61  ;;  %636 = vmatpush1.bf16.msra.mxu1 %v1681_v53  ;;  %v1692_v39 = vcombine.high %v2401_v17, %v2405_v19  ;;  %v1689_v40 = vcombine.low %v2395_v14, %v2399_v16  ;;  %v1694_v41 = vcombine.high %v2403_v18, %v2407_v20  ;;  %s428_s5 = scalar_lea.vmem [#allocation2], %s1793_s24  ;;  %v2640_v5 = vld [vmem:[#allocation12 + $0x40] sm:$0xff] (%p417_p6)  ;;  %v2642_v6 = vld [vmem:[#allocation12 + $0x48] sm:$0xff] (%p417_p6)  ;;  %v2644_v7 = vld [vmem:[#allocation12 + $0x50] sm:$0xff] (%p417_p6)  ;;  %s2742_s27 = smov (%p417_p6), 0  }
 0x176   : > { %596 = vmatprep.subr.bf16.mxu0 %v1684_v62  ;;  %637 = vmatprep.subr.bf16.mxu1 %v1686_v57  ;;  %v1691_v42 = vcombine.low %v2401_v17, %v2405_v19  ;;  %v1696_v43 = vcombine.high %v2409_v21, %v2413_v23  ;;  %v1693_v44 = vcombine.low %v2403_v18, %v2407_v20  ;;  %v2646_v8 = vld [vmem:[#allocation12 + $0x58] sm:$0xff] (%p417_p6)  ;;  %v2648_v9 = vld [vmem:[#allocation12 + $0x60] sm:$0xff] (%p417_p6)  ;;  %v2650_v10 = vld [vmem:[#allocation12 + $0x68] sm:$0xff] (%p417_p6) }
 0x177   : > { %626 = vmatprep.mubr.bf16.mxu0 %v2210_v37  ;;  %667 = vmatprep.mubr.bf16.mxu1 %v2210_v37  ;;  %v1698_v45 = vcombine.high %v2411_v22, %v2415_v24  ;;  %v1695_v46 = vcombine.low %v2409_v21, %v2413_v23  ;;  %v1700_v47 = vcombine.high %v2417_v25, %v2421_v27  ;;  %v2652_v11 = vld [vmem:[#allocation12 + $0x70] sm:$0xff] (%p417_p6)  ;;  %v2654_v12 = vld [vmem:[#allocation12 + $0x78] sm:$0xff] (%p417_p6)  ;;  %v2656_v13 = vld [vmem:[#allocation12 + $0x80] sm:$0xff] (%p417_p6) }
 0x178   : > { %v1697_v48 = vcombine.low %v2411_v22, %v2415_v24  ;;  %v1702_v49 = vcombine.high %v2419_v26, %v2423_v28  ;;  %v1699_v50 = vcombine.low %v2417_v25, %v2421_v27  ;;  %v1704_v51 = vcombine.high %v2425_v29, %v2429_v31  ;;  %v430_v37 = vld [vmem:[%s428_s5 + $0x8] sm:$0xff]  ;;  %v2660_v15 = vld [vmem:[#allocation12 + $0x90] sm:$0xff] (%p417_p6)  ;;  %v2662_v16 = vld [vmem:[#allocation12 + $0x98] sm:$0xff] (%p417_p6) }
 0x179   : > { %597 = vmatpush1.bf16.msra.mxu0 %v1683_v1  ;;  %638 = vmatpush1.bf16.msra.mxu1 %v1685_v3  ;;  %v1701_v52 = vcombine.low %v2419_v26, %v2423_v28  ;;  %v1706_v60 = vcombine.high %v2427_v30, %v2431_v32  ;;  %v1703_v61 = vcombine.low %v2425_v29, %v2429_v31  ;;  %v422_v1 = vld [vmem:[#allocation16] sm:$0xff]  ;;  %v2668_v19 = vld [vmem:[#allocation12 + $0xb0] sm:$0xff] (%p417_p6)  ;;  %v2670_v20 = vld [vmem:[#allocation12 + $0xb8] sm:$0xff] (%p417_p6) }
 0x17a   : > { %598 = vmatprep.subr.bf16.mxu0 %v1688_v2  ;;  %639 = vmatprep.subr.bf16.mxu1 %v1690_v4  ;;  %v1708_v62 = vcombine.high %v2433_v33, %v2437_v35  ;;  %v1705_v63 = vcombine.low %v2427_v30, %v2431_v32  ;;  %v1710_v53 = vcombine.high %v2435_v34, %v2439_v36  ;;  %v429_v4 = vld [vmem:[%s428_s5] sm:$0xff]  ;;  %v2658_v14 = vld [vmem:[#allocation12 + $0x88] sm:$0xff] (%p417_p6)  ;;  %v2676_v23 = vld [vmem:[#allocation12 + $0xd0] sm:$0xff] (%p417_p6) }
 0x17b   : > { %v1707_v57 = vcombine.low %v2433_v33, %v2437_v35  ;;  %v1709_v2 = vcombine.low %v2435_v34, %v2439_v36  ;;  %v433_v3 = vpack.c.bf16 %v422_v1, %v422_v1  ;;  %v2664_v17 = vld [vmem:[#allocation12 + $0xa0] sm:$0xff] (%p417_p6)  ;;  %v2666_v18 = vld [vmem:[#allocation12 + $0xa8] sm:$0xff] (%p417_p6)  ;;  %v2678_v24 = vld [vmem:[#allocation12 + $0xd8] sm:$0xff] (%p417_p6) }
 0x17c   :  { %v2672_v21 = vld [vmem:[#allocation12 + $0xc0] sm:$0xff] (%p417_p6)  ;;  %v2674_v22 = vld [vmem:[#allocation12 + $0xc8] sm:$0xff] (%p417_p6)  ;;  %v2684_v27 = vld [vmem:[#allocation12 + $0xf0] sm:$0xff] (%p417_p6) }
 0x17d   : > { %599 = vmatpush1.bf16.msra.mxu0 %v1687_v38  ;;  %640 = vmatpush1.bf16.msra.mxu1 %v1689_v40  ;;  %v2680_v25 = vld [vmem:[#allocation12 + $0xe0] sm:$0xff] (%p417_p6)  ;;  %v2682_v26 = vld [vmem:[#allocation12 + $0xe8] sm:$0xff] (%p417_p6)  ;;  %v2686_v28 = vld [vmem:[#allocation12 + $0xf8] sm:$0xff] (%p417_p6) }
 0x17e   : > { %600 = vmatprep.subr.bf16.mxu0 %v1692_v39  ;;  %641 = vmatprep.subr.bf16.mxu1 %v1694_v41  ;;  %v1901_v29 = vld [vmem:[#allocation10 + $0x4] ss:$16 sps:$4 sm:$0xff] (%p417_p6)   ;;  %v1903_v30 = vld [vmem:[#allocation10 + $0xc] ss:$16 sps:$4 sm:$0xff] (%p417_p6)   ;;  %v1905_v31 = vld [vmem:[#allocation10] ss:$16 sps:$4 sm:$0xff] (%p417_p6)  }
 0x17f   :  { %v1906_v32 = vld [vmem:[#allocation10 + $0x8] ss:$16 sps:$4 sm:$0xff] (%p417_p6)   ;;  %v1907_v33 = vld [vmem:[#allocation10 + $0x24] ss:$16 sps:$4 sm:$0xff] (%p417_p6)   ;;  %v1909_v34 = vld [vmem:[#allocation10 + $0x2c] ss:$16 sps:$4 sm:$0xff] (%p417_p6)  }
 0x180   :  { %v1911_v35 = vld [vmem:[#allocation10 + $0x20] ss:$16 sps:$4 sm:$0xff] (%p417_p6)   ;;  %v1912_v36 = vld [vmem:[#allocation10 + $0x28] ss:$16 sps:$4 sm:$0xff] (%p417_p6)  }
 0x181   : > { %601 = vmatpush1.bf16.msra.mxu0 %v1691_v42  ;;  %642 = vmatpush1.bf16.msra.mxu1 %v1693_v44 }
 0x182   : > { %602 = vmatprep.subr.bf16.mxu0 %v1696_v43  ;;  %643 = vmatprep.subr.bf16.mxu1 %v1698_v45 }
 0x185   : > { %603 = vmatpush1.bf16.msra.mxu0 %v1695_v46  ;;  %644 = vmatpush1.bf16.msra.mxu1 %v1697_v48 }
 0x186   : > { %604 = vmatprep.subr.bf16.mxu0 %v1700_v47  ;;  %645 = vmatprep.subr.bf16.mxu1 %v1702_v49  ;;  %v431_v49 = vld [vmem:[%s428_s5 + $0x10] sm:$0xff] }
 0x189   : > { %605 = vmatpush1.bf16.msra.mxu0 %v1699_v50  ;;  %646 = vmatpush1.bf16.msra.mxu1 %v1701_v52  ;;  %v432_v52 = vld [vmem:[%s428_s5 + $0x18] sm:$0xff] }
 0x18a   : > { %606 = vmatprep.subr.bf16.mxu0 %v1704_v51  ;;  %647 = vmatprep.subr.bf16.mxu1 %v1706_v60 }
 0x18d   : > { %607 = vmatpush1.bf16.msra.mxu0 %v1703_v61  ;;  %648 = vmatpush1.bf16.msra.mxu1 %v1705_v63 }
 0x18e   : > { %608 = vmatprep.subr.bf16.mxu0 %v1708_v62  ;;  %649 = vmatprep.subr.bf16.mxu1 %v1710_v53 }
 0x191   : > { %609 = vmatpush1.bf16.msra.mxu0 %v1707_v57  ;;  %650 = vmatpush1.bf16.msra.mxu1 %v1709_v2 }
 0x192   :  { %966 = vmatprep.subr.bf16.mxu0 (%p417_p6), %v1901_v29  ;;  %1039 = vmatprep.subr.bf16.mxu1 (%p417_p6), %v1903_v30  ;;  %v1941_v29 = vld [vmem:[#allocation10 + $0xc0] ss:$16 sps:$4 sm:$0xff] (%p417_p6)   ;;  %v1942_v30 = vld [vmem:[#allocation10 + $0xc8] ss:$16 sps:$4 sm:$0xff] (%p417_p6)  }
 0x194   : > { %627 = vmatmul.mubr.bf16.vlgmr.msra.gmra.mrb[0].mxu0 %v433_v3  ;;  %668 = vmatmul.mubr.bf16.vlgmr.msra.gmra.mrb[0].mxu1 %v433_v3  ;;  %v423_v3 = vld [vmem:[#allocation18] sm:$0xff] }
 0x195   :  { %998 = vmatprep.mubr.bf16.mxu0 (%p417_p6), %v2209_v0  ;;  %1071 = vmatprep.mubr.bf16.mxu1 (%p417_p6), %v2209_v0 }
 0x196   :  { %967 = vmatpush1.bf16.msra.mxu0 (%p417_p6), %v1905_v31  ;;  %1040 = vmatpush1.bf16.msra.mxu1 (%p417_p6), %v1906_v32  ;;  %v1943_v31 = vld [vmem:[#allocation10 + $0xe4] ss:$16 sps:$4 sm:$0xff] (%p417_p6)   ;;  %v1945_v32 = vld [vmem:[#allocation10 + $0xec] ss:$16 sps:$4 sm:$0xff] (%p417_p6)  }
 0x197   :  { %968 = vmatprep.subr.bf16.mxu0 (%p417_p6), %v1907_v33  ;;  %1041 = vmatprep.subr.bf16.mxu1 (%p417_p6), %v1909_v34  ;;  %v1947_v33 = vld [vmem:[#allocation10 + $0xe0] ss:$16 sps:$4 sm:$0xff] (%p417_p6)  }
 0x19a   :  { %969 = vmatpush1.bf16.msra.mxu0 (%p417_p6), %v1911_v35  ;;  %1042 = vmatpush1.bf16.msra.mxu1 (%p417_p6), %v1912_v36  ;;  %v1948_v36 = vld [vmem:[#allocation10 + $0xe8] ss:$16 sps:$4 sm:$0xff] (%p417_p6)  }
 0x267   : > { %v628_v38 = vpop.f32.mrb[0].mxu0  ;;  %v669_v41 = vpop.f32.mrb[0].mxu1 }
 0x268   : > { %v676_v39 = vadd.f32 %v628_v38, %v429_v4  ;;  %v630_v40 = vpop.f32.mrb[1].mxu0  ;;  %v671_v44 = vpop.f32.mrb[1].mxu1  ;;  %v678_v51 = vadd.f32 %v669_v41, %v431_v49  ;;  %v2632_v49 = vld [vmem:[#allocation12 + $0x20] sm:$0xff] (%p417_p6) }
 0x269   : > { %v677_v42 = vadd.f32 %v630_v40, %v430_v37  ;;  %v632_v43 = vpop.f32.mrb[2].mxu0  ;;  %v673_v47 = vpop.f32.mrb[2].mxu1  ;;  %v679_v61 = vadd.f32 %v671_v44, %v432_v52  ;;  %v2638_v52 = vld [vmem:[#allocation12 + $0x38] sm:$0xff] (%p417_p6) }
 0x26a   : > { %v1711_v45 = vmul.f32 -1.442695, %v676_v39  ;;  %v633_v46 = vpop.f32.mrb[3].mxu0  ;;  %v674_v50 = vpop.f32.mrb[3].mxu1  ;;  %v1713_v60 = vmul.f32 -1.442695, %v678_v51 }
 0x26b   : > { %v1712_v48 = vmul.f32 -1.442695, %v677_v42  ;;  %v2626_v46 = vld [vmem:[#allocation12 + $0x8] sm:$0xff] (%p417_p6)  ;;  %v2628_v47 = vld [vmem:[#allocation12 + $0x10] sm:$0xff] (%p417_p6) }
 0x26c   : > { %1885 = vpow2.f32 %v1711_v45  ;;  %v2622_v45 = vld [vmem:[#allocation12] sm:$0xff] (%p417_p6)  ;;  %v2634_v50 = vld [vmem:[#allocation12 + $0x28] sm:$0xff] (%p417_p6)  ;;  %v2636_v51 = vld [vmem:[#allocation12 + $0x30] sm:$0xff] (%p417_p6) }
 0x26d   : > { %1887 = vpow2.f32 %v1712_v48  ;;  %v2630_v48 = vld [vmem:[#allocation12 + $0x18] sm:$0xff] (%p417_p6) }
 0x26e   : > { %1889 = vpow2.f32 %v1713_v60  ;;  %v1913_v60 = vld [vmem:[#allocation10 + $0x44] ss:$16 sps:$4 sm:$0xff] (%p417_p6)  }
 0x26f   : > { %1891 = vtanh.f32 %v679_v61  ;;  %v1915_v61 = vld [vmem:[#allocation10 + $0x4c] ss:$16 sps:$4 sm:$0xff] (%p417_p6)   ;;  %970 = vmatprep.subr.bf16.mxu0 (%p417_p6), %v1913_v60 }
 0x270   :  { %1043 = vmatprep.subr.bf16.mxu1 (%p417_p6), %v1915_v61 }
 0x276   : > { %v1886_v62 = vpop.eup %1885 }
 0x277   : > { %v1888_v63 = vpop.eup %1887  ;;  %v689_v53 = vadd.f32 1.0, %v1886_v62  ;;  %v1917_v62 = vld [vmem:[#allocation10 + $0x40] ss:$16 sps:$4 sm:$0xff] (%p417_p6)  }
 0x278   : > { %v690_v57 = vadd.f32 1.0, %v1888_v63  ;;  %v1890_v1 = vpop.eup %1889  ;;  %v1918_v63 = vld [vmem:[#allocation10 + $0x48] ss:$16 sps:$4 sm:$0xff] (%p417_p6)   ;;  %971 = vmatpush1.bf16.msra.mxu0 (%p417_p6), %v1917_v62 }
 0x279   : > { %1893 = vrcp.f32 %v689_v53  ;;  %v1892_v2 = vpop.eup %1891  ;;  %v691_v37 = vadd.f32 1.0, %v1890_v1  ;;  %v1919_v53 = vld [vmem:[#allocation10 + $0x64] ss:$16 sps:$4 sm:$0xff] (%p417_p6)   ;;  %v1923_v1 = vld [vmem:[#allocation10 + $0x60] ss:$16 sps:$4 sm:$0xff] (%p417_p6)   ;;  %1044 = vmatpush1.bf16.msra.mxu1 (%p417_p6), %v1918_v63 }
 0x27a   : > { %1895 = vrcp.f32 %v690_v57  ;;  %v1921_v57 = vld [vmem:[#allocation10 + $0x6c] ss:$16 sps:$4 sm:$0xff] (%p417_p6)   ;;  %972 = vmatprep.subr.bf16.mxu0 (%p417_p6), %v1919_v53 }
 0x27b   : > { %1897 = vrcp.f32 %v691_v37  ;;  %1045 = vmatprep.subr.bf16.mxu1 (%p417_p6), %v1921_v57  ;;  %v1929_v37 = vld [vmem:[#allocation10 + $0x80] ss:$16 sps:$4 sm:$0xff] (%p417_p6)  }
 0x27c   :  { %973 = vmatpush1.bf16.msra.mxu0 (%p417_p6), %v1923_v1 }
 0x283   : > { %v1894_v4 = vpop.eup %1893 }
 0x284   : > { %v1896_v38 = vpop.eup %1895  ;;  %v700_v39 = vmul.f32 %v1894_v4, %v1892_v2  ;;  %v1924_v2 = vld [vmem:[#allocation10 + $0x68] ss:$16 sps:$4 sm:$0xff] (%p417_p6)   ;;  %v1927_v4 = vld [vmem:[#allocation10 + $0x8c] ss:$16 sps:$4 sm:$0xff] (%p417_p6)  }
 0x285   : > { %v699_v40 = vmul.f32 %v1896_v38, %v423_v3  ;;  %v1898_v42 = vpop.eup %1897  ;;  %v1925_v3 = vld [vmem:[#allocation10 + $0x84] ss:$16 sps:$4 sm:$0xff] (%p417_p6)   ;;  %v1930_v38 = vld [vmem:[#allocation10 + $0x88] ss:$16 sps:$4 sm:$0xff] (%p417_p6)   ;;  %1046 = vmatpush1.bf16.msra.mxu1 (%p417_p6), %v1924_v2 }
 0x286   :  { %974 = vmatprep.subr.bf16.mxu0 (%p417_p6), %v1925_v3  ;;  %1047 = vmatprep.subr.bf16.mxu1 (%p417_p6), %v1927_v4 }
 0x287   : > { %v701_v41 = vadd.f32 %v700_v39, %v699_v40  ;;  %v1931_v39 = vld [vmem:[#allocation10 + $0xa4] ss:$16 sps:$4 sm:$0xff] (%p417_p6)   ;;  %v1933_v40 = vld [vmem:[#allocation10 + $0xac] ss:$16 sps:$4 sm:$0xff] (%p417_p6)   ;;  %975 = vmatpush1.bf16.msra.mxu0 (%p417_p6), %v1929_v37  ;;  %v772_v37 = vld [vmem:[#allocation13] sm:$0xf] (%p417_p6) }
 0x288   :  { %976 = vmatprep.subr.bf16.mxu0 (%p417_p6), %v1931_v39  ;;  %v2700_v39 = vrot.slane (%p417_p6), %v772_v37, %v194_v56 }
 0x289   : > { %1899 = vtanh.f32 %v701_v41  ;;  %707 = vst [vmem:[#allocation18] sm:$0xff] %v701_v41  ;;  %v1935_v41 = vld [vmem:[#allocation10 + $0xa0] ss:$16 sps:$4 sm:$0xff] (%p417_p6)   ;;  %1048 = vmatpush1.bf16.msra.mxu1 (%p417_p6), %v1930_v38  ;;  %v2696_v38 = vrot.slane (%p417_p6), %v772_v37, %v186_v55 }
 0x28a   :  { %1049 = vmatprep.subr.bf16.mxu1 (%p417_p6), %v1933_v40  ;;  %v2704_v40 = vrot.slane (%p417_p6), %v772_v37, %v190_v58 }
 0x28b   :  { %977 = vmatpush1.bf16.msra.mxu0 (%p417_p6), %v1935_v41  ;;  %v2708_v41 = vrot.slane (%p417_p6), %v772_v37, %v198_v59 }
 0x290   :  { %419 = sbr.rel (!%p417_p6) target bundleno = 370 (0x172), region = 128 }
 0x293   : > { %v1900_v43 = vpop.eup %1899 }
 0x294   : > { %v703_v44 = vmul.f32 %v1900_v43, %v1898_v42  ;;  %v1936_v42 = vld [vmem:[#allocation10 + $0xa8] ss:$16 sps:$4 sm:$0xff] (%p417_p6)   ;;  %v1937_v43 = vld [vmem:[#allocation10 + $0xc4] ss:$16 sps:$4 sm:$0xff] (%p417_p6)  }
 0x295   :  { %1050 = vmatpush1.bf16.msra.mxu1 (%p417_p6), %v1936_v42  ;;  %978 = vmatprep.subr.bf16.mxu0 (%p417_p6), %v1937_v43 }
 0x296   : > { %705 = vst [vmem:[%s704_s4] sm:$0xff] %v703_v44  ;;  %706 = vst [vmem:[#allocation16] sm:$0xff] %v703_v44  ;;  %v1939_v44 = vld [vmem:[#allocation10 + $0xcc] ss:$16 sps:$4 sm:$0xff] (%p417_p6)   ;;  %979 = vmatpush1.bf16.msra.mxu0 (%p417_p6), %v1941_v29 }
 0x297   :  { %1051 = vmatprep.subr.bf16.mxu1 %v1939_v44  ;;  %980 = vmatprep.subr.bf16.mxu0 %v1943_v31 }
 0x299   :  { %1052 = vmatpush1.bf16.msra.mxu1 %v1942_v30 }
 0x29a   :  { %1053 = vmatprep.subr.bf16.mxu1 %v1945_v32  ;;  %981 = vmatpush1.bf16.msra.mxu0 %v1947_v33 }
 0x29d   :  { %v773_v34 = vld [vmem:[#allocation3] sm:$0xff]  ;;  %v774_v35 = vld [vmem:[#allocation3 + $0x8] sm:$0xff]  ;;  %1054 = vmatpush1.bf16.msra.mxu1 %v1948_v36  ;;  %v775_v61 = vld [vmem:[#allocation3 + $0x10] sm:$0xff] }
 0x29e   :  { %v781_v60 = vpack.c.bf16 %v774_v35, %v773_v34  ;;  %v776_v62 = vld [vmem:[#allocation3 + $0x18] sm:$0xff]  ;;  %v777_v53 = vld [vmem:[#allocation3 + $0x20] sm:$0xff]  ;;  %v778_v57 = vld [vmem:[#allocation3 + $0x28] sm:$0xff] }
 0x29f   :  { %v782_v63 = vpack.c.bf16 %v776_v62, %v775_v61  ;;  %v783_v1 = vpack.c.bf16 %v778_v57, %v777_v53  ;;  %v779_v2 = vld [vmem:[#allocation3 + $0x30] sm:$0xff]  ;;  %v780_v3 = vld [vmem:[#allocation3 + $0x38] sm:$0xff] }
 0x2a0   :  { %999 = vmatmul.mubr.bf16.vlgmr.msra.gmra.mrb[0].mxu0 %v781_v60  ;;  %1072 = vmatmul.mubr.bf16.vlgmr.msra.gmra.mrb[0].mxu1 %v781_v60  ;;  %v784_v4 = vpack.c.bf16 %v780_v3, %v779_v2 }
 0x2a1   :  { %1008 = vmatprep.mubr.bf16.mxu0 %v2209_v0  ;;  %1081 = vmatprep.mubr.bf16.mxu1 %v2209_v0 }
 0x2a8   :  { %1009 = vmatmul.mubr.bf16.gmra.mrb[4].mxu0 %v782_v63  ;;  %1082 = vmatmul.mubr.bf16.gmra.mrb[4].mxu1 %v782_v63 }
 0x2a9   :  { %1018 = vmatprep.mubr.bf16.mxu0 %v2209_v0  ;;  %1091 = vmatprep.mubr.bf16.mxu1 %v2209_v0 }
 0x2b0   :  { %1019 = vmatmul.mubr.bf16.gmra.mrb[8].mxu0 %v783_v1  ;;  %1092 = vmatmul.mubr.bf16.gmra.mrb[8].mxu1 %v783_v1 }
 0x2b1   :  { %1028 = vmatprep.mubr.bf16.mxu0 %v2209_v0  ;;  %1101 = vmatprep.mubr.bf16.mxu1 %v2209_v0 }
 0x2b8   :  { %1029 = vmatmul.mubr.bf16.gmra.mrb[12].mxu0 %v784_v4  ;;  %1102 = vmatmul.mubr.bf16.gmra.mrb[12].mxu1 %v784_v4 }
 0x373   :  { %v1000_v0 = vpop.f32.mrb[0].mxu0  ;;  %v1073_v43 = vpop.f32.mrb[0].mxu1 }
 0x374   :  { %v1001_v42 = vadd.f32 %v1000_v0, %v2696_v38  ;;  %v1002_v44 = vpop.f32.mrb[1].mxu0  ;;  %v1074_v55 = vadd.f32 %v1073_v43, %v2700_v39  ;;  %v1075_v30 = vpop.f32.mrb[1].mxu1 }
 0x375   :  { %v1003_v29 = vadd.f32 %v1002_v44, %v2704_v40  ;;  %v1004_v56 = vpop.f32.mrb[2].mxu0  ;;  %v1076_v31 = vadd.f32 %v1075_v30, %v2708_v41  ;;  %v1077_v32 = vpop.f32.mrb[2].mxu1 }
 0x376   :  { %1112 = vst [vmem:[#allocation2] sm:$0xff] %v1001_v42  ;;  %v1005_v58 = vadd.f32 %v1004_v56, %v2696_v38  ;;  %v1006_v54 = vpop.f32.mrb[3].mxu0  ;;  %1114 = vst [vmem:[#allocation2 + $0x10] sm:$0xff] %v1074_v55  ;;  %v1078_v59 = vadd.f32 %v1077_v32, %v2700_v39  ;;  %v1079_v34 = vpop.f32.mrb[3].mxu1 }
 0x377   :  { %1113 = vst [vmem:[#allocation2 + $0x8] sm:$0xff] %v1003_v29  ;;  %v1007_v33 = vadd.f32 %v1006_v54, %v2704_v40  ;;  %1115 = vst [vmem:[#allocation2 + $0x18] sm:$0xff] %v1076_v31  ;;  %v1080_v35 = vadd.f32 %v1079_v34, %v2708_v41 }
 0x378   :  { %1116 = vst [vmem:[#allocation2 + $0x20] sm:$0xff] %v1005_v58  ;;  %1118 = vst [vmem:[#allocation2 + $0x30] sm:$0xff] %v1078_v59 }
 0x379   :  { %1117 = vst [vmem:[#allocation2 + $0x28] sm:$0xff] %v1007_v33  ;;  %1119 = vst [vmem:[#allocation2 + $0x38] sm:$0xff] %v1080_v35 }
 0x37b   :  { %v1010_v36 = vpop.f32.mrb[4].mxu0  ;;  %v1083_v61 = vpop.f32.mrb[4].mxu1 }
 0x37c   :  { %v1011_v60 = vadd.f32 %v1010_v36, %v2696_v38  ;;  %v1012_v62 = vpop.f32.mrb[5].mxu0  ;;  %v1084_v63 = vadd.f32 %v1083_v61, %v2700_v39  ;;  %v1085_v57 = vpop.f32.mrb[5].mxu1 }
 0x37d   :  { %v1013_v53 = vadd.f32 %v1012_v62, %v2704_v40  ;;  %v1014_v1 = vpop.f32.mrb[6].mxu0  ;;  %v1086_v2 = vadd.f32 %v1085_v57, %v2708_v41  ;;  %v1087_v4 = vpop.f32.mrb[6].mxu1 }
 0x37e   :  { %1120 = vst [vmem:[#allocation2 + $0x40] sm:$0xff] %v1011_v60  ;;  %v1015_v3 = vadd.f32 %v1014_v1, %v2696_v38  ;;  %v1016_v37 = vpop.f32.mrb[7].mxu0  ;;  %1122 = vst [vmem:[#allocation2 + $0x50] sm:$0xff] %v1084_v63  ;;  %v1088_v0 = vadd.f32 %v1087_v4, %v2700_v39  ;;  %v1089_v43 = vpop.f32.mrb[7].mxu1 }
 0x37f   :  { %1121 = vst [vmem:[#allocation2 + $0x48] sm:$0xff] %v1013_v53  ;;  %v1017_v42 = vadd.f32 %v1016_v37, %v2704_v40  ;;  %1123 = vst [vmem:[#allocation2 + $0x58] sm:$0xff] %v1086_v2  ;;  %v1090_v44 = vadd.f32 %v1089_v43, %v2708_v41 }
 0x380   :  { %1124 = vst [vmem:[#allocation2 + $0x60] sm:$0xff] %v1015_v3  ;;  %1126 = vst [vmem:[#allocation2 + $0x70] sm:$0xff] %v1088_v0 }
 0x381   :  { %1125 = vst [vmem:[#allocation2 + $0x68] sm:$0xff] %v1017_v42  ;;  %1127 = vst [vmem:[#allocation2 + $0x78] sm:$0xff] %v1090_v44 }
 0x383   :  { %v1020_v55 = vpop.f32.mrb[8].mxu0  ;;  %v1093_v30 = vpop.f32.mrb[8].mxu1 }
 0x384   :  { %v1021_v29 = vadd.f32 %v1020_v55, %v2696_v38  ;;  %v1022_v56 = vpop.f32.mrb[9].mxu0  ;;  %v1094_v31 = vadd.f32 %v1093_v30, %v2700_v39  ;;  %v1095_v32 = vpop.f32.mrb[9].mxu1 }
 0x385   :  { %v1023_v58 = vadd.f32 %v1022_v56, %v2704_v40  ;;  %v1024_v54 = vpop.f32.mrb[10].mxu0  ;;  %v1096_v59 = vadd.f32 %v1095_v32, %v2708_v41  ;;  %v1097_v34 = vpop.f32.mrb[10].mxu1 }
 0x386   :  { %1128 = vst [vmem:[#allocation2 + $0x80] sm:$0xff] %v1021_v29  ;;  %v1025_v33 = vadd.f32 %v1024_v54, %v2696_v38  ;;  %v1026_v35 = vpop.f32.mrb[11].mxu0  ;;  %1130 = vst [vmem:[#allocation2 + $0x90] sm:$0xff] %v1094_v31  ;;  %v1098_v36 = vadd.f32 %v1097_v34, %v2700_v39  ;;  %v1099_v61 = vpop.f32.mrb[11].mxu1 }
 0x387   :  { %1129 = vst [vmem:[#allocation2 + $0x88] sm:$0xff] %v1023_v58  ;;  %v1027_v60 = vadd.f32 %v1026_v35, %v2704_v40  ;;  %1131 = vst [vmem:[#allocation2 + $0x98] sm:$0xff] %v1096_v59  ;;  %v1100_v62 = vadd.f32 %v1099_v61, %v2708_v41 }
 0x388   :  { %1132 = vst [vmem:[#allocation2 + $0xa0] sm:$0xff] %v1025_v33  ;;  %1134 = vst [vmem:[#allocation2 + $0xb0] sm:$0xff] %v1098_v36 }
 0x389   :  { %1133 = vst [vmem:[#allocation2 + $0xa8] sm:$0xff] %v1027_v60  ;;  %1135 = vst [vmem:[#allocation2 + $0xb8] sm:$0xff] %v1100_v62 }
 0x38b   :  { %v1030_v63 = vpop.f32.mrb[12].mxu0  ;;  %v1103_v57 = vpop.f32.mrb[12].mxu1 }
 0x38c   :  { %v1031_v53 = vadd.f32 %v1030_v63, %v2696_v38  ;;  %v1032_v1 = vpop.f32.mrb[13].mxu0  ;;  %v1104_v2 = vadd.f32 %v1103_v57, %v2700_v39  ;;  %v1105_v4 = vpop.f32.mrb[13].mxu1 }
 0x38d   :  { %v1033_v3 = vadd.f32 %v1032_v1, %v2704_v40  ;;  %v1034_v37 = vpop.f32.mrb[14].mxu0  ;;  %v1106_v0 = vadd.f32 %v1105_v4, %v2708_v41  ;;  %v1107_v43 = vpop.f32.mrb[14].mxu1 }
 0x38e   :  { %1136 = vst [vmem:[#allocation2 + $0xc0] sm:$0xff] %v1031_v53  ;;  %v1035_v42 = vadd.f32 %v1034_v37, %v2696_v38  ;;  %v1036_v44 = vpop.f32.mrb[15].mxu0  ;;  %1138 = vst [vmem:[#allocation2 + $0xd0] sm:$0xff] %v1104_v2  ;;  %v1108_v55 = vadd.f32 %v1107_v43, %v2700_v39  ;;  %v1109_v30 = vpop.f32.mrb[15].mxu1 }
 0x38f   :  { %1137 = vst [vmem:[#allocation2 + $0xc8] sm:$0xff] %v1033_v3  ;;  %v1037_v29 = vadd.f32 %v1036_v44, %v2704_v40  ;;  %1139 = vst [vmem:[#allocation2 + $0xd8] sm:$0xff] %v1106_v0  ;;  %v1110_v56 = vadd.f32 %v1109_v30, %v2708_v41 }
 0x390   :  { %1140 = vst [vmem:[#allocation2 + $0xe0] sm:$0xff] %v1035_v42  ;;  %1142 = vst [vmem:[#allocation2 + $0xf0] sm:$0xff] %v1108_v55 }
 0x391   :  { %1141 = vst [vmem:[#allocation2 + $0xe8] sm:$0xff] %v1037_v29  ;;  %1143 = vst [vmem:[#allocation2 + $0xf8] sm:$0xff] %v1110_v56 }
 0x392 LB: > { %v1750_v38 = vcombine.high %v2622_v45, %v2628_v47  ;;  %v1749_v39 = vcombine.low %v2622_v45, %v2628_v47  ;;  %v1754_v40 = vcombine.high %v2632_v49, %v2636_v51  ;;  %v1752_v41 = vcombine.high %v2626_v46, %v2630_v48  ;;  %s1746_s28 = sshll.u32 %s2197_s27, 3  ;;  %s1149_s27 = sadd.s32 1, %s2197_s27   ;;  %s2197_s27 = sphi %s2742_s27, %s1149_s27  }
 0x393   : > { %v1751_v31 = vcombine.low %v2626_v46, %v2630_v48  ;;  %v1756_v58 = vcombine.high %v2634_v50, %v2638_v52  ;;  %v1753_v32 = vcombine.low %v2632_v49, %v2636_v51  ;;  %v1758_v54 = vcombine.high %v2640_v5, %v2644_v7  ;;  %s1155_s29 = sshra.s32 %s1746_s28, 3  ;;  %s1435_s30 = scalar_lea.vmem [#allocation3], %s1746_s28 }
 0x394   : > { %1325 = vmatprep.subr.bf16.mxu0 %v1750_v38  ;;  %1366 = vmatprep.subr.bf16.mxu1 %v1752_v41  ;;  %v1755_v59 = vcombine.low %v2634_v50, %v2638_v52  ;;  %v1760_v33 = vcombine.high %v2642_v6, %v2646_v8  ;;  %v2211_v34 = vmov 0   ;;  %v1757_v35 = vcombine.low %v2640_v5, %v2644_v7  ;;  %v1152_v38 = vld [vmem:[#allocation16 + $0x8] sm:$0xff]  ;;  %s1794_s2 = sshll.u32 %s1155_s29, 5  ;;  %p1146_p7 = scmp.ge.s32.totalorder %s1149_s27, 8  }
 0x395   : > { %1326 = vmatpush1.bf16.msra.mxu0 %v1749_v39  ;;  %1367 = vmatpush1.bf16.msra.mxu1 %v1751_v31  ;;  %v1762_v36 = vcombine.high %v2648_v9, %v2652_v11  ;;  %v1759_v60 = vcombine.low %v2642_v6, %v2646_v8  ;;  %v1764_v61 = vcombine.high %v2650_v10, %v2654_v12  ;;  %s1159_s25 = scalar_lea.vmem [#allocation2], %s1794_s2  ;;  %v1968_v45 = vld [vmem:[%s2900_s9 + $0x18] sm:$0xff] (%p1146_p7)   ;;  %v1969_v52 = vld [vmem:[%s2900_s9 + $0x20] sm:$0xff] (%p1146_p7)   ;;  %v1970_v5 = vld [vmem:[%s2900_s9 + $0x28] sm:$0xff] (%p1146_p7)   ;;  %s2212_s5 = smov (%p1146_p7), [#allocation16]  }
 0x396   : > { %1327 = vmatprep.subr.bf16.mxu0 %v1754_v40  ;;  %1368 = vmatprep.subr.bf16.mxu1 %v1756_v58  ;;  %v1761_v62 = vcombine.low %v2648_v9, %v2652_v11  ;;  %v1766_v63 = vcombine.high %v2656_v13, %v2660_v15  ;;  %v1763_v53 = vcombine.low %v2650_v10, %v2654_v12  ;;  %v1971_v6 = vld [vmem:[%s2900_s9 + $0x30] sm:$0xff] (%p1146_p7)   ;;  %v1972_v7 = vld [vmem:[%s2900_s9 + $0x38] sm:$0xff] (%p1146_p7)   ;;  %s1612_s4 = sshll.u32 (%p1146_p7), %s2212_s5, 4  ;;  %s1613_s4 = int_to_ptr.vmem [resolvable:$true] %s1612_s4 }
 0x397   : > { %1357 = vmatprep.mubr.bf16.mxu0 %v2211_v34  ;;  %1398 = vmatprep.mubr.bf16.mxu1 %v2211_v34  ;;  %v1768_v57 = vcombine.high %v2658_v14, %v2662_v16  ;;  %v1765_v1 = vcombine.low %v2656_v13, %v2660_v15  ;;  %v1770_v2 = vcombine.high %v2664_v17, %v2668_v19  ;;  %s2105_s27 = scalar_lea.vmem (%p1146_p7), %s1613_s4, 256  ;;  %p2110_p9 = scmp.lt.s32.totalorder (%p1146_p7), %s1613_s4, %s1613_s4 }
 0x398   : > { %v1767_v3 = vcombine.low %v2658_v14, %v2662_v16  ;;  %v1772_v4 = vcombine.high %v2666_v18, %v2670_v20  ;;  %v1769_v37 = vcombine.low %v2664_v17, %v2668_v19  ;;  %v1774_v0 = vcombine.high %v2672_v21, %v2676_v23  ;;  %v1160_v41 = vld [vmem:[%s1159_s25] sm:$0xff]  ;;  %v1161_v31 = vld [vmem:[%s1159_s25 + $0x8] sm:$0xff]  ;;  %p2106_p8 = scmp.ne.s32.totalorder (%p1146_p7), %s1613_s4, %s2105_s27  ;;  %p2111_p10 = scmp.lt.s32.totalorder (%p1146_p7), %s2105_s27, %s2105_s27 }
 0x399   : > { %1328 = vmatpush1.bf16.msra.mxu0 %v1753_v32  ;;  %1369 = vmatpush1.bf16.msra.mxu1 %v1755_v59  ;;  %v1771_v42 = vcombine.low %v2666_v18, %v2670_v20  ;;  %v1776_v43 = vcombine.high %v2674_v22, %v2678_v24  ;;  %v1773_v44 = vcombine.low %v2672_v21, %v2676_v23 }
 0x39a   : > { %1329 = vmatprep.subr.bf16.mxu0 %v1758_v54  ;;  %1370 = vmatprep.subr.bf16.mxu1 %v1760_v33  ;;  %v1778_v55 = vcombine.high %v2680_v25, %v2684_v27  ;;  %v1775_v29 = vcombine.low %v2674_v22, %v2678_v24  ;;  %v1780_v30 = vcombine.high %v2682_v26, %v2686_v28  ;;  %p2112_p11 = por (%p1146_p7), %p2111_p10, %p2110_p9 }
 0x39b   : > { %v1777_v56 = vcombine.low %v2680_v25, %v2684_v27  ;;  %v1779_v39 = vcombine.low %v2682_v26, %v2686_v28  ;;  %v1164_v40 = vpack.c.bf16 %v1152_v38, %v1152_v38 }
 0x39c   :  { %p2113_p12 = pnand (%p1146_p7), %p2112_p11, %p2106_p8 }
 0x39d   : > { %1330 = vmatpush1.bf16.msra.mxu0 %v1757_v35  ;;  %1371 = vmatpush1.bf16.msra.mxu1 %v1759_v60 }
 0x39e   : > { %1331 = vmatprep.subr.bf16.mxu0 %v1762_v36  ;;  %1372 = vmatprep.subr.bf16.mxu1 %v1764_v61 }
 0x3a1   : > { %1332 = vmatpush1.bf16.msra.mxu0 %v1761_v62  ;;  %1373 = vmatpush1.bf16.msra.mxu1 %v1763_v53 }
 0x3a2   : > { %1333 = vmatprep.subr.bf16.mxu0 %v1766_v63  ;;  %1374 = vmatprep.subr.bf16.mxu1 %v1768_v57  ;;  %v1162_v63 = vld [vmem:[%s1159_s25 + $0x10] sm:$0xff] }
 0x3a5   : > { %1334 = vmatpush1.bf16.msra.mxu0 %v1765_v1  ;;  %1375 = vmatpush1.bf16.msra.mxu1 %v1767_v3  ;;  %v1163_v1 = vld [vmem:[%s1159_s25 + $0x18] sm:$0xff] }
 0x3a6   : > { %1335 = vmatprep.subr.bf16.mxu0 %v1770_v2  ;;  %1376 = vmatprep.subr.bf16.mxu1 %v1772_v4 }
 0x3a9   : > { %1336 = vmatpush1.bf16.msra.mxu0 %v1769_v37  ;;  %1377 = vmatpush1.bf16.msra.mxu1 %v1771_v42 }
 0x3aa   : > { %1337 = vmatprep.subr.bf16.mxu0 %v1774_v0  ;;  %1378 = vmatprep.subr.bf16.mxu1 %v1776_v43 }
 0x3ad   : > { %1338 = vmatpush1.bf16.msra.mxu0 %v1773_v44  ;;  %1379 = vmatpush1.bf16.msra.mxu1 %v1775_v29 }
 0x3ae   : > { %1339 = vmatprep.subr.bf16.mxu0 %v1778_v55  ;;  %1380 = vmatprep.subr.bf16.mxu1 %v1780_v30  ;;  %v1154_v55 = vld [vmem:[#allocation18 + $0x8] sm:$0xff] }
 0x3b1   : > { %1340 = vmatpush1.bf16.msra.mxu0 %v1777_v56  ;;  %1381 = vmatpush1.bf16.msra.mxu1 %v1779_v39 }
 0x3b4   : > { %1358 = vmatmul.mubr.bf16.vlgmr.msra.gmra.mrb[0].mxu0 %v1164_v40  ;;  %1399 = vmatmul.mubr.bf16.vlgmr.msra.gmra.mrb[0].mxu1 %v1164_v40 }
 0x487   : > { %v1359_v58 = vpop.f32.mrb[0].mxu0  ;;  %v1400_v59 = vpop.f32.mrb[0].mxu1 }
 0x488   : > { %v1407_v32 = vadd.f32 %v1359_v58, %v1160_v41  ;;  %v1361_v54 = vpop.f32.mrb[1].mxu0  ;;  %v1402_v35 = vpop.f32.mrb[1].mxu1  ;;  %v1409_v57 = vadd.f32 %v1400_v59, %v1162_v63  ;;  %v1967_v59 = vld [vmem:[%s2900_s9 + $0x10] sm:$0xff] (%p1146_p7)  }
 0x489   : > { %v1408_v33 = vadd.f32 %v1361_v54, %v1161_v31  ;;  %v1363_v34 = vpop.f32.mrb[2].mxu0  ;;  %v1404_v61 = vpop.f32.mrb[2].mxu1  ;;  %v1410_v3 = vadd.f32 %v1402_v35, %v1163_v1  ;;  %v1966_v54 = vld [vmem:[%s2900_s9 + $0x8] sm:$0xff] (%p1146_p7)  }
 0x48a   : > { %v1781_v36 = vmul.f32 -1.442695, %v1407_v32  ;;  %v1364_v60 = vpop.f32.mrb[3].mxu0  ;;  %v1405_v53 = vpop.f32.mrb[3].mxu1  ;;  %v1783_v2 = vmul.f32 -1.442695, %v1409_v57 }
 0x48b   : > { %v1782_v62 = vmul.f32 -1.442695, %v1408_v33  ;;  %v1965_v32 = vld [vmem:[%s2900_s9] sm:$0xff] (%p1146_p7)  }
 0x48c   : > { %1949 = vpow2.f32 %v1781_v36  ;;  %1807 = vmatprep.subr.bf16.mxu0 (%p1146_p7), %v1965_v32  ;;  %1831 = vmatprep.subr.bf16.mxu1 (%p1146_p7), %v1965_v32 }
 0x48d   : > { %1951 = vpow2.f32 %v1782_v62  ;;  %1808 = vmatpush3.bf16.msra.mxu0 (%p1146_p7), %v1965_v32  ;;  %1839 = vmatpush3.bf16.msra.mxu1 (%p1146_p7), %v1965_v32 }
 0x48e   : > { %1953 = vpow2.f32 %v1783_v2  ;;  %1809 = vmatprep.subr.bf16.mxu0 (%p1146_p7), %v1966_v54  ;;  %1832 = vmatprep.subr.bf16.mxu1 (%p1146_p7), %v1966_v54 }
 0x48f   : > { %1955 = vtanh.f32 %v1410_v3 }
 0x491   :  { %1810 = vmatpush3.bf16.msra.mxu0 (%p1146_p7), %v1966_v54  ;;  %1840 = vmatpush3.bf16.msra.mxu1 (%p1146_p7), %v1966_v54 }
 0x492   :  { %1811 = vmatprep.subr.bf16.mxu0 (%p1146_p7), %v1967_v59  ;;  %1833 = vmatprep.subr.bf16.mxu1 (%p1146_p7), %v1967_v59 }
 0x495   :  { %1812 = vmatpush3.bf16.msra.mxu0 (%p1146_p7), %v1967_v59  ;;  %1841 = vmatpush3.bf16.msra.mxu1 (%p1146_p7), %v1967_v59 }
 0x496   : > { %v1950_v4 = vpop.eup %1949  ;;  %1813 = vmatprep.subr.bf16.mxu0 (%p1146_p7), %v1968_v45  ;;  %1834 = vmatprep.subr.bf16.mxu1 (%p1146_p7), %v1968_v45 }
 0x497   : > { %v1952_v37 = vpop.eup %1951  ;;  %v1420_v0 = vadd.f32 1.0, %v1950_v4 }
 0x498   : > { %v1421_v42 = vadd.f32 1.0, %v1952_v37  ;;  %v1954_v43 = vpop.eup %1953 }
 0x499   : > { %1957 = vrcp.f32 %v1420_v0  ;;  %v1956_v44 = vpop.eup %1955  ;;  %v1422_v30 = vadd.f32 1.0, %v1954_v43  ;;  %1814 = vmatpush3.bf16.msra.mxu0 (%p1146_p7), %v1968_v45  ;;  %1842 = vmatpush3.bf16.msra.mxu1 (%p1146_p7), %v1968_v45 }
 0x49a   : > { %1959 = vrcp.f32 %v1421_v42  ;;  %1815 = vmatprep.subr.bf16.mxu0 (%p1146_p7), %v1969_v52  ;;  %1835 = vmatprep.subr.bf16.mxu1 (%p1146_p7), %v1969_v52 }
 0x49b   : > { %1961 = vrcp.f32 %v1422_v30 }
 0x49d   :  { %1816 = vmatpush3.bf16.msra.mxu0 (%p1146_p7), %v1969_v52  ;;  %1843 = vmatpush3.bf16.msra.mxu1 (%p1146_p7), %v1969_v52 }
 0x49e   :  { %1817 = vmatprep.subr.bf16.mxu0 (%p1146_p7), %v1970_v5  ;;  %1836 = vmatprep.subr.bf16.mxu1 (%p1146_p7), %v1970_v5 }
 0x4a1   :  { %1818 = vmatpush3.bf16.msra.mxu0 (%p1146_p7), %v1970_v5  ;;  %1844 = vmatpush3.bf16.msra.mxu1 (%p1146_p7), %v1970_v5 }
 0x4a2   :  { %1819 = vmatprep.subr.bf16.mxu0 (%p1146_p7), %v1971_v6  ;;  %1837 = vmatprep.subr.bf16.mxu1 (%p1146_p7), %v1971_v6 }
 0x4a3   : > { %v1958_v29 = vpop.eup %1957 }
 0x4a4   : > { %v1960_v56 = vpop.eup %1959  ;;  %v1431_v38 = vmul.f32 %v1958_v29, %v1956_v44 }
 0x4a5   : > { %v1430_v39 = vmul.f32 %v1960_v56, %v1154_v55  ;;  %v1962_v41 = vpop.eup %1961  ;;  %1820 = vmatpush3.bf16.msra.mxu0 (%p1146_p7), %v1971_v6  ;;  %1845 = vmatpush3.bf16.msra.mxu1 (%p1146_p7), %v1971_v6 }
 0x4a6   :  { %1821 = vmatprep.subr.bf16.mxu0 (%p1146_p7), %v1972_v7  ;;  %1838 = vmatprep.subr.bf16.mxu1 (%p1146_p7), %v1972_v7 }
 0x4a7   : > { %v1432_v40 = vadd.f32 %v1431_v38, %v1430_v39 }
 0x4a9   : > { %1963 = vtanh.f32 %v1432_v40  ;;  %1438 = vst [vmem:[#allocation18 + $0x8] sm:$0xff] %v1432_v40  ;;  %1822 = vmatpush3.bf16.msra.mxu0 (%p1146_p7), %v1972_v7  ;;  %1846 = vmatpush3.bf16.msra.mxu1 (%p1146_p7), %v1972_v7 }
 0x4b0   :  { %1148 = sbr.rel (!%p1146_p7) target bundleno = 914 (0x392), region = 139 }
 0x4b3   : > { %v1964_v31 = vpop.eup %1963 }
 0x4b4   : > { %v1434_v58 = vmul.f32 %v1964_v31, %v1962_v41 }
 0x4b6   : > { %1436 = vst [vmem:[%s1435_s30] sm:$0xff] %v1434_v58  ;;  %1437 = vst [vmem:[#allocation16 + $0x8] sm:$0xff] %v1434_v58 }
 0x4bd   :  { %v1439_v46 = vld [vmem:[#allocation3] sm:$0xff]  ;;  %v1440_v47 = vld [vmem:[#allocation3 + $0x8] sm:$0xff]  ;;  %v1441_v8 = vld [vmem:[#allocation3 + $0x10] sm:$0xff] }
 0x4be   :  { %v1443_v48 = vld [vmem:[#allocation3 + $0x20] sm:$0xff]  ;;  %v1447_v49 = vpack.c.bf16 %v1440_v47, %v1439_v46  ;;  %v1444_v50 = vld [vmem:[#allocation3 + $0x28] sm:$0xff]  ;;  %v1442_v9 = vld [vmem:[#allocation3 + $0x18] sm:$0xff] }
 0x4bf   :  { %v1449_v51 = vpack.c.bf16 %v1444_v50, %v1443_v48  ;;  %v1445_v10 = vld [vmem:[#allocation3 + $0x30] sm:$0xff]  ;;  %v1446_v11 = vld [vmem:[#allocation3 + $0x38] sm:$0xff]  ;;  %v1448_v12 = vpack.c.bf16 %v1442_v9, %v1441_v8 }
 0x4c0   :  { %1823 = vmatprep.mubr.bf16.mxu0 %v1447_v49  ;;  %v1450_v13 = vpack.c.bf16 %v1446_v11, %v1445_v10 }
 0x4c1   :  { %1827 = vmatprep.mubr.bf16.mxu1 %v1449_v51  ;;  %1824 = vmatmul.mubr.bf16.vlgmr.msra.gmra.mrb[0].mxu0 %v1448_v12 }
 0x4c2   :  { %1828 = vmatmul.mubr.bf16.vlgmr.msra.gmra.mrb[0].mxu1 %v1450_v13 }
 0x4c3   :  { %2116 = shalt.err (!%p2113_p12)
}
 0x4c4   :  { %s2117_s29 = scalar_lea.hbm %s2903_s12, 256 }
 0x4c5   :  { %p2118_p13 = scmp.ne.s32.totalorder %s2903_s12, %s2117_s29  ;;  %p2121_p0 = scmp.lt.u32.totalorder %s2117_s29, %s2903_s12 }
 0x4c7   :  { %p2123_p1 = pnand %p2121_p0, %p2118_p13 }
 0x4c9   :  { %2126 = shalt.err (!%p2123_p1)
}
 0x4ca   :  { %1618 = dma.vmem_to_hbm [thread:$0]  %s1613_s4, 256, %s2903_s12, [#allocation17], %s2204_s6, %s2204_s6, %s2205_s23  }
 0x4cb   :  { %s2213_s16 = smov [#allocation18]  }
 0x4cc   :  { %s1624_s26 = sshll.u32 %s2213_s16, 4  ;;  %s1625_s26 = int_to_ptr.vmem [resolvable:$true] %s1624_s26 }
 0x4cd   :  { %s2127_s7 = scalar_lea.vmem %s1625_s26, 256  ;;  %p2132_p3 = scmp.lt.s32.totalorder %s1625_s26, %s1625_s26 }
 0x4ce   :  { %p2128_p2 = scmp.ne.s32.totalorder %s1625_s26, %s2127_s7  ;;  %p2133_p4 = scmp.lt.s32.totalorder %s2127_s7, %s2127_s7 }
 0x4d0   :  { %p2134_p5 = por %p2133_p4, %p2132_p3 }
 0x4d2   :  { %p2135_p6 = pnand %p2134_p5, %p2128_p2 }
 0x4d4   :  { %2138 = shalt.err (!%p2135_p6)
}
 0x4d5   :  { %s2139_s17 = scalar_lea.hbm %s2904_s13, 256 }
 0x4d6   :  { %p2140_p7 = scmp.ne.s32.totalorder %s2904_s13, %s2139_s17  ;;  %p2143_p8 = scmp.lt.u32.totalorder %s2139_s17, %s2904_s13 }
 0x4d8   :  { %p2145_p9 = pnand %p2143_p8, %p2140_p7 }
 0x4da   :  { %2148 = shalt.err (!%p2145_p9)
}
 0x4db   :  { %1630 = dma.vmem_to_hbm [thread:$0]  %s1625_s26, 256, %s2904_s13, [#allocation17], %s2204_s6, %s2204_s6, %s2205_s23  }
 0x4dc   :  { %v1784_v14 = vld [vmem:[%s2901_s10] ss:$0 sm:$0xff]  ;;  %s2214_s5 = smov [#allocation15]  }
 0x4dd   :  { %s1600_s4 = sshll.u32 %s2214_s5, 4  ;;  %s1601_s4 = int_to_ptr.vmem [resolvable:$true] %s1600_s4 }
 0x4de   :  { %s2149_s10 = scalar_lea.vmem %s1601_s4, 1024  ;;  %p2154_p11 = scmp.lt.s32.totalorder %s1601_s4, %s1601_s4 }
 0x4df   :  { %p2150_p10 = scmp.ne.s32.totalorder %s1601_s4, %s2149_s10  ;;  %p2155_p12 = scmp.lt.s32.totalorder %s2149_s10, %s2149_s10 }
 0x4e1   :  { %p2156_p13 = por %p2155_p12, %p2154_p11 }
 0x4e3   :  { %p2157_p0 = pnand %p2156_p13, %p2150_p10 }
 0x594   :  { %v1825_v15 = vpop.f32.mrb[0].mxu0 }
 0x595   :  { %v1829_v16 = vpop.f32.mrb[0].mxu1  ;;  %v1565_v17 = vadd.f32 %v1825_v15, %v1784_v14  ;;  %v1556_v19 = vpop.f32.mrb[1].mxu0 }
 0x596   :  { %v1581_v18 = vadd.f32 %v1829_v16, %v1784_v14  ;;  %v1572_v20 = vpop.f32.mrb[1].mxu1  ;;  %v1557_v21 = vadd.f32 %v1784_v14, %v1556_v19  ;;  %v1826_v23 = vpop.f32.mrb[2].mxu0 }
 0x597   :  { %v1573_v22 = vadd.f32 %v1784_v14, %v1572_v20  ;;  %v1830_v24 = vpop.f32.mrb[2].mxu1  ;;  %1589 = vst [vmem:[#allocation15 + $0x10] sm:$0xff] %v1565_v17  ;;  %v1568_v25 = vadd.f32 %v1826_v23, %v1784_v14  ;;  %v1559_v27 = vpop.f32.mrb[3].mxu0 }
 0x598   :  { %1593 = vst [vmem:[#allocation15 + $0x30] sm:$0xff] %v1581_v18  ;;  %v1584_v26 = vadd.f32 %v1830_v24, %v1784_v14  ;;  %v1575_v28 = vpop.f32.mrb[3].mxu1  ;;  %1587 = vst [vmem:[#allocation15] sm:$0xff] %v1557_v21  ;;  %v1560_v33 = vadd.f32 %v1784_v14, %v1559_v27 }
 0x599   :  { %1591 = vst [vmem:[#allocation15 + $0x20] sm:$0xff] %v1573_v22  ;;  %v1576_v34 = vadd.f32 %v1784_v14, %v1575_v28  ;;  %1590 = vst [vmem:[#allocation15 + $0x18] sm:$0xff] %v1568_v25 }
 0x59a   :  { %1594 = vst [vmem:[#allocation15 + $0x38] sm:$0xff] %v1584_v26  ;;  %1588 = vst [vmem:[#allocation15 + $0x8] sm:$0xff] %v1560_v33 }
 0x59b   :  { %1592 = vst [vmem:[#allocation15 + $0x28] sm:$0xff] %v1576_v34 }
 0x59c   :  { %2160 = shalt.err (!%p2157_p0)
}
 0x59d   :  { %s2161_s9 = scalar_lea.hbm %s2902_s11, 1024 }
 0x59e   :  { %p2162_p1 = scmp.ne.s32.totalorder %s2902_s11, %s2161_s9  ;;  %p2165_p2 = scmp.lt.u32.totalorder %s2161_s9, %s2902_s11 }
 0x5a0   :  { %p2167_p3 = pnand %p2165_p2, %p2162_p1 }
 0x5a2   :  { %2170 = shalt.err (!%p2167_p3)
}
 0x5a3   :  { %1606 = dma.vmem_to_hbm [thread:$0]  %s1601_s4, 1024, %s2902_s11, [#allocation6], %s2204_s6, %s2204_s6, %s2205_s23  }
 0x5a4   :  { %2187 = dma.done.wait [#allocation6], 1024  }
 0x5a5   :  { %2188 = vsyncadd [#allocation6], 4294966272 }
 0x5a6   :  { %2189 = dma.done.wait [#allocation17], 512  }
 0x5a7   :  { %2190 = vsyncadd [#allocation17], 4294966784 }
 0x5a8   :  { %1640 = vsyncpa [#allocation5], 1 }
 0x5a9   :  { %1641 = vsyncpa [#allocation8], 1 }
 0x5aa   :  { %1642 = vsyncpa [#allocation11], 1 }
 0x5ab   :  { %1643 = vsyncpa [#allocation14], 1 }
 0x5ac   :  { %1644 = vsyncpa [#allocation6], 1 }
 0x5ad   :  { %1645 = vsyncpa [#allocation17], 1 }

// kernel: tpu_custom_call.1
= control target key start
LH: loop header
LB: loop body
LE: loop exit
PB: predicated region body
PF: predicated region fallthrough
CT: control target
= control target key end

     0   :  { %19 = vsyncpa [#allocation5], 0  ;;  %s2891_s0 = inlined_call_operand.vmem [shape: f32[64,16], index: 0, kind: input, shape index: {}]   ;;  %s2892_s1 = inlined_call_operand.vmem [shape: f32[2,8,128], index: 1, kind: input, shape index: {}]   ;;  %s2893_s2 = inlined_call_operand.hbm [shape: f32[2,8,128], index: 2, kind: input, shape index: {}]   ;;  %s2894_s3 = inlined_call_operand.vmem [shape: bf16[16,512], index: 3, kind: input, shape index: {}]   ;;  %s2895_s4 = inlined_call_operand.hbm [shape: bf16[128,512], index: 4, kind: input, shape index: {}]   ;;  %s2896_s5 = inlined_call_operand.hbm [shape: f32[1,512], index: 5, kind: input, shape index: {}]   ;;  %s2897_s6 = inlined_call_operand.hbm [shape: bf16[128,512], index: 6, kind: input, shape index: {}]   ;;  %s2898_s7 = inlined_call_operand.hbm [shape: bf16[128,512], index: 7, kind: input, shape index: {}]   ;;  %s2899_s8 = inlined_call_operand.hbm [shape: f32[1,512], index: 8, kind: input, shape index: {}]   ;;  %s2900_s9 = inlined_call_operand.vmem [shape: bf16[128,128], index: 9, kind: input, shape index: {}]   ;;  %s2901_s10 = inlined_call_operand.vmem [shape: f32[1,128], index: 10, kind: input, shape index: {}]   ;;  %s2902_s11 = inlined_call_operand.hbm [shape: f32[64,128], index: 11, kind: output, shape index: {0}]   ;;  %s2903_s12 = inlined_call_operand.hbm [shape: f32[2,8,128], index: 12, kind: output, shape index: {1}]   ;;  %s2904_s13 = inlined_call_operand.hbm [shape: f32[2,8,128], index: 13, kind: output, shape index: {2}]  }
   0x1   :  { %20 = vsyncpa [#allocation8], 0 }
   0x2   :  { %21 = vsyncpa [#allocation11], 0 }
   0x3   :  { %22 = vsyncpa [#allocation14], 0 }
   0x4   :  { %23 = vsyncpa [#allocation6], 0 }
   0x5   :  { %24 = vsyncpa [#allocation17], 0  ;;  %s2199_s25 = smov [#allocation7]   ;;  %s1973_s29 = scalar_lea.hbm %s2895_s4, 4096 }
   0x6   :  { %s48_s26 = sshll.u32 %s2199_s25, 4  ;;  %p1974_p0 = scmp.ne.s32.totalorder %s2895_s4, %s1973_s29  ;;  %s49_s26 = int_to_ptr.vmem [resolvable:$true] %s48_s26 }
   0x7   :  { %p1977_p1 = scmp.lt.u32.totalorder %s1973_s29, %s2895_s4 }
   0x9   :  { %p1979_p2 = pnand %p1977_p1, %p1974_p0 }
   0xb   :  { %1982 = shalt.err (!%p1979_p2)
}
   0xc   :  { %s1983_s17 = scalar_lea.vmem %s49_s26, 4096  ;;  %p1988_p4 = scmp.lt.s32.totalorder %s49_s26, %s49_s26 }
   0xd   :  { %p1984_p3 = scmp.ne.s32.totalorder %s49_s26, %s1983_s17  ;;  %p1989_p5 = scmp.lt.s32.totalorder %s1983_s17, %s1983_s17 }
   0xf   :  { %p1990_p6 = por %p1989_p5, %p1988_p4 }
  0x11   :  { %p1991_p7 = pnand %p1990_p6, %p1984_p3 }
  0x13   :  { %1994 = shalt.err (!%p1991_p7)
}
  0x14   :  { %s2200_s18 = smov 256   ;;  %s2201_s19 = smov 16  }
  0x15   :  { %54 = dma.hbm_to_vmem [thread:$0]  %s2895_s4, 4096, %s49_s26, [#allocation8], %s2200_s18, %s2200_s18, %s2201_s19  }
  0x16   :  { %s2202_s22 = smov [#allocation10]   ;;  %s2203_s24 = smov [#allocation4]  }
  0x17   :  { %s70_s23 = sshll.u32 %s2202_s22, 4  ;;  %s34_s25 = sshll.u32 %s2203_s24, 4  ;;  %s71_s23 = int_to_ptr.vmem [resolvable:$true] %s70_s23  ;;  %s35_s25 = int_to_ptr.vmem [resolvable:$true] %s34_s25 }
  0x18   :  { %s1995_s29 = scalar_lea.hbm %s2897_s6, 4096 }
  0x19   :  { %p1996_p8 = scmp.ne.s32.totalorder %s2897_s6, %s1995_s29  ;;  %p1999_p9 = scmp.lt.u32.totalorder %s1995_s29, %s2897_s6 }
  0x1b   :  { %p2001_p10 = pnand %p1999_p9, %p1996_p8 }
  0x1d   :  { %2004 = shalt.err (!%p2001_p10)
}
  0x1e   :  { %s2005_s4 = scalar_lea.vmem %s71_s23, 4096  ;;  %p2010_p12 = scmp.lt.s32.totalorder %s71_s23, %s71_s23 }
  0x1f   :  { %p2006_p11 = scmp.ne.s32.totalorder %s71_s23, %s2005_s4  ;;  %p2011_p13 = scmp.lt.s32.totalorder %s2005_s4, %s2005_s4 }
  0x21   :  { %p2012_p0 = por %p2011_p13, %p2010_p12 }
  0x23   :  { %p2013_p1 = pnand %p2012_p0, %p2006_p11 }
  0x25   :  { %2016 = shalt.err (!%p2013_p1)
}
  0x26   :  { %76 = dma.hbm_to_vmem [thread:$0]  %s2897_s6, 4096, %s71_s23, [#allocation11], %s2200_s18, %s2200_s18, %s2201_s19  }
  0x27   :  { %s2017_s22 = scalar_lea.hbm %s2893_s2, 256 }
  0x28   :  { %p2018_p2 = scmp.ne.s32.totalorder %s2893_s2, %s2017_s22  ;;  %p2021_p3 = scmp.lt.u32.totalorder %s2017_s22, %s2893_s2 }
  0x2a   :  { %p2023_p4 = pnand %p2021_p3, %p2018_p2 }
  0x2c   :  { %2026 = shalt.err (!%p2023_p4)
}
  0x2d   :  { %s2027_s30 = scalar_lea.vmem %s35_s25, 256  ;;  %p2032_p6 = scmp.lt.s32.totalorder %s35_s25, %s35_s25 }
  0x2e   :  { %p2028_p5 = scmp.ne.s32.totalorder %s35_s25, %s2027_s30  ;;  %p2033_p7 = scmp.lt.s32.totalorder %s2027_s30, %s2027_s30 }
  0x30   :  { %p2034_p8 = por %p2033_p7, %p2032_p6 }
  0x32   :  { %p2035_p9 = pnand %p2034_p8, %p2028_p5 }
  0x34   :  { %2038 = shalt.err (!%p2035_p9)
}
  0x35   :  { %s2204_s6 = smov 128   ;;  %s2205_s23 = smov 8  }
  0x36   :  { %40 = dma.hbm_to_vmem [thread:$0]  %s2893_s2, 256, %s35_s25, [#allocation5], %s2204_s6, %s2204_s6, %s2205_s23  }
  0x37   :  { %s2206_s16 = smov [#allocation9]   ;;  %s2207_s26 = smov [#allocation12]  }
  0x38   :  { %s61_s4 = sshll.u32 %s2206_s16, 4  ;;  %s82_s17 = sshll.u32 %s2207_s26, 4  ;;  %s62_s4 = int_to_ptr.vmem [resolvable:$true] %s61_s4  ;;  %s83_s17 = int_to_ptr.vmem [resolvable:$true] %s82_s17 }
  0x39   :  { %s2039_s22 = scalar_lea.hbm %s2896_s5, 64 }
  0x3a   :  { %p2040_p10 = scmp.ne.s32.totalorder %s2896_s5, %s2039_s22  ;;  %p2043_p11 = scmp.lt.u32.totalorder %s2039_s22, %s2896_s5 }
  0x3c   :  { %p2045_p12 = pnand %p2043_p11, %p2040_p10 }
  0x3e   :  { %2048 = shalt.err (!%p2045_p12)
}
  0x3f   :  { %s2049_s2 = scalar_lea.vmem %s62_s4, 64  ;;  %p2054_p0 = scmp.lt.s32.totalorder %s62_s4, %s62_s4 }
  0x40   :  { %p2050_p13 = scmp.ne.s32.totalorder %s62_s4, %s2049_s2  ;;  %p2055_p1 = scmp.lt.s32.totalorder %s2049_s2, %s2049_s2 }
  0x42   :  { %p2056_p2 = por %p2055_p1, %p2054_p0 }
  0x44   :  { %p2057_p3 = pnand %p2056_p2, %p2050_p13 }
  0x46   :  { %2060 = shalt.err (!%p2057_p3)
}
  0x47   :  { %64 = dma.hbm_to_vmem [thread:$0]  %s2896_s5, 64, %s62_s4, [#allocation8]  }
  0x48   :  { %s2061_s16 = scalar_lea.hbm %s2898_s7, 4096 }
  0x49   :  { %p2062_p4 = scmp.ne.s32.totalorder %s2898_s7, %s2061_s16  ;;  %p2065_p5 = scmp.lt.u32.totalorder %s2061_s16, %s2898_s7 }
  0x4b   :  { %p2067_p6 = pnand %p2065_p5, %p2062_p4 }
  0x4d   :  { %2070 = shalt.err (!%p2067_p6)
}
  0x4e   :  { %s2071_s24 = scalar_lea.vmem %s83_s17, 4096  ;;  %p2076_p8 = scmp.lt.s32.totalorder %s83_s17, %s83_s17 }
  0x4f   :  { %p2072_p7 = scmp.ne.s32.totalorder %s83_s17, %s2071_s24  ;;  %p2077_p9 = scmp.lt.s32.totalorder %s2071_s24, %s2071_s24 }
  0x51   :  { %p2078_p10 = por %p2077_p9, %p2076_p8 }
  0x53   :  { %p2079_p11 = pnand %p2078_p10, %p2072_p7 }
  0x55   :  { %2082 = shalt.err (!%p2079_p11)
}
  0x56   :  { %88 = dma.hbm_to_vmem [thread:$0]  %s2898_s7, 4096, %s83_s17, [#allocation11], %s2200_s18, %s2200_s18, %s2201_s19  }
  0x57   :  { %s2208_s27 = smov [#allocation13]   ;;  %s2083_s25 = scalar_lea.hbm %s2899_s8, 64 }
  0x58   :  { %s95_s28 = sshll.u32 %s2208_s27, 4  ;;  %p2084_p12 = scmp.ne.s32.totalorder %s2899_s8, %s2083_s25  ;;  %s96_s28 = int_to_ptr.vmem [resolvable:$true] %s95_s28 }
  0x59   :  { %p2087_p13 = scmp.lt.u32.totalorder %s2083_s25, %s2899_s8 }
  0x5b   :  { %p2089_p0 = pnand %p2087_p13, %p2084_p12 }
  0x5d   :  { %2092 = shalt.err (!%p2089_p0)
}
  0x5e   :  { %s2093_s26 = scalar_lea.vmem %s96_s28, 64  ;;  %p2098_p2 = scmp.lt.s32.totalorder %s96_s28, %s96_s28 }
  0x5f   :  { %p2094_p1 = scmp.ne.s32.totalorder %s96_s28, %s2093_s26  ;;  %p2099_p3 = scmp.lt.s32.totalorder %s2093_s26, %s2093_s26 }
  0x61   :  { %p2100_p4 = por %p2099_p3, %p2098_p2 }
  0x63   :  { %p2101_p5 = pnand %p2100_p4, %p2094_p1 }
  0x65   :  { %2104 = shalt.err (!%p2101_p5)
}
  0x66   :  { %98 = dma.hbm_to_vmem [thread:$0]  %s2899_s8, 64, %s96_s28, [#allocation14]  }
  0x67   :  { %2179 = dma.done.wait [#allocation5], 256  }
  0x68   :  { %2180 = vsyncadd [#allocation5], 4294967040 }
  0x69   :  { %2181 = dma.done.wait [#allocation8], 4160  }
  0x6a   :  { %2182 = vsyncadd [#allocation8], 4294963136 }
  0x6b   :  { %2183 = dma.done.wait [#allocation11], 8192  }
  0x6c   :  { %2184 = vsyncadd [#allocation11], 4294959104 }
  0x6d   :  { %2185 = dma.done.wait [#allocation14], 64  }
  0x6e   :  { %2186 = vsyncadd [#allocation14], 4294967232  ;;  %v2209_v0 = vmov 0   ;;  %v126_v1 = vld [vmem:[%s2892_s1] sm:$0xff]  ;;  %v127_v2 = vld [vmem:[%s2892_s1 + $0x8] sm:$0xff]  ;;  %vm224_vm0 = vcmask 130048   ;;  %v184_v53 = vlaneseq }
  0x6f   :  { %269 = vmatprep.mubr.bf16.mxu0 %v2209_v0  ;;  %342 = vmatprep.mubr.bf16.mxu1 %v2209_v0  ;;  %v130_v3 = vld [vmem:[#allocation4] sm:$0xff]  ;;  %128 = vst [vmem:[#allocation16] sm:$0xff] %v126_v1  ;;  %129 = vst [vmem:[#allocation16 + $0x8] sm:$0xff] %v127_v2  ;;  %v131_v4 = vld [vmem:[#allocation4 + $0x8] sm:$0xff] }
  0x70   :  { %132 = vst [vmem:[#allocation18] sm:$0xff] %v130_v3  ;;  %v2377_v5 = vld [vmem:[#allocation7] sm:$0xff]  ;;  %v2379_v6 = vld [vmem:[#allocation7 + $0x8] sm:$0xff]  ;;  %133 = vst [vmem:[#allocation18 + $0x8] sm:$0xff] %v131_v4  ;;  %v2491_v54 = vshrl.u32 %v184_v53, 7 }
  0x71   :  { %v2381_v7 = vld [vmem:[#allocation7 + $0x10] sm:$0xff]  ;;  %v2383_v8 = vld [vmem:[#allocation7 + $0x18] sm:$0xff]  ;;  %v2385_v9 = vld [vmem:[#allocation7 + $0x20] sm:$0xff] }
  0x72   :  { %v2387_v10 = vld [vmem:[#allocation7 + $0x28] sm:$0xff]  ;;  %v2389_v11 = vld [vmem:[#allocation7 + $0x30] sm:$0xff]  ;;  %v2391_v12 = vld [vmem:[#allocation7 + $0x38] sm:$0xff]  ;;  %v186_v55 = vsub.s32 0, %v2491_v54  ;;  %v194_v56 = vsub.s32 2, %v2491_v54  ;;  %v190_v58 = vsub.s32 1, %v2491_v54 }
  0x73   :  { %v2393_v13 = vld [vmem:[#allocation7 + $0x40] sm:$0xff]  ;;  %v2395_v14 = vld [vmem:[#allocation7 + $0x48] sm:$0xff]  ;;  %v2397_v15 = vld [vmem:[#allocation7 + $0x50] sm:$0xff]  ;;  %v198_v59 = vsub.s32 3, %v2491_v54 }
  0x74   :  { %v2399_v16 = vld [vmem:[#allocation7 + $0x58] sm:$0xff]  ;;  %v2401_v17 = vld [vmem:[#allocation7 + $0x60] sm:$0xff]  ;;  %v2403_v18 = vld [vmem:[#allocation7 + $0x68] sm:$0xff] }
  0x75   :  { %v2405_v19 = vld [vmem:[#allocation7 + $0x70] sm:$0xff]  ;;  %v2407_v20 = vld [vmem:[#allocation7 + $0x78] sm:$0xff]  ;;  %v2409_v21 = vld [vmem:[#allocation7 + $0x80] sm:$0xff] }
  0x76   :  { %v2411_v22 = vld [vmem:[#allocation7 + $0x88] sm:$0xff]  ;;  %v2413_v23 = vld [vmem:[#allocation7 + $0x90] sm:$0xff]  ;;  %v2415_v24 = vld [vmem:[#allocation7 + $0x98] sm:$0xff] }
  0x77   :  { %v2417_v25 = vld [vmem:[#allocation7 + $0xa0] sm:$0xff]  ;;  %v2419_v26 = vld [vmem:[#allocation7 + $0xa8] sm:$0xff]  ;;  %v2421_v27 = vld [vmem:[#allocation7 + $0xb0] sm:$0xff] }
  0x78   :  { %v2423_v28 = vld [vmem:[#allocation7 + $0xb8] sm:$0xff]  ;;  %v2425_v29 = vld [vmem:[#allocation7 + $0xc0] sm:$0xff]  ;;  %v2427_v30 = vld [vmem:[#allocation7 + $0xc8] sm:$0xff] }
  0x79   :  { %v2429_v31 = vld [vmem:[#allocation7 + $0xd0] sm:$0xff]  ;;  %v2431_v32 = vld [vmem:[#allocation7 + $0xd8] sm:$0xff]  ;;  %v2433_v33 = vld [vmem:[#allocation7 + $0xe0] sm:$0xff] }
  0x7a   :  { %v2435_v34 = vld [vmem:[#allocation7 + $0xe8] sm:$0xff]  ;;  %v2437_v35 = vld [vmem:[#allocation7 + $0xf0] sm:$0xff]  ;;  %v2439_v36 = vld [vmem:[#allocation7 + $0xf8] sm:$0xff] }
  0x7b   :  { %v1879_v37 = vld [vmem:[%s2894_s3 + $0x4] ss:$16 sps:$4 sm:$0xff]   ;;  %v1881_v38 = vld [vmem:[%s2894_s3 + $0xc] ss:$16 sps:$4 sm:$0xff]   ;;  %v1883_v39 = vld [vmem:[%s2894_s3] ss:$16 sps:$4 sm:$0xff]  }
  0x7c   :  { %237 = vmatprep.subr.bf16.mxu0 %v1879_v37  ;;  %v1884_v40 = vld [vmem:[%s2894_s3 + $0x8] ss:$16 sps:$4 sm:$0xff]   ;;  %v171_v41 = vld [vmem:[%s2891_s0] sm:$0xff]  ;;  %310 = vmatprep.subr.bf16.mxu1 %v1881_v38  ;;  %v173_v44 = vld [vmem:[%s2891_s0 + $0x10] sm:$0xff] }
  0x7d   :  { %v172_v42 = vld [vmem:[%s2891_s0 + $0x8] sm:$0xff]  ;;  %238 = vmatpush1.bf16.msra.mxu0 %v1883_v39  ;;  %311 = vmatpush1.bf16.msra.mxu1 %v1884_v40  ;;  %v174_v45 = vld [vmem:[%s2891_s0 + $0x18] sm:$0xff]  ;;  %v175_v47 = vld [vmem:[%s2891_s0 + $0x20] sm:$0xff] }
  0x7e   :  { %v179_v43 = vpack.c.bf16 %v172_v42, %v171_v41  ;;  %v180_v46 = vpack.c.bf16 %v174_v45, %v173_v44  ;;  %v176_v48 = vld [vmem:[%s2891_s0 + $0x28] sm:$0xff]  ;;  %v177_v50 = vld [vmem:[%s2891_s0 + $0x30] sm:$0xff]  ;;  %v178_v51 = vld [vmem:[%s2891_s0 + $0x38] sm:$0xff]  ;;  %s2545_s0 = smov 0  }
  0x7f   :  { %v181_v49 = vpack.c.bf16 %v176_v48, %v175_v47  ;;  %v182_v52 = vpack.c.bf16 %v178_v51, %v177_v50  ;;  %v170_v57 = vld [vmem:[#allocation9] sm:$0xf] }
  0x80   :  { %1668 = vmatmul.mubr.msk.bf16.vlgmr.msra.gmra.mrb[0].mxu0 %vm224_vm0, %v179_v43  ;;  %1672 = vmatmul.mubr.msk.bf16.vlgmr.msra.gmra.mrb[0].mxu1 %vm224_vm0, %v179_v43  ;;  %v2499_v60 = vrot.slane %v170_v57, %v186_v55  ;;  %v2503_v61 = vrot.slane %v170_v57, %v194_v56  ;;  %v2507_v62 = vrot.slane %v170_v57, %v190_v58 }
  0x81   :  { %279 = vmatprep.mubr.bf16.mxu0 %v2209_v0  ;;  %352 = vmatprep.mubr.bf16.mxu1 %v2209_v0  ;;  %v2511_v63 = vrot.slane %v170_v57, %v198_v59 }
  0x88   :  { %1669 = vmatmul.mubr.msk.bf16.gmra.mrb[4].mxu0 %vm224_vm0, %v180_v46  ;;  %1673 = vmatmul.mubr.msk.bf16.gmra.mrb[4].mxu1 %vm224_vm0, %v180_v46 }
  0x89   :  { %289 = vmatprep.mubr.bf16.mxu0 %v2209_v0  ;;  %362 = vmatprep.mubr.bf16.mxu1 %v2209_v0 }
  0x90   :  { %1670 = vmatmul.mubr.msk.bf16.gmra.mrb[8].mxu0 %vm224_vm0, %v181_v49  ;;  %1674 = vmatmul.mubr.msk.bf16.gmra.mrb[8].mxu1 %vm224_vm0, %v181_v49 }
  0x91   :  { %299 = vmatprep.mubr.bf16.mxu0 %v2209_v0  ;;  %372 = vmatprep.mubr.bf16.mxu1 %v2209_v0 }
  0x98   :  { %1671 = vmatmul.mubr.msk.bf16.gmra.mrb[12].mxu0 %vm224_vm0, %v182_v52  ;;  %1675 = vmatmul.mubr.msk.bf16.gmra.mrb[12].mxu1 %vm224_vm0, %v182_v52 }
 0x153   :  { %v271_v1 = vpop.f32.mrb[0].mxu0  ;;  %v344_v2 = vpop.f32.mrb[0].mxu1 }
 0x154   :  { %v272_v3 = vadd.f32 %v271_v1, %v2499_v60  ;;  %v345_v4 = vadd.f32 %v344_v2, %v2503_v61  ;;  %v273_v37 = vpop.f32.mrb[1].mxu0  ;;  %v346_v38 = vpop.f32.mrb[1].mxu1 }
 0x155   :  { %v274_v39 = vadd.f32 %v273_v37, %v2507_v62  ;;  %v347_v40 = vadd.f32 %v346_v38, %v2511_v63  ;;  %v275_v41 = vpop.f32.mrb[2].mxu0  ;;  %v348_v42 = vpop.f32.mrb[2].mxu1 }
 0x156   :  { %383 = vst [vmem:[#allocation2] sm:$0xff] %v272_v3  ;;  %385 = vst [vmem:[#allocation2 + $0x10] sm:$0xff] %v345_v4  ;;  %v276_v43 = vadd.f32 %v275_v41, %v2499_v60  ;;  %v349_v44 = vadd.f32 %v348_v42, %v2503_v61  ;;  %v277_v45 = vpop.f32.mrb[3].mxu0  ;;  %v350_v46 = vpop.f32.mrb[3].mxu1 }
 0x157   :  { %384 = vst [vmem:[#allocation2 + $0x8] sm:$0xff] %v274_v39  ;;  %386 = vst [vmem:[#allocation2 + $0x18] sm:$0xff] %v347_v40  ;;  %v278_v47 = vadd.f32 %v277_v45, %v2507_v62  ;;  %v351_v48 = vadd.f32 %v350_v46, %v2511_v63 }
 0x158   :  { %387 = vst [vmem:[#allocation2 + $0x20] sm:$0xff] %v276_v43  ;;  %389 = vst [vmem:[#allocation2 + $0x30] sm:$0xff] %v349_v44 }
 0x159   :  { %388 = vst [vmem:[#allocation2 + $0x28] sm:$0xff] %v278_v47  ;;  %390 = vst [vmem:[#allocation2 + $0x38] sm:$0xff] %v351_v48 }
 0x15b   :  { %v281_v49 = vpop.f32.mrb[4].mxu0  ;;  %v354_v50 = vpop.f32.mrb[4].mxu1 }
 0x15c   :  { %v282_v51 = vadd.f32 %v281_v49, %v2499_v60  ;;  %v355_v52 = vadd.f32 %v354_v50, %v2503_v61  ;;  %v283_v53 = vpop.f32.mrb[5].mxu0  ;;  %v356_v57 = vpop.f32.mrb[5].mxu1 }
 0x15d   :  { %v284_v1 = vadd.f32 %v283_v53, %v2507_v62  ;;  %v357_v2 = vadd.f32 %v356_v57, %v2511_v63  ;;  %v285_v3 = vpop.f32.mrb[6].mxu0  ;;  %v358_v4 = vpop.f32.mrb[6].mxu1 }
 0x15e   :  { %391 = vst [vmem:[#allocation2 + $0x40] sm:$0xff] %v282_v51  ;;  %393 = vst [vmem:[#allocation2 + $0x50] sm:$0xff] %v355_v52  ;;  %v286_v37 = vadd.f32 %v285_v3, %v2499_v60  ;;  %v359_v38 = vadd.f32 %v358_v4, %v2503_v61  ;;  %v287_v39 = vpop.f32.mrb[7].mxu0  ;;  %v360_v40 = vpop.f32.mrb[7].mxu1 }
 0x15f   :  { %392 = vst [vmem:[#allocation2 + $0x48] sm:$0xff] %v284_v1  ;;  %394 = vst [vmem:[#allocation2 + $0x58] sm:$0xff] %v357_v2  ;;  %v288_v41 = vadd.f32 %v287_v39, %v2507_v62  ;;  %v361_v42 = vadd.f32 %v360_v40, %v2511_v63 }
 0x160   :  { %395 = vst [vmem:[#allocation2 + $0x60] sm:$0xff] %v286_v37  ;;  %397 = vst [vmem:[#allocation2 + $0x70] sm:$0xff] %v359_v38 }
 0x161   :  { %396 = vst [vmem:[#allocation2 + $0x68] sm:$0xff] %v288_v41  ;;  %398 = vst [vmem:[#allocation2 + $0x78] sm:$0xff] %v361_v42 }
 0x163   :  { %v291_v43 = vpop.f32.mrb[8].mxu0  ;;  %v364_v44 = vpop.f32.mrb[8].mxu1 }
 0x164   :  { %v292_v45 = vadd.f32 %v291_v43, %v2499_v60  ;;  %v365_v46 = vadd.f32 %v364_v44, %v2503_v61  ;;  %v293_v47 = vpop.f32.mrb[9].mxu0  ;;  %v366_v48 = vpop.f32.mrb[9].mxu1 }
 0x165   :  { %v294_v49 = vadd.f32 %v293_v47, %v2507_v62  ;;  %v367_v50 = vadd.f32 %v366_v48, %v2511_v63  ;;  %v295_v51 = vpop.f32.mrb[10].mxu0  ;;  %v368_v52 = vpop.f32.mrb[10].mxu1 }
 0x166   :  { %399 = vst [vmem:[#allocation2 + $0x80] sm:$0xff] %v292_v45  ;;  %401 = vst [vmem:[#allocation2 + $0x90] sm:$0xff] %v365_v46  ;;  %v296_v53 = vadd.f32 %v295_v51, %v2499_v60  ;;  %v369_v57 = vadd.f32 %v368_v52, %v2503_v61  ;;  %v297_v1 = vpop.f32.mrb[11].mxu0  ;;  %v370_v2 = vpop.f32.mrb[11].mxu1 }
 0x167   :  { %400 = vst [vmem:[#allocation2 + $0x88] sm:$0xff] %v294_v49  ;;  %402 = vst [vmem:[#allocation2 + $0x98] sm:$0xff] %v367_v50  ;;  %v298_v3 = vadd.f32 %v297_v1, %v2507_v62  ;;  %v371_v4 = vadd.f32 %v370_v2, %v2511_v63 }
 0x168   :  { %403 = vst [vmem:[#allocation2 + $0xa0] sm:$0xff] %v296_v53  ;;  %405 = vst [vmem:[#allocation2 + $0xb0] sm:$0xff] %v369_v57 }
 0x169   :  { %404 = vst [vmem:[#allocation2 + $0xa8] sm:$0xff] %v298_v3  ;;  %406 = vst [vmem:[#allocation2 + $0xb8] sm:$0xff] %v371_v4 }
 0x16b   :  { %v301_v37 = vpop.f32.mrb[12].mxu0  ;;  %v374_v38 = vpop.f32.mrb[12].mxu1 }
 0x16c   :  { %v302_v39 = vadd.f32 %v301_v37, %v2499_v60  ;;  %v375_v40 = vadd.f32 %v374_v38, %v2503_v61  ;;  %v303_v41 = vpop.f32.mrb[13].mxu0  ;;  %v376_v42 = vpop.f32.mrb[13].mxu1 }
 0x16d   :  { %v304_v43 = vadd.f32 %v303_v41, %v2507_v62  ;;  %v377_v44 = vadd.f32 %v376_v42, %v2511_v63  ;;  %v305_v45 = vpop.f32.mrb[14].mxu0  ;;  %v378_v46 = vpop.f32.mrb[14].mxu1 }
 0x16e   :  { %407 = vst [vmem:[#allocation2 + $0xc0] sm:$0xff] %v302_v39  ;;  %409 = vst [vmem:[#allocation2 + $0xd0] sm:$0xff] %v375_v40  ;;  %v306_v47 = vadd.f32 %v305_v45, %v2499_v60  ;;  %v379_v48 = vadd.f32 %v378_v46, %v2503_v61  ;;  %v307_v49 = vpop.f32.mrb[15].mxu0  ;;  %v380_v50 = vpop.f32.mrb[15].mxu1 }
 0x16f   :  { %408 = vst [vmem:[#allocation2 + $0xc8] sm:$0xff] %v304_v43  ;;  %410 = vst [vmem:[#allocation2 + $0xd8] sm:$0xff] %v377_v44  ;;  %v308_v51 = vadd.f32 %v307_v49, %v2507_v62  ;;  %v381_v52 = vadd.f32 %v380_v50, %v2511_v63 }
 0x170   :  { %411 = vst [vmem:[#allocation2 + $0xe0] sm:$0xff] %v306_v47  ;;  %413 = vst [vmem:[#allocation2 + $0xf0] sm:$0xff] %v379_v48 }
 0x171   :  { %412 = vst [vmem:[#allocation2 + $0xe8] sm:$0xff] %v308_v51  ;;  %414 = vst [vmem:[#allocation2 + $0xf8] sm:$0xff] %v381_v52 }
 0x172 LB: > { %v1680_v60 = vcombine.high %v2377_v5, %v2381_v7  ;;  %v1679_v61 = vcombine.low %v2377_v5, %v2381_v7  ;;  %v1684_v62 = vcombine.high %v2385_v9, %v2389_v11  ;;  %v1682_v63 = vcombine.high %v2379_v6, %v2383_v8  ;;  %s1676_s8 = sshll.u32 %s2193_s0, 3  ;;  %s420_s0 = sadd.s32 1, %s2193_s0   ;;  %s2193_s0 = sphi %s2545_s0, %s420_s0  }
 0x173   : > { %v1681_v53 = vcombine.low %v2379_v6, %v2383_v8  ;;  %v1686_v57 = vcombine.high %v2387_v10, %v2391_v12  ;;  %v1683_v1 = vcombine.low %v2385_v9, %v2389_v11  ;;  %v1688_v2 = vcombine.high %v2393_v13, %v2397_v15  ;;  %s424_s22 = sshra.s32 %s1676_s8, 3  ;;  %s704_s4 = scalar_lea.vmem [#allocation3], %s1676_s8 }
 0x174   : > { %594 = vmatprep.subr.bf16.mxu0 %v1680_v60  ;;  %635 = vmatprep.subr.bf16.mxu1 %v1682_v63  ;;  %v1685_v3 = vcombine.low %v2387_v10, %v2391_v12  ;;  %v1690_v4 = vcombine.high %v2395_v14, %v2399_v16  ;;  %v2210_v37 = vmov 0   ;;  %v1687_v38 = vcombine.low %v2393_v13, %v2397_v15  ;;  %s1793_s24 = sshll.u32 %s424_s22, 5  ;;  %p417_p6 = scmp.ge.s32.totalorder %s420_s0, 8  }
 0x175   : > { %595 = vmatpush1.bf16.msra.mxu0 %v1679_v61  ;;  %636 = vmatpush1.bf16.msra.mxu1 %v1681_v53  ;;  %v1692_v39 = vcombine.high %v2401_v17, %v2405_v19  ;;  %v1689_v40 = vcombine.low %v2395_v14, %v2399_v16  ;;  %v1694_v41 = vcombine.high %v2403_v18, %v2407_v20  ;;  %s428_s5 = scalar_lea.vmem [#allocation2], %s1793_s24  ;;  %v2640_v5 = vld [vmem:[#allocation12 + $0x40] sm:$0xff] (%p417_p6)  ;;  %v2642_v6 = vld [vmem:[#allocation12 + $0x48] sm:$0xff] (%p417_p6)  ;;  %v2644_v7 = vld [vmem:[#allocation12 + $0x50] sm:$0xff] (%p417_p6)  ;;  %s2742_s27 = smov (%p417_p6), 0  }
 0x176   : > { %596 = vmatprep.subr.bf16.mxu0 %v1684_v62  ;;  %637 = vmatprep.subr.bf16.mxu1 %v1686_v57  ;;  %v1691_v42 = vcombine.low %v2401_v17, %v2405_v19  ;;  %v1696_v43 = vcombine.high %v2409_v21, %v2413_v23  ;;  %v1693_v44 = vcombine.low %v2403_v18, %v2407_v20  ;;  %v2646_v8 = vld [vmem:[#allocation12 + $0x58] sm:$0xff] (%p417_p6)  ;;  %v2648_v9 = vld [vmem:[#allocation12 + $0x60] sm:$0xff] (%p417_p6)  ;;  %v2650_v10 = vld [vmem:[#allocation12 + $0x68] sm:$0xff] (%p417_p6) }
 0x177   : > { %626 = vmatprep.mubr.bf16.mxu0 %v2210_v37  ;;  %667 = vmatprep.mubr.bf16.mxu1 %v2210_v37  ;;  %v1698_v45 = vcombine.high %v2411_v22, %v2415_v24  ;;  %v1695_v46 = vcombine.low %v2409_v21, %v2413_v23  ;;  %v1700_v47 = vcombine.high %v2417_v25, %v2421_v27  ;;  %v2652_v11 = vld [vmem:[#allocation12 + $0x70] sm:$0xff] (%p417_p6)  ;;  %v2654_v12 = vld [vmem:[#allocation12 + $0x78] sm:$0xff] (%p417_p6)  ;;  %v2656_v13 = vld [vmem:[#allocation12 + $0x80] sm:$0xff] (%p417_p6) }
 0x178   : > { %v1697_v48 = vcombine.low %v2411_v22, %v2415_v24  ;;  %v1702_v49 = vcombine.high %v2419_v26, %v2423_v28  ;;  %v1699_v50 = vcombine.low %v2417_v25, %v2421_v27  ;;  %v1704_v51 = vcombine.high %v2425_v29, %v2429_v31  ;;  %v430_v37 = vld [vmem:[%s428_s5 + $0x8] sm:$0xff]  ;;  %v2660_v15 = vld [vmem:[#allocation12 + $0x90] sm:$0xff] (%p417_p6)  ;;  %v2662_v16 = vld [vmem:[#allocation12 + $0x98] sm:$0xff] (%p417_p6) }
 0x179   : > { %597 = vmatpush1.bf16.msra.mxu0 %v1683_v1  ;;  %638 = vmatpush1.bf16.msra.mxu1 %v1685_v3  ;;  %v1701_v52 = vcombine.low %v2419_v26, %v2423_v28  ;;  %v1706_v60 = vcombine.high %v2427_v30, %v2431_v32  ;;  %v1703_v61 = vcombine.low %v2425_v29, %v2429_v31  ;;  %v422_v1 = vld [vmem:[#allocation16] sm:$0xff]  ;;  %v2668_v19 = vld [vmem:[#allocation12 + $0xb0] sm:$0xff] (%p417_p6)  ;;  %v2670_v20 = vld [vmem:[#allocation12 + $0xb8] sm:$0xff] (%p417_p6) }
 0x17a   : > { %598 = vmatprep.subr.bf16.mxu0 %v1688_v2  ;;  %639 = vmatprep.subr.bf16.mxu1 %v1690_v4  ;;  %v1708_v62 = vcombine.high %v2433_v33, %v2437_v35  ;;  %v1705_v63 = vcombine.low %v2427_v30, %v2431_v32  ;;  %v1710_v53 = vcombine.high %v2435_v34, %v2439_v36  ;;  %v429_v4 = vld [vmem:[%s428_s5] sm:$0xff]  ;;  %v2658_v14 = vld [vmem:[#allocation12 + $0x88] sm:$0xff] (%p417_p6)  ;;  %v2676_v23 = vld [vmem:[#allocation12 + $0xd0] sm:$0xff] (%p417_p6) }
 0x17b   : > { %v1707_v57 = vcombine.low %v2433_v33, %v2437_v35  ;;  %v1709_v2 = vcombine.low %v2435_v34, %v2439_v36  ;;  %v433_v3 = vpack.c.bf16 %v422_v1, %v422_v1  ;;  %v2664_v17 = vld [vmem:[#allocation12 + $0xa0] sm:$0xff] (%p417_p6)  ;;  %v2666_v18 = vld [vmem:[#allocation12 + $0xa8] sm:$0xff] (%p417_p6)  ;;  %v2678_v24 = vld [vmem:[#allocation12 + $0xd8] sm:$0xff] (%p417_p6) }
 0x17c   :  { %v2672_v21 = vld [vmem:[#allocation12 + $0xc0] sm:$0xff] (%p417_p6)  ;;  %v2674_v22 = vld [vmem:[#allocation12 + $0xc8] sm:$0xff] (%p417_p6)  ;;  %v2684_v27 = vld [vmem:[#allocation12 + $0xf0] sm:$0xff] (%p417_p6) }
 0x17d   : > { %599 = vmatpush1.bf16.msra.mxu0 %v1687_v38  ;;  %640 = vmatpush1.bf16.msra.mxu1 %v1689_v40  ;;  %v2680_v25 = vld [vmem:[#allocation12 + $0xe0] sm:$0xff] (%p417_p6)  ;;  %v2682_v26 = vld [vmem:[#allocation12 + $0xe8] sm:$0xff] (%p417_p6)  ;;  %v2686_v28 = vld [vmem:[#allocation12 + $0xf8] sm:$0xff] (%p417_p6) }
 0x17e   : > { %600 = vmatprep.subr.bf16.mxu0 %v1692_v39  ;;  %641 = vmatprep.subr.bf16.mxu1 %v1694_v41  ;;  %v1901_v29 = vld [vmem:[#allocation10 + $0x4] ss:$16 sps:$4 sm:$0xff] (%p417_p6)   ;;  %v1903_v30 = vld [vmem:[#allocation10 + $0xc] ss:$16 sps:$4 sm:$0xff] (%p417_p6)   ;;  %v1905_v31 = vld [vmem:[#allocation10] ss:$16 sps:$4 sm:$0xff] (%p417_p6)  }
 0x17f   :  { %v1906_v32 = vld [vmem:[#allocation10 + $0x8] ss:$16 sps:$4 sm:$0xff] (%p417_p6)   ;;  %v1907_v33 = vld [vmem:[#allocation10 + $0x24] ss:$16 sps:$4 sm:$0xff] (%p417_p6)   ;;  %v1909_v34 = vld [vmem:[#allocation10 + $0x2c] ss:$16 sps:$4 sm:$0xff] (%p417_p6)  }
 0x180   :  { %v1911_v35 = vld [vmem:[#allocation10 + $0x20] ss:$16 sps:$4 sm:$0xff] (%p417_p6)   ;;  %v1912_v36 = vld [vmem:[#allocation10 + $0x28] ss:$16 sps:$4 sm:$0xff] (%p417_p6)  }
 0x181   : > { %601 = vmatpush1.bf16.msra.mxu0 %v1691_v42  ;;  %642 = vmatpush1.bf16.msra.mxu1 %v1693_v44 }
 0x182   : > { %602 = vmatprep.subr.bf16.mxu0 %v1696_v43  ;;  %643 = vmatprep.subr.bf16.mxu1 %v1698_v45 }
 0x185   : > { %603 = vmatpush1.bf16.msra.mxu0 %v1695_v46  ;;  %644 = vmatpush1.bf16.msra.mxu1 %v1697_v48 }
 0x186   : > { %604 = vmatprep.subr.bf16.mxu0 %v1700_v47  ;;  %645 = vmatprep.subr.bf16.mxu1 %v1702_v49  ;;  %v431_v49 = vld [vmem:[%s428_s5 + $0x10] sm:$0xff] }
 0x189   : > { %605 = vmatpush1.bf16.msra.mxu0 %v1699_v50  ;;  %646 = vmatpush1.bf16.msra.mxu1 %v1701_v52  ;;  %v432_v52 = vld [vmem:[%s428_s5 + $0x18] sm:$0xff] }
 0x18a   : > { %606 = vmatprep.subr.bf16.mxu0 %v1704_v51  ;;  %647 = vmatprep.subr.bf16.mxu1 %v1706_v60 }
 0x18d   : > { %607 = vmatpush1.bf16.msra.mxu0 %v1703_v61  ;;  %648 = vmatpush1.bf16.msra.mxu1 %v1705_v63 }
 0x18e   : > { %608 = vmatprep.subr.bf16.mxu0 %v1708_v62  ;;  %649 = vmatprep.subr.bf16.mxu1 %v1710_v53 }
 0x191   : > { %609 = vmatpush1.bf16.msra.mxu0 %v1707_v57  ;;  %650 = vmatpush1.bf16.msra.mxu1 %v1709_v2 }
 0x192   :  { %966 = vmatprep.subr.bf16.mxu0 (%p417_p6), %v1901_v29  ;;  %1039 = vmatprep.subr.bf16.mxu1 (%p417_p6), %v1903_v30  ;;  %v1941_v29 = vld [vmem:[#allocation10 + $0xc0] ss:$16 sps:$4 sm:$0xff] (%p417_p6)   ;;  %v1942_v30 = vld [vmem:[#allocation10 + $0xc8] ss:$16 sps:$4 sm:$0xff] (%p417_p6)  }
 0x194   : > { %627 = vmatmul.mubr.bf16.vlgmr.msra.gmra.mrb[0].mxu0 %v433_v3  ;;  %668 = vmatmul.mubr.bf16.vlgmr.msra.gmra.mrb[0].mxu1 %v433_v3  ;;  %v423_v3 = vld [vmem:[#allocation18] sm:$0xff] }
 0x195   :  { %998 = vmatprep.mubr.bf16.mxu0 (%p417_p6), %v2209_v0  ;;  %1071 = vmatprep.mubr.bf16.mxu1 (%p417_p6), %v2209_v0 }
 0x196   :  { %967 = vmatpush1.bf16.msra.mxu0 (%p417_p6), %v1905_v31  ;;  %1040 = vmatpush1.bf16.msra.mxu1 (%p417_p6), %v1906_v32  ;;  %v1943_v31 = vld [vmem:[#allocation10 + $0xe4] ss:$16 sps:$4 sm:$0xff] (%p417_p6)   ;;  %v1945_v32 = vld [vmem:[#allocation10 + $0xec] ss:$16 sps:$4 sm:$0xff] (%p417_p6)  }
 0x197   :  { %968 = vmatprep.subr.bf16.mxu0 (%p417_p6), %v1907_v33  ;;  %1041 = vmatprep.subr.bf16.mxu1 (%p417_p6), %v1909_v34  ;;  %v1947_v33 = vld [vmem:[#allocation10 + $0xe0] ss:$16 sps:$4 sm:$0xff] (%p417_p6)  }
 0x19a   :  { %969 = vmatpush1.bf16.msra.mxu0 (%p417_p6), %v1911_v35  ;;  %1042 = vmatpush1.bf16.msra.mxu1 (%p417_p6), %v1912_v36  ;;  %v1948_v36 = vld [vmem:[#allocation10 + $0xe8] ss:$16 sps:$4 sm:$0xff] (%p417_p6)  }
 0x267   : > { %v628_v38 = vpop.f32.mrb[0].mxu0  ;;  %v669_v41 = vpop.f32.mrb[0].mxu1 }
 0x268   : > { %v676_v39 = vadd.f32 %v628_v38, %v429_v4  ;;  %v630_v40 = vpop.f32.mrb[1].mxu0  ;;  %v671_v44 = vpop.f32.mrb[1].mxu1  ;;  %v678_v51 = vadd.f32 %v669_v41, %v431_v49  ;;  %v2632_v49 = vld [vmem:[#allocation12 + $0x20] sm:$0xff] (%p417_p6) }
 0x269   : > { %v677_v42 = vadd.f32 %v630_v40, %v430_v37  ;;  %v632_v43 = vpop.f32.mrb[2].mxu0  ;;  %v673_v47 = vpop.f32.mrb[2].mxu1  ;;  %v679_v61 = vadd.f32 %v671_v44, %v432_v52  ;;  %v2638_v52 = vld [vmem:[#allocation12 + $0x38] sm:$0xff] (%p417_p6) }
 0x26a   : > { %v1711_v45 = vmul.f32 -1.442695, %v676_v39  ;;  %v633_v46 = vpop.f32.mrb[3].mxu0  ;;  %v674_v50 = vpop.f32.mrb[3].mxu1  ;;  %v1713_v60 = vmul.f32 -1.442695, %v678_v51 }
 0x26b   : > { %v1712_v48 = vmul.f32 -1.442695, %v677_v42  ;;  %v2626_v46 = vld [vmem:[#allocation12 + $0x8] sm:$0xff] (%p417_p6)  ;;  %v2628_v47 = vld [vmem:[#allocation12 + $0x10] sm:$0xff] (%p417_p6) }
 0x26c   : > { %1885 = vpow2.f32 %v1711_v45  ;;  %v2622_v45 = vld [vmem:[#allocation12] sm:$0xff] (%p417_p6)  ;;  %v2634_v50 = vld [vmem:[#allocation12 + $0x28] sm:$0xff] (%p417_p6)  ;;  %v2636_v51 = vld [vmem:[#allocation12 + $0x30] sm:$0xff] (%p417_p6) }
 0x26d   : > { %1887 = vpow2.f32 %v1712_v48  ;;  %v2630_v48 = vld [vmem:[#allocation12 + $0x18] sm:$0xff] (%p417_p6) }
 0x26e   : > { %1889 = vpow2.f32 %v1713_v60  ;;  %v1913_v60 = vld [vmem:[#allocation10 + $0x44] ss:$16 sps:$4 sm:$0xff] (%p417_p6)  }
 0x26f   : > { %1891 = vtanh.f32 %v679_v61  ;;  %v1915_v61 = vld [vmem:[#allocation10 + $0x4c] ss:$16 sps:$4 sm:$0xff] (%p417_p6)   ;;  %970 = vmatprep.subr.bf16.mxu0 (%p417_p6), %v1913_v60 }
 0x270   :  { %1043 = vmatprep.subr.bf16.mxu1 (%p417_p6), %v1915_v61 }
 0x276   : > { %v1886_v62 = vpop.eup %1885 }
 0x277   : > { %v1888_v63 = vpop.eup %1887  ;;  %v689_v53 = vadd.f32 1.0, %v1886_v62  ;;  %v1917_v62 = vld [vmem:[#allocation10 + $0x40] ss:$16 sps:$4 sm:$0xff] (%p417_p6)  }
 0x278   : > { %v690_v57 = vadd.f32 1.0, %v1888_v63  ;;  %v1890_v1 = vpop.eup %1889  ;;  %v1918_v63 = vld [vmem:[#allocation10 + $0x48] ss:$16 sps:$4 sm:$0xff] (%p417_p6)   ;;  %971 = vmatpush1.bf16.msra.mxu0 (%p417_p6), %v1917_v62 }
 0x279   : > { %1893 = vrcp.f32 %v689_v53  ;;  %v1892_v2 = vpop.eup %1891  ;;  %v691_v37 = vadd.f32 1.0, %v1890_v1  ;;  %v1919_v53 = vld [vmem:[#allocation10 + $0x64] ss:$16 sps:$4 sm:$0xff] (%p417_p6)   ;;  %v1923_v1 = vld [vmem:[#allocation10 + $0x60] ss:$16 sps:$4 sm:$0xff] (%p417_p6)   ;;  %1044 = vmatpush1.bf16.msra.mxu1 (%p417_p6), %v1918_v63 }
 0x27a   : > { %1895 = vrcp.f32 %v690_v57  ;;  %v1921_v57 = vld [vmem:[#allocation10 + $0x6c] ss:$16 sps:$4 sm:$0xff] (%p417_p6)   ;;  %972 = vmatprep.subr.bf16.mxu0 (%p417_p6), %v1919_v53 }
 0x27b   : > { %1897 = vrcp.f32 %v691_v37  ;;  %1045 = vmatprep.subr.bf16.mxu1 (%p417_p6), %v1921_v57  ;;  %v1929_v37 = vld [vmem:[#allocation10 + $0x80] ss:$16 sps:$4 sm:$0xff] (%p417_p6)  }
 0x27c   :  { %973 = vmatpush1.bf16.msra.mxu0 (%p417_p6), %v1923_v1 }
 0x283   : > { %v1894_v4 = vpop.eup %1893 }
 0x284   : > { %v1896_v38 = vpop.eup %1895  ;;  %v700_v39 = vmul.f32 %v1894_v4, %v1892_v2  ;;  %v1924_v2 = vld [vmem:[#allocation10 + $0x68] ss:$16 sps:$4 sm:$0xff] (%p417_p6)   ;;  %v1927_v4 = vld [vmem:[#allocation10 + $0x8c] ss:$16 sps:$4 sm:$0xff] (%p417_p6)  }
 0x285   : > { %v699_v40 = vmul.f32 %v1896_v38, %v423_v3  ;;  %v1898_v42 = vpop.eup %1897  ;;  %v1925_v3 = vld [vmem:[#allocation10 + $0x84] ss:$16 sps:$4 sm:$0xff] (%p417_p6)   ;;  %v1930_v38 = vld [vmem:[#allocation10 + $0x88] ss:$16 sps:$4 sm:$0xff] (%p417_p6)   ;;  %1046 = vmatpush1.bf16.msra.mxu1 (%p417_p6), %v1924_v2 }
 0x286   :  { %974 = vmatprep.subr.bf16.mxu0 (%p417_p6), %v1925_v3  ;;  %1047 = vmatprep.subr.bf16.mxu1 (%p417_p6), %v1927_v4 }
 0x287   : > { %v701_v41 = vadd.f32 %v700_v39, %v699_v40  ;;  %v1931_v39 = vld [vmem:[#allocation10 + $0xa4] ss:$16 sps:$4 sm:$0xff] (%p417_p6)   ;;  %v1933_v40 = vld [vmem:[#allocation10 + $0xac] ss:$16 sps:$4 sm:$0xff] (%p417_p6)   ;;  %975 = vmatpush1.bf16.msra.mxu0 (%p417_p6), %v1929_v37  ;;  %v772_v37 = vld [vmem:[#allocation13] sm:$0xf] (%p417_p6) }
 0x288   :  { %976 = vmatprep.subr.bf16.mxu0 (%p417_p6), %v1931_v39  ;;  %v2700_v39 = vrot.slane (%p417_p6), %v772_v37, %v194_v56 }
 0x289   : > { %1899 = vtanh.f32 %v701_v41  ;;  %707 = vst [vmem:[#allocation18] sm:$0xff] %v701_v41  ;;  %v1935_v41 = vld [vmem:[#allocation10 + $0xa0] ss:$16 sps:$4 sm:$0xff] (%p417_p6)   ;;  %1048 = vmatpush1.bf16.msra.mxu1 (%p417_p6), %v1930_v38  ;;  %v2696_v38 = vrot.slane (%p417_p6), %v772_v37, %v186_v55 }
 0x28a   :  { %1049 = vmatprep.subr.bf16.mxu1 (%p417_p6), %v1933_v40  ;;  %v2704_v40 = vrot.slane (%p417_p6), %v772_v37, %v190_v58 }
 0x28b   :  { %977 = vmatpush1.bf16.msra.mxu0 (%p417_p6), %v1935_v41  ;;  %v2708_v41 = vrot.slane (%p417_p6), %v772_v37, %v198_v59 }
 0x290   :  { %419 = sbr.rel (!%p417_p6) target bundleno = 370 (0x172), region = 128 }
 0x293   : > { %v1900_v43 = vpop.eup %1899 }
 0x294   : > { %v703_v44 = vmul.f32 %v1900_v43, %v1898_v42  ;;  %v1936_v42 = vld [vmem:[#allocation10 + $0xa8] ss:$16 sps:$4 sm:$0xff] (%p417_p6)   ;;  %v1937_v43 = vld [vmem:[#allocation10 + $0xc4] ss:$16 sps:$4 sm:$0xff] (%p417_p6)  }
 0x295   :  { %1050 = vmatpush1.bf16.msra.mxu1 (%p417_p6), %v1936_v42  ;;  %978 = vmatprep.subr.bf16.mxu0 (%p417_p6), %v1937_v43 }
 0x296   : > { %705 = vst [vmem:[%s704_s4] sm:$0xff] %v703_v44  ;;  %706 = vst [vmem:[#allocation16] sm:$0xff] %v703_v44  ;;  %v1939_v44 = vld [vmem:[#allocation10 + $0xcc] ss:$16 sps:$4 sm:$0xff] (%p417_p6)   ;;  %979 = vmatpush1.bf16.msra.mxu0 (%p417_p6), %v1941_v29 }
 0x297   :  { %1051 = vmatprep.subr.bf16.mxu1 %v1939_v44  ;;  %980 = vmatprep.subr.bf16.mxu0 %v1943_v31 }
 0x299   :  { %1052 = vmatpush1.bf16.msra.mxu1 %v1942_v30 }
 0x29a   :  { %1053 = vmatprep.subr.bf16.mxu1 %v1945_v32  ;;  %981 = vmatpush1.bf16.msra.mxu0 %v1947_v33 }
 0x29d   :  { %v773_v34 = vld [vmem:[#allocation3] sm:$0xff]  ;;  %v774_v35 = vld [vmem:[#allocation3 + $0x8] sm:$0xff]  ;;  %1054 = vmatpush1.bf16.msra.mxu1 %v1948_v36  ;;  %v775_v61 = vld [vmem:[#allocation3 + $0x10] sm:$0xff] }
 0x29e   :  { %v781_v60 = vpack.c.bf16 %v774_v35, %v773_v34  ;;  %v776_v62 = vld [vmem:[#allocation3 + $0x18] sm:$0xff]  ;;  %v777_v53 = vld [vmem:[#allocation3 + $0x20] sm:$0xff]  ;;  %v778_v57 = vld [vmem:[#allocation3 + $0x28] sm:$0xff] }
 0x29f   :  { %v782_v63 = vpack.c.bf16 %v776_v62, %v775_v61  ;;  %v783_v1 = vpack.c.bf16 %v778_v57, %v777_v53  ;;  %v779_v2 = vld [vmem:[#allocation3 + $0x30] sm:$0xff]  ;;  %v780_v3 = vld [vmem:[#allocation3 + $0x38] sm:$0xff] }
 0x2a0   :  { %999 = vmatmul.mubr.bf16.vlgmr.msra.gmra.mrb[0].mxu0 %v781_v60  ;;  %1072 = vmatmul.mubr.bf16.vlgmr.msra.gmra.mrb[0].mxu1 %v781_v60  ;;  %v784_v4 = vpack.c.bf16 %v780_v3, %v779_v2 }
 0x2a1   :  { %1008 = vmatprep.mubr.bf16.mxu0 %v2209_v0  ;;  %1081 = vmatprep.mubr.bf16.mxu1 %v2209_v0 }
 0x2a8   :  { %1009 = vmatmul.mubr.bf16.gmra.mrb[4].mxu0 %v782_v63  ;;  %1082 = vmatmul.mubr.bf16.gmra.mrb[4].mxu1 %v782_v63 }
 0x2a9   :  { %1018 = vmatprep.mubr.bf16.mxu0 %v2209_v0  ;;  %1091 = vmatprep.mubr.bf16.mxu1 %v2209_v0 }
 0x2b0   :  { %1019 = vmatmul.mubr.bf16.gmra.mrb[8].mxu0 %v783_v1  ;;  %1092 = vmatmul.mubr.bf16.gmra.mrb[8].mxu1 %v783_v1 }
 0x2b1   :  { %1028 = vmatprep.mubr.bf16.mxu0 %v2209_v0  ;;  %1101 = vmatprep.mubr.bf16.mxu1 %v2209_v0 }
 0x2b8   :  { %1029 = vmatmul.mubr.bf16.gmra.mrb[12].mxu0 %v784_v4  ;;  %1102 = vmatmul.mubr.bf16.gmra.mrb[12].mxu1 %v784_v4 }
 0x373   :  { %v1000_v0 = vpop.f32.mrb[0].mxu0  ;;  %v1073_v43 = vpop.f32.mrb[0].mxu1 }
 0x374   :  { %v1001_v42 = vadd.f32 %v1000_v0, %v2696_v38  ;;  %v1002_v44 = vpop.f32.mrb[1].mxu0  ;;  %v1074_v55 = vadd.f32 %v1073_v43, %v2700_v39  ;;  %v1075_v30 = vpop.f32.mrb[1].mxu1 }
 0x375   :  { %v1003_v29 = vadd.f32 %v1002_v44, %v2704_v40  ;;  %v1004_v56 = vpop.f32.mrb[2].mxu0  ;;  %v1076_v31 = vadd.f32 %v1075_v30, %v2708_v41  ;;  %v1077_v32 = vpop.f32.mrb[2].mxu1 }
 0x376   :  { %1112 = vst [vmem:[#allocation2] sm:$0xff] %v1001_v42  ;;  %v1005_v58 = vadd.f32 %v1004_v56, %v2696_v38  ;;  %v1006_v54 = vpop.f32.mrb[3].mxu0  ;;  %1114 = vst [vmem:[#allocation2 + $0x10] sm:$0xff] %v1074_v55  ;;  %v1078_v59 = vadd.f32 %v1077_v32, %v2700_v39  ;;  %v1079_v34 = vpop.f32.mrb[3].mxu1 }
 0x377   :  { %1113 = vst [vmem:[#allocation2 + $0x8] sm:$0xff] %v1003_v29  ;;  %v1007_v33 = vadd.f32 %v1006_v54, %v2704_v40  ;;  %1115 = vst [vmem:[#allocation2 + $0x18] sm:$0xff] %v1076_v31  ;;  %v1080_v35 = vadd.f32 %v1079_v34, %v2708_v41 }
 0x378   :  { %1116 = vst [vmem:[#allocation2 + $0x20] sm:$0xff] %v1005_v58  ;;  %1118 = vst [vmem:[#allocation2 + $0x30] sm:$0xff] %v1078_v59 }
 0x379   :  { %1117 = vst [vmem:[#allocation2 + $0x28] sm:$0xff] %v1007_v33  ;;  %1119 = vst [vmem:[#allocation2 + $0x38] sm:$0xff] %v1080_v35 }
 0x37b   :  { %v1010_v36 = vpop.f32.mrb[4].mxu0  ;;  %v1083_v61 = vpop.f32.mrb[4].mxu1 }
 0x37c   :  { %v1011_v60 = vadd.f32 %v1010_v36, %v2696_v38  ;;  %v1012_v62 = vpop.f32.mrb[5].mxu0  ;;  %v1084_v63 = vadd.f32 %v1083_v61, %v2700_v39  ;;  %v1085_v57 = vpop.f32.mrb[5].mxu1 }
 0x37d   :  { %v1013_v53 = vadd.f32 %v1012_v62, %v2704_v40  ;;  %v1014_v1 = vpop.f32.mrb[6].mxu0  ;;  %v1086_v2 = vadd.f32 %v1085_v57, %v2708_v41  ;;  %v1087_v4 = vpop.f32.mrb[6].mxu1 }
 0x37e   :  { %1120 = vst [vmem:[#allocation2 + $0x40] sm:$0xff] %v1011_v60  ;;  %v1015_v3 = vadd.f32 %v1014_v1, %v2696_v38  ;;  %v1016_v37 = vpop.f32.mrb[7].mxu0  ;;  %1122 = vst [vmem:[#allocation2 + $0x50] sm:$0xff] %v1084_v63  ;;  %v1088_v0 = vadd.f32 %v1087_v4, %v2700_v39  ;;  %v1089_v43 = vpop.f32.mrb[7].mxu1 }
 0x37f   :  { %1121 = vst [vmem:[#allocation2 + $0x48] sm:$0xff] %v1013_v53  ;;  %v1017_v42 = vadd.f32 %v1016_v37, %v2704_v40  ;;  %1123 = vst [vmem:[#allocation2 + $0x58] sm:$0xff] %v1086_v2  ;;  %v1090_v44 = vadd.f32 %v1089_v43, %v2708_v41 }
 0x380   :  { %1124 = vst [vmem:[#allocation2 + $0x60] sm:$0xff] %v1015_v3  ;;  %1126 = vst [vmem:[#allocation2 + $0x70] sm:$0xff] %v1088_v0 }
 0x381   :  { %1125 = vst [vmem:[#allocation2 + $0x68] sm:$0xff] %v1017_v42  ;;  %1127 = vst [vmem:[#allocation2 + $0x78] sm:$0xff] %v1090_v44 }
 0x383   :  { %v1020_v55 = vpop.f32.mrb[8].mxu0  ;;  %v1093_v30 = vpop.f32.mrb[8].mxu1 }
 0x384   :  { %v1021_v29 = vadd.f32 %v1020_v55, %v2696_v38  ;;  %v1022_v56 = vpop.f32.mrb[9].mxu0  ;;  %v1094_v31 = vadd.f32 %v1093_v30, %v2700_v39  ;;  %v1095_v32 = vpop.f32.mrb[9].mxu1 }
 0x385   :  { %v1023_v58 = vadd.f32 %v1022_v56, %v2704_v40  ;;  %v1024_v54 = vpop.f32.mrb[10].mxu0  ;;  %v1096_v59 = vadd.f32 %v1095_v32, %v2708_v41  ;;  %v1097_v34 = vpop.f32.mrb[10].mxu1 }
 0x386   :  { %1128 = vst [vmem:[#allocation2 + $0x80] sm:$0xff] %v1021_v29  ;;  %v1025_v33 = vadd.f32 %v1024_v54, %v2696_v38  ;;  %v1026_v35 = vpop.f32.mrb[11].mxu0  ;;  %1130 = vst [vmem:[#allocation2 + $0x90] sm:$0xff] %v1094_v31  ;;  %v1098_v36 = vadd.f32 %v1097_v34, %v2700_v39  ;;  %v1099_v61 = vpop.f32.mrb[11].mxu1 }
 0x387   :  { %1129 = vst [vmem:[#allocation2 + $0x88] sm:$0xff] %v1023_v58  ;;  %v1027_v60 = vadd.f32 %v1026_v35, %v2704_v40  ;;  %1131 = vst [vmem:[#allocation2 + $0x98] sm:$0xff] %v1096_v59  ;;  %v1100_v62 = vadd.f32 %v1099_v61, %v2708_v41 }
 0x388   :  { %1132 = vst [vmem:[#allocation2 + $0xa0] sm:$0xff] %v1025_v33  ;;  %1134 = vst [vmem:[#allocation2 + $0xb0] sm:$0xff] %v1098_v36 }
 0x389   :  { %1133 = vst [vmem:[#allocation2 + $0xa8] sm:$0xff] %v1027_v60  ;;  %1135 = vst [vmem:[#allocation2 + $0xb8] sm:$0xff] %v1100_v62 }
 0x38b   :  { %v1030_v63 = vpop.f32.mrb[12].mxu0  ;;  %v1103_v57 = vpop.f32.mrb[12].mxu1 }
 0x38c   :  { %v1031_v53 = vadd.f32 %v1030_v63, %v2696_v38  ;;  %v1032_v1 = vpop.f32.mrb[13].mxu0  ;;  %v1104_v2 = vadd.f32 %v1103_v57, %v2700_v39  ;;  %v1105_v4 = vpop.f32.mrb[13].mxu1 }
 0x38d   :  { %v1033_v3 = vadd.f32 %v1032_v1, %v2704_v40  ;;  %v1034_v37 = vpop.f32.mrb[14].mxu0  ;;  %v1106_v0 = vadd.f32 %v1105_v4, %v2708_v41  ;;  %v1107_v43 = vpop.f32.mrb[14].mxu1 }
 0x38e   :  { %1136 = vst [vmem:[#allocation2 + $0xc0] sm:$0xff] %v1031_v53  ;;  %v1035_v42 = vadd.f32 %v1034_v37, %v2696_v38  ;;  %v1036_v44 = vpop.f32.mrb[15].mxu0  ;;  %1138 = vst [vmem:[#allocation2 + $0xd0] sm:$0xff] %v1104_v2  ;;  %v1108_v55 = vadd.f32 %v1107_v43, %v2700_v39  ;;  %v1109_v30 = vpop.f32.mrb[15].mxu1 }
 0x38f   :  { %1137 = vst [vmem:[#allocation2 + $0xc8] sm:$0xff] %v1033_v3  ;;  %v1037_v29 = vadd.f32 %v1036_v44, %v2704_v40  ;;  %1139 = vst [vmem:[#allocation2 + $0xd8] sm:$0xff] %v1106_v0  ;;  %v1110_v56 = vadd.f32 %v1109_v30, %v2708_v41 }
 0x390   :  { %1140 = vst [vmem:[#allocation2 + $0xe0] sm:$0xff] %v1035_v42  ;;  %1142 = vst [vmem:[#allocation2 + $0xf0] sm:$0xff] %v1108_v55 }
 0x391   :  { %1141 = vst [vmem:[#allocation2 + $0xe8] sm:$0xff] %v1037_v29  ;;  %1143 = vst [vmem:[#allocation2 + $0xf8] sm:$0xff] %v1110_v56 }
 0x392 LB: > { %v1750_v38 = vcombine.high %v2622_v45, %v2628_v47  ;;  %v1749_v39 = vcombine.low %v2622_v45, %v2628_v47  ;;  %v1754_v40 = vcombine.high %v2632_v49, %v2636_v51  ;;  %v1752_v41 = vcombine.high %v2626_v46, %v2630_v48  ;;  %s1746_s28 = sshll.u32 %s2197_s27, 3  ;;  %s1149_s27 = sadd.s32 1, %s2197_s27   ;;  %s2197_s27 = sphi %s2742_s27, %s1149_s27  }
 0x393   : > { %v1751_v31 = vcombine.low %v2626_v46, %v2630_v48  ;;  %v1756_v58 = vcombine.high %v2634_v50, %v2638_v52  ;;  %v1753_v32 = vcombine.low %v2632_v49, %v2636_v51  ;;  %v1758_v54 = vcombine.high %v2640_v5, %v2644_v7  ;;  %s1155_s29 = sshra.s32 %s1746_s28, 3  ;;  %s1435_s30 = scalar_lea.vmem [#allocation3], %s1746_s28 }
 0x394   : > { %1325 = vmatprep.subr.bf16.mxu0 %v1750_v38  ;;  %1366 = vmatprep.subr.bf16.mxu1 %v1752_v41  ;;  %v1755_v59 = vcombine.low %v2634_v50, %v2638_v52  ;;  %v1760_v33 = vcombine.high %v2642_v6, %v2646_v8  ;;  %v2211_v34 = vmov 0   ;;  %v1757_v35 = vcombine.low %v2640_v5, %v2644_v7  ;;  %v1152_v38 = vld [vmem:[#allocation16 + $0x8] sm:$0xff]  ;;  %s1794_s2 = sshll.u32 %s1155_s29, 5  ;;  %p1146_p7 = scmp.ge.s32.totalorder %s1149_s27, 8  }
 0x395   : > { %1326 = vmatpush1.bf16.msra.mxu0 %v1749_v39  ;;  %1367 = vmatpush1.bf16.msra.mxu1 %v1751_v31  ;;  %v1762_v36 = vcombine.high %v2648_v9, %v2652_v11  ;;  %v1759_v60 = vcombine.low %v2642_v6, %v2646_v8  ;;  %v1764_v61 = vcombine.high %v2650_v10, %v2654_v12  ;;  %s1159_s25 = scalar_lea.vmem [#allocation2], %s1794_s2  ;;  %v1968_v45 = vld [vmem:[%s2900_s9 + $0x18] sm:$0xff] (%p1146_p7)   ;;  %v1969_v52 = vld [vmem:[%s2900_s9 + $0x20] sm:$0xff] (%p1146_p7)   ;;  %v1970_v5 = vld [vmem:[%s2900_s9 + $0x28] sm:$0xff] (%p1146_p7)   ;;  %s2212_s5 = smov (%p1146_p7), [#allocation16]  }
 0x396   : > { %1327 = vmatprep.subr.bf16.mxu0 %v1754_v40  ;;  %1368 = vmatprep.subr.bf16.mxu1 %v1756_v58  ;;  %v1761_v62 = vcombine.low %v2648_v9, %v2652_v11  ;;  %v1766_v63 = vcombine.high %v2656_v13, %v2660_v15  ;;  %v1763_v53 = vcombine.low %v2650_v10, %v2654_v12  ;;  %v1971_v6 = vld [vmem:[%s2900_s9 + $0x30] sm:$0xff] (%p1146_p7)   ;;  %v1972_v7 = vld [vmem:[%s2900_s9 + $0x38] sm:$0xff] (%p1146_p7)   ;;  %s1612_s4 = sshll.u32 (%p1146_p7), %s2212_s5, 4  ;;  %s1613_s4 = int_to_ptr.vmem [resolvable:$true] %s1612_s4 }
 0x397   : > { %1357 = vmatprep.mubr.bf16.mxu0 %v2211_v34  ;;  %1398 = vmatprep.mubr.bf16.mxu1 %v2211_v34  ;;  %v1768_v57 = vcombine.high %v2658_v14, %v2662_v16  ;;  %v1765_v1 = vcombine.low %v2656_v13, %v2660_v15  ;;  %v1770_v2 = vcombine.high %v2664_v17, %v2668_v19  ;;  %s2105_s27 = scalar_lea.vmem (%p1146_p7), %s1613_s4, 256  ;;  %p2110_p9 = scmp.lt.s32.totalorder (%p1146_p7), %s1613_s4, %s1613_s4 }
 0x398   : > { %v1767_v3 = vcombine.low %v2658_v14, %v2662_v16  ;;  %v1772_v4 = vcombine.high %v2666_v18, %v2670_v20  ;;  %v1769_v37 = vcombine.low %v2664_v17, %v2668_v19  ;;  %v1774_v0 = vcombine.high %v2672_v21, %v2676_v23  ;;  %v1160_v41 = vld [vmem:[%s1159_s25] sm:$0xff]  ;;  %v1161_v31 = vld [vmem:[%s1159_s25 + $0x8] sm:$0xff]  ;;  %p2106_p8 = scmp.ne.s32.totalorder (%p1146_p7), %s1613_s4, %s2105_s27  ;;  %p2111_p10 = scmp.lt.s32.totalorder (%p1146_p7), %s2105_s27, %s2105_s27 }
 0x399   : > { %1328 = vmatpush1.bf16.msra.mxu0 %v1753_v32  ;;  %1369 = vmatpush1.bf16.msra.mxu1 %v1755_v59  ;;  %v1771_v42 = vcombine.low %v2666_v18, %v2670_v20  ;;  %v1776_v43 = vcombine.high %v2674_v22, %v2678_v24  ;;  %v1773_v44 = vcombine.low %v2672_v21, %v2676_v23 }
 0x39a   : > { %1329 = vmatprep.subr.bf16.mxu0 %v1758_v54  ;;  %1370 = vmatprep.subr.bf16.mxu1 %v1760_v33  ;;  %v1778_v55 = vcombine.high %v2680_v25, %v2684_v27  ;;  %v1775_v29 = vcombine.low %v2674_v22, %v2678_v24  ;;  %v1780_v30 = vcombine.high %v2682_v26, %v2686_v28  ;;  %p2112_p11 = por (%p1146_p7), %p2111_p10, %p2110_p9 }
 0x39b   : > { %v1777_v56 = vcombine.low %v2680_v25, %v2684_v27  ;;  %v1779_v39 = vcombine.low %v2682_v26, %v2686_v28  ;;  %v1164_v40 = vpack.c.bf16 %v1152_v38, %v1152_v38 }
 0x39c   :  { %p2113_p12 = pnand (%p1146_p7), %p2112_p11, %p2106_p8 }
 0x39d   : > { %1330 = vmatpush1.bf16.msra.mxu0 %v1757_v35  ;;  %1371 = vmatpush1.bf16.msra.mxu1 %v1759_v60 }
 0x39e   : > { %1331 = vmatprep.subr.bf16.mxu0 %v1762_v36  ;;  %1372 = vmatprep.subr.bf16.mxu1 %v1764_v61 }
 0x3a1   : > { %1332 = vmatpush1.bf16.msra.mxu0 %v1761_v62  ;;  %1373 = vmatpush1.bf16.msra.mxu1 %v1763_v53 }
 0x3a2   : > { %1333 = vmatprep.subr.bf16.mxu0 %v1766_v63  ;;  %1374 = vmatprep.subr.bf16.mxu1 %v1768_v57  ;;  %v1162_v63 = vld [vmem:[%s1159_s25 + $0x10] sm:$0xff] }
 0x3a5   : > { %1334 = vmatpush1.bf16.msra.mxu0 %v1765_v1  ;;  %1375 = vmatpush1.bf16.msra.mxu1 %v1767_v3  ;;  %v1163_v1 = vld [vmem:[%s1159_s25 + $0x18] sm:$0xff] }
 0x3a6   : > { %1335 = vmatprep.subr.bf16.mxu0 %v1770_v2  ;;  %1376 = vmatprep.subr.bf16.mxu1 %v1772_v4 }
 0x3a9   : > { %1336 = vmatpush1.bf16.msra.mxu0 %v1769_v37  ;;  %1377 = vmatpush1.bf16.msra.mxu1 %v1771_v42 }
 0x3aa   : > { %1337 = vmatprep.subr.bf16.mxu0 %v1774_v0  ;;  %1378 = vmatprep.subr.bf16.mxu1 %v1776_v43 }
 0x3ad   : > { %1338 = vmatpush1.bf16.msra.mxu0 %v1773_v44  ;;  %1379 = vmatpush1.bf16.msra.mxu1 %v1775_v29 }
 0x3ae   : > { %1339 = vmatprep.subr.bf16.mxu0 %v1778_v55  ;;  %1380 = vmatprep.subr.bf16.mxu1 %v1780_v30  ;;  %v1154_v55 = vld [vmem:[#allocation18 + $0x8] sm:$0xff] }
 0x3b1   : > { %1340 = vmatpush1.bf16.msra.mxu0 %v1777_v56  ;;  %1381 = vmatpush1.bf16.msra.mxu1 %v1779_v39 }
 0x3b4   : > { %1358 = vmatmul.mubr.bf16.vlgmr.msra.gmra.mrb[0].mxu0 %v1164_v40  ;;  %1399 = vmatmul.mubr.bf16.vlgmr.msra.gmra.mrb[0].mxu1 %v1164_v40 }
 0x487   : > { %v1359_v58 = vpop.f32.mrb[0].mxu0  ;;  %v1400_v59 = vpop.f32.mrb[0].mxu1 }
 0x488   : > { %v1407_v32 = vadd.f32 %v1359_v58, %v1160_v41  ;;  %v1361_v54 = vpop.f32.mrb[1].mxu0  ;;  %v1402_v35 = vpop.f32.mrb[1].mxu1  ;;  %v1409_v57 = vadd.f32 %v1400_v59, %v1162_v63  ;;  %v1967_v59 = vld [vmem:[%s2900_s9 + $0x10] sm:$0xff] (%p1146_p7)  }
 0x489   : > { %v1408_v33 = vadd.f32 %v1361_v54, %v1161_v31  ;;  %v1363_v34 = vpop.f32.mrb[2].mxu0  ;;  %v1404_v61 = vpop.f32.mrb[2].mxu1  ;;  %v1410_v3 = vadd.f32 %v1402_v35, %v1163_v1  ;;  %v1966_v54 = vld [vmem:[%s2900_s9 + $0x8] sm:$0xff] (%p1146_p7)  }
 0x48a   : > { %v1781_v36 = vmul.f32 -1.442695, %v1407_v32  ;;  %v1364_v60 = vpop.f32.mrb[3].mxu0  ;;  %v1405_v53 = vpop.f32.mrb[3].mxu1  ;;  %v1783_v2 = vmul.f32 -1.442695, %v1409_v57 }
 0x48b   : > { %v1782_v62 = vmul.f32 -1.442695, %v1408_v33  ;;  %v1965_v32 = vld [vmem:[%s2900_s9] sm:$0xff] (%p1146_p7)  }
 0x48c   : > { %1949 = vpow2.f32 %v1781_v36  ;;  %1807 = vmatprep.subr.bf16.mxu0 (%p1146_p7), %v1965_v32  ;;  %1831 = vmatprep.subr.bf16.mxu1 (%p1146_p7), %v1965_v32 }
 0x48d   : > { %1951 = vpow2.f32 %v1782_v62  ;;  %1808 = vmatpush3.bf16.msra.mxu0 (%p1146_p7), %v1965_v32  ;;  %1839 = vmatpush3.bf16.msra.mxu1 (%p1146_p7), %v1965_v32 }
 0x48e   : > { %1953 = vpow2.f32 %v1783_v2  ;;  %1809 = vmatprep.subr.bf16.mxu0 (%p1146_p7), %v1966_v54  ;;  %1832 = vmatprep.subr.bf16.mxu1 (%p1146_p7), %v1966_v54 }
 0x48f   : > { %1955 = vtanh.f32 %v1410_v3 }
 0x491   :  { %1810 = vmatpush3.bf16.msra.mxu0 (%p1146_p7), %v1966_v54  ;;  %1840 = vmatpush3.bf16.msra.mxu1 (%p1146_p7), %v1966_v54 }
 0x492   :  { %1811 = vmatprep.subr.bf16.mxu0 (%p1146_p7), %v1967_v59  ;;  %1833 = vmatprep.subr.bf16.mxu1 (%p1146_p7), %v1967_v59 }
 0x495   :  { %1812 = vmatpush3.bf16.msra.mxu0 (%p1146_p7), %v1967_v59  ;;  %1841 = vmatpush3.bf16.msra.mxu1 (%p1146_p7), %v1967_v59 }
 0x496   : > { %v1950_v4 = vpop.eup %1949  ;;  %1813 = vmatprep.subr.bf16.mxu0 (%p1146_p7), %v1968_v45  ;;  %1834 = vmatprep.subr.bf16.mxu1 (%p1146_p7), %v1968_v45 }
 0x497   : > { %v1952_v37 = vpop.eup %1951  ;;  %v1420_v0 = vadd.f32 1.0, %v1950_v4 }
 0x498   : > { %v1421_v42 = vadd.f32 1.0, %v1952_v37  ;;  %v1954_v43 = vpop.eup %1953 }
 0x499   : > { %1957 = vrcp.f32 %v1420_v0  ;;  %v1956_v44 = vpop.eup %1955  ;;  %v1422_v30 = vadd.f32 1.0, %v1954_v43  ;;  %1814 = vmatpush3.bf16.msra.mxu0 (%p1146_p7), %v1968_v45  ;;  %1842 = vmatpush3.bf16.msra.mxu1 (%p1146_p7), %v1968_v45 }
 0x49a   : > { %1959 = vrcp.f32 %v1421_v42  ;;  %1815 = vmatprep.subr.bf16.mxu0 (%p1146_p7), %v1969_v52  ;;  %1835 = vmatprep.subr.bf16.mxu1 (%p1146_p7), %v1969_v52 }
 0x49b   : > { %1961 = vrcp.f32 %v1422_v30 }
 0x49d   :  { %1816 = vmatpush3.bf16.msra.mxu0 (%p1146_p7), %v1969_v52  ;;  %1843 = vmatpush3.bf16.msra.mxu1 (%p1146_p7), %v1969_v52 }
 0x49e   :  { %1817 = vmatprep.subr.bf16.mxu0 (%p1146_p7), %v1970_v5  ;;  %1836 = vmatprep.subr.bf16.mxu1 (%p1146_p7), %v1970_v5 }
 0x4a1   :  { %1818 = vmatpush3.bf16.msra.mxu0 (%p1146_p7), %v1970_v5  ;;  %1844 = vmatpush3.bf16.msra.mxu1 (%p1146_p7), %v1970_v5 }
 0x4a2   :  { %1819 = vmatprep.subr.bf16.mxu0 (%p1146_p7), %v1971_v6  ;;  %1837 = vmatprep.subr.bf16.mxu1 (%p1146_p7), %v1971_v6 }
 0x4a3   : > { %v1958_v29 = vpop.eup %1957 }
 0x4a4   : > { %v1960_v56 = vpop.eup %1959  ;;  %v1431_v38 = vmul.f32 %v1958_v29, %v1956_v44 }
 0x4a5   : > { %v1430_v39 = vmul.f32 %v1960_v56, %v1154_v55  ;;  %v1962_v41 = vpop.eup %1961  ;;  %1820 = vmatpush3.bf16.msra.mxu0 (%p1146_p7), %v1971_v6  ;;  %1845 = vmatpush3.bf16.msra.mxu1 (%p1146_p7), %v1971_v6 }
 0x4a6   :  { %1821 = vmatprep.subr.bf16.mxu0 (%p1146_p7), %v1972_v7  ;;  %1838 = vmatprep.subr.bf16.mxu1 (%p1146_p7), %v1972_v7 }
 0x4a7   : > { %v1432_v40 = vadd.f32 %v1431_v38, %v1430_v39 }
 0x4a9   : > { %1963 = vtanh.f32 %v1432_v40  ;;  %1438 = vst [vmem:[#allocation18 + $0x8] sm:$0xff] %v1432_v40  ;;  %1822 = vmatpush3.bf16.msra.mxu0 (%p1146_p7), %v1972_v7  ;;  %1846 = vmatpush3.bf16.msra.mxu1 (%p1146_p7), %v1972_v7 }
 0x4b0   :  { %1148 = sbr.rel (!%p1146_p7) target bundleno = 914 (0x392), region = 139 }
 0x4b3   : > { %v1964_v31 = vpop.eup %1963 }
 0x4b4   : > { %v1434_v58 = vmul.f32 %v1964_v31, %v1962_v41 }
 0x4b6   : > { %1436 = vst [vmem:[%s1435_s30] sm:$0xff] %v1434_v58  ;;  %1437 = vst [vmem:[#allocation16 + $0x8] sm:$0xff] %v1434_v58 }
 0x4bd   :  { %v1439_v46 = vld [vmem:[#allocation3] sm:$0xff]  ;;  %v1440_v47 = vld [vmem:[#allocation3 + $0x8] sm:$0xff]  ;;  %v1441_v8 = vld [vmem:[#allocation3 + $0x10] sm:$0xff] }
 0x4be   :  { %v1443_v48 = vld [vmem:[#allocation3 + $0x20] sm:$0xff]  ;;  %v1447_v49 = vpack.c.bf16 %v1440_v47, %v1439_v46  ;;  %v1444_v50 = vld [vmem:[#allocation3 + $0x28] sm:$0xff]  ;;  %v1442_v9 = vld [vmem:[#allocation3 + $0x18] sm:$0xff] }
 0x4bf   :  { %v1449_v51 = vpack.c.bf16 %v1444_v50, %v1443_v48  ;;  %v1445_v10 = vld [vmem:[#allocation3 + $0x30] sm:$0xff]  ;;  %v1446_v11 = vld [vmem:[#allocation3 + $0x38] sm:$0xff]  ;;  %v1448_v12 = vpack.c.bf16 %v1442_v9, %v1441_v8 }
 0x4c0   :  { %1823 = vmatprep.mubr.bf16.mxu0 %v1447_v49  ;;  %v1450_v13 = vpack.c.bf16 %v1446_v11, %v1445_v10 }
 0x4c1   :  { %1827 = vmatprep.mubr.bf16.mxu1 %v1449_v51  ;;  %1824 = vmatmul.mubr.bf16.vlgmr.msra.gmra.mrb[0].mxu0 %v1448_v12 }
 0x4c2   :  { %1828 = vmatmul.mubr.bf16.vlgmr.msra.gmra.mrb[0].mxu1 %v1450_v13 }
 0x4c3   :  { %2116 = shalt.err (!%p2113_p12)
}
 0x4c4   :  { %s2117_s29 = scalar_lea.hbm %s2903_s12, 256 }
 0x4c5   :  { %p2118_p13 = scmp.ne.s32.totalorder %s2903_s12, %s2117_s29  ;;  %p2121_p0 = scmp.lt.u32.totalorder %s2117_s29, %s2903_s12 }
 0x4c7   :  { %p2123_p1 = pnand %p2121_p0, %p2118_p13 }
 0x4c9   :  { %2126 = shalt.err (!%p2123_p1)
}
 0x4ca   :  { %1618 = dma.vmem_to_hbm [thread:$0]  %s1613_s4, 256, %s2903_s12, [#allocation17], %s2204_s6, %s2204_s6, %s2205_s23  }
 0x4cb   :  { %s2213_s16 = smov [#allocation18]  }
 0x4cc   :  { %s1624_s26 = sshll.u32 %s2213_s16, 4  ;;  %s1625_s26 = int_to_ptr.vmem [resolvable:$true] %s1624_s26 }
 0x4cd   :  { %s2127_s7 = scalar_lea.vmem %s1625_s26, 256  ;;  %p2132_p3 = scmp.lt.s32.totalorder %s1625_s26, %s1625_s26 }
 0x4ce   :  { %p2128_p2 = scmp.ne.s32.totalorder %s1625_s26, %s2127_s7  ;;  %p2133_p4 = scmp.lt.s32.totalorder %s2127_s7, %s2127_s7 }
 0x4d0   :  { %p2134_p5 = por %p2133_p4, %p2132_p3 }
 0x4d2   :  { %p2135_p6 = pnand %p2134_p5, %p2128_p2 }
 0x4d4   :  { %2138 = shalt.err (!%p2135_p6)
}
 0x4d5   :  { %s2139_s17 = scalar_lea.hbm %s2904_s13, 256 }
 0x4d6   :  { %p2140_p7 = scmp.ne.s32.totalorder %s2904_s13, %s2139_s17  ;;  %p2143_p8 = scmp.lt.u32.totalorder %s2139_s17, %s2904_s13 }
 0x4d8   :  { %p2145_p9 = pnand %p2143_p8, %p2140_p7 }
 0x4da   :  { %2148 = shalt.err (!%p2145_p9)
}
 0x4db   :  { %1630 = dma.vmem_to_hbm [thread:$0]  %s1625_s26, 256, %s2904_s13, [#allocation17], %s2204_s6, %s2204_s6, %s2205_s23  }
 0x4dc   :  { %v1784_v14 = vld [vmem:[%s2901_s10] ss:$0 sm:$0xff]  ;;  %s2214_s5 = smov [#allocation15]  }
 0x4dd   :  { %s1600_s4 = sshll.u32 %s2214_s5, 4  ;;  %s1601_s4 = int_to_ptr.vmem [resolvable:$true] %s1600_s4 }
 0x4de   :  { %s2149_s10 = scalar_lea.vmem %s1601_s4, 1024  ;;  %p2154_p11 = scmp.lt.s32.totalorder %s1601_s4, %s1601_s4 }
 0x4df   :  { %p2150_p10 = scmp.ne.s32.totalorder %s1601_s4, %s2149_s10  ;;  %p2155_p12 = scmp.lt.s32.totalorder %s2149_s10, %s2149_s10 }
 0x4e1   :  { %p2156_p13 = por %p2155_p12, %p2154_p11 }
 0x4e3   :  { %p2157_p0 = pnand %p2156_p13, %p2150_p10 }
 0x594   :  { %v1825_v15 = vpop.f32.mrb[0].mxu0 }
 0x595   :  { %v1829_v16 = vpop.f32.mrb[0].mxu1  ;;  %v1565_v17 = vadd.f32 %v1825_v15, %v1784_v14  ;;  %v1556_v19 = vpop.f32.mrb[1].mxu0 }
 0x596   :  { %v1581_v18 = vadd.f32 %v1829_v16, %v1784_v14  ;;  %v1572_v20 = vpop.f32.mrb[1].mxu1  ;;  %v1557_v21 = vadd.f32 %v1784_v14, %v1556_v19  ;;  %v1826_v23 = vpop.f32.mrb[2].mxu0 }
 0x597   :  { %v1573_v22 = vadd.f32 %v1784_v14, %v1572_v20  ;;  %v1830_v24 = vpop.f32.mrb[2].mxu1  ;;  %1589 = vst [vmem:[#allocation15 + $0x10] sm:$0xff] %v1565_v17  ;;  %v1568_v25 = vadd.f32 %v1826_v23, %v1784_v14  ;;  %v1559_v27 = vpop.f32.mrb[3].mxu0 }
 0x598   :  { %1593 = vst [vmem:[#allocation15 + $0x30] sm:$0xff] %v1581_v18  ;;  %v1584_v26 = vadd.f32 %v1830_v24, %v1784_v14  ;;  %v1575_v28 = vpop.f32.mrb[3].mxu1  ;;  %1587 = vst [vmem:[#allocation15] sm:$0xff] %v1557_v21  ;;  %v1560_v33 = vadd.f32 %v1784_v14, %v1559_v27 }
 0x599   :  { %1591 = vst [vmem:[#allocation15 + $0x20] sm:$0xff] %v1573_v22  ;;  %v1576_v34 = vadd.f32 %v1784_v14, %v1575_v28  ;;  %1590 = vst [vmem:[#allocation15 + $0x18] sm:$0xff] %v1568_v25 }
 0x59a   :  { %1594 = vst [vmem:[#allocation15 + $0x38] sm:$0xff] %v1584_v26  ;;  %1588 = vst [vmem:[#allocation15 + $0x8] sm:$0xff] %v1560_v33 }
 0x59b   :  { %1592 = vst [vmem:[#allocation15 + $0x28] sm:$0xff] %v1576_v34 }
 0x59c   :  { %2160 = shalt.err (!%p2157_p0)
}
 0x59d   :  { %s2161_s9 = scalar_lea.hbm %s2902_s11, 1024 }
 0x59e   :  { %p2162_p1 = scmp.ne.s32.totalorder %s2902_s11, %s2161_s9  ;;  %p2165_p2 = scmp.lt.u32.totalorder %s2161_s9, %s2902_s11 }
 0x5a0   :  { %p2167_p3 = pnand %p2165_p2, %p2162_p1 }
 0x5a2   :  { %2170 = shalt.err (!%p2167_p3)
}
 0x5a3   :  { %1606 = dma.vmem_to_hbm [thread:$0]  %s1601_s4, 1024, %s2902_s11, [#allocation6], %s2204_s6, %s2204_s6, %s2205_s23  }
 0x5a4   :  { %2187 = dma.done.wait [#allocation6], 1024  }
 0x5a5   :  { %2188 = vsyncadd [#allocation6], 4294966272 }
 0x5a6   :  { %2189 = dma.done.wait [#allocation17], 512  }
 0x5a7   :  { %2190 = vsyncadd [#allocation17], 4294966784 }
 0x5a8   :  { %1640 = vsyncpa [#allocation5], 1 }
 0x5a9   :  { %1641 = vsyncpa [#allocation8], 1 }
 0x5aa   :  { %1642 = vsyncpa [#allocation11], 1 }
 0x5ab   :  { %1643 = vsyncpa [#allocation14], 1 }
 0x5ac   :  { %1644 = vsyncpa [#allocation6], 1 }
 0x5ad   :  { %1645 = vsyncpa [#allocation17], 1 }

</bundles_post_ra>
